<compile_context>
chip_gen: v6e
topology: v6e:2x2x1
jax: 0.10.0
libtpu: 0.0.40
codegen_flags: <defaults>
</compile_context>

<pallas_src>
import math
import functools

import jax
import jax.numpy as jnp
from jax.experimental import pallas as pl
from jax.experimental.pallas import tpu as pltpu


# ----------------------------------------------------------------------------
# Pallas kernel: one encoder layer for one batch element (grid step = (b, l))
# ----------------------------------------------------------------------------
def _encoder_layer_kernel(
    lens_ref,                                     # SMEM (B,) int32 (scalar prefetch)
    x_ref, rope_ref,
    wall_ref, ball_ref, wo_ref, vecs_ref,
    w1_ref, b1_ref, w2_ref,
    o_ref,
    *, T, C, F, H, Kc, K, pad, eps, cdt, prec):

    b = pl.program_id(0)
    l = pl.program_id(1)
    seq_len = lens_ref[b]

    # Layer 0: load the input activation into the resident output/state block.
    @pl.when(l == 0)
    def _init():
        o_ref[0] = x_ref[0]

    # masks rebuilt in-kernel from the sequence length (no lane-1 DMAs)
    row_ids = jax.lax.broadcasted_iota(jnp.int32, (T, 1), 0)
    mcol = (row_ids < seq_len).astype(jnp.float32)                # (T, 1)
    col_ids = jax.lax.broadcasted_iota(jnp.int32, (1, T), 1)
    key_bias = jnp.where(col_ids < seq_len, 0.0, -10000.0)        # (1, T)

    def layer_norm(z, g, bta):                                    # channel (lane) axis
        m = jnp.mean(z, axis=-1, keepdims=True)
        m2 = jnp.mean(z * z, axis=-1, keepdims=True)              # one-pass stats
        var = jnp.maximum(m2 - m * m, 0.0)
        return (z - m) * jax.lax.rsqrt(var + eps) * g + bta

    def shift_rows(z, off):                                       # y[t] = z[t+off], 0 outside
        if off == 0:
            return z
        zeros = jnp.zeros((abs(off), z.shape[1]), z.dtype)
        if off > 0:
            return jnp.concatenate([z[off:, :], zeros], axis=0)
        return jnp.concatenate([zeros, z[: z.shape[0] + off, :]], axis=0)

    def mm(a, w):                                                 # cdt inputs, f32 acc
        return jax.lax.dot_general(a.astype(cdt), w,
                                   (((1,), (0,)), ((), ())),
                                   preferred_element_type=jnp.float32,
                                   precision=prec)

    vecs = vecs_ref[0]                                            # (8, C) packed vectors
    bo, g1, be1, b2, g2, be2 = (vecs[0:1], vecs[1:2], vecs[2:3],
                                vecs[3:4], vecs[4:5], vecs[5:6])

    x = o_ref[0]                  # (T, C) resident state
    xm = x * mcol                 # x = x * x_mask (start of layer)

    # ---------------- fused QKV (+ RoPE-rotated) projection ----------------
    # columns: [ Wq*s | (Wq@R)*s | Wk | Wk@R | Wv ]   (1/sqrt(Kc) folded into q)
    proj = mm(xm, wall_ref[0]) + ball_ref[0]
    q, qR = proj[:, 0:C], proj[:, C:2 * C]
    k, kR = proj[:, 2 * C:3 * C], proj[:, 3 * C:4 * C]
    v = proj[:, 4 * C:5 * C]
    cosF, sinF = rope_ref[0], rope_ref[1]                         # (T, C) head-tiled
    qrope = q * cosF + qR * sinF                                  # RoPE = two VPU FMAs
    krope = k * cosF + kR * sinF

    # ------------ per-head attention, accumulated into the o-projection ------------
    wo_full = wo_ref[0]                                           # (C, C)
    y = jnp.zeros((T, C), jnp.float32)
    for h in range(H):                                            # statically unrolled
        lo = h * Kc
        qh = qrope[:, lo:lo + Kc].astype(cdt)
        kh = krope[:, lo:lo + Kc].astype(cdt)
        vh = v[:, lo:lo + Kc].astype(cdt)
        s = jax.lax.dot_general(qh, kh, (((1,), (1,)), ((), ())),
                                preferred_element_type=jnp.float32,
                                precision=prec) + key_bias
        smax = jnp.max(s, axis=-1, keepdims=True)
        e = jnp.exp(s - smax)
        p = e / jnp.sum(e, axis=-1, keepdims=True)                # EXACT reciprocal
        oh = jax.lax.dot_general(p.astype(cdt), vh, (((1,), (0,)), ((), ())),
                                 preferred_element_type=jnp.float32,
                                 precision=prec)
        y = y + mm(oh, wo_full[lo:lo + Kc, :])                    # no head concat
    y = y + bo

    x1 = layer_norm(xm + y, g1, be1)

    # -------- FFN: same-padded Conv1d as K accumulated per-tap matmuls --------
    x1c = (x1 * mcol).astype(cdt)
    hmid = jnp.zeros((T, F), jnp.float32)
    for kk in range(K):
        hmid = hmid + mm(shift_rows(x1c, kk - pad), w1_ref[0, kk * C:(kk + 1) * C, :])
    hmid = jnp.maximum(hmid + b1_ref[0], 0.0) * mcol              # relu, drop(p=0), *mask

    hc = hmid.astype(cdt)
    y2 = jnp.zeros((T, C), jnp.float32)
    for kk in range(K):
        y2 = y2 + mm(shift_rows(hc, kk - pad), w2_ref[0, kk * F:(kk + 1) * F, :])
    y2 = (y2 + b2) * mcol

    o_ref[0] = layer_norm(x1 + y2, g2, be2)


# ----------------------------------------------------------------------------
# Wrapper glue
# ----------------------------------------------------------------------------
def _rope_tables(T, Kc, d, base=10000):
    """Full-width (Kc) RoPE tables (1/0 in pass-through dims) + rotation matrix."""
    half = d // 2
    theta = 1.0 / (base ** (jnp.arange(0, d, 2, dtype=jnp.float32) / d))     # (d/2,)
    idx = jnp.arange(T, dtype=jnp.float32)[:, None] * theta[None, :]         # (T, d/2)
    idx2 = jnp.concatenate([idx, idx], axis=1)                               # (T, d)
    cosf = jnp.concatenate([jnp.cos(idx2), jnp.ones((T, Kc - d), jnp.float32)], axis=1)
    sinf = jnp.concatenate([jnp.sin(idx2), jnp.zeros((T, Kc - d), jnp.float32)], axis=1)
    # (q @ R)[:, j] = -q[:, j+half] (j<half) ; q[:, j-half] (half<=j<d) ; 0 (j>=d)
    R = jnp.zeros((Kc, Kc), jnp.float32)
    rows = jnp.arange(half)
    R = R.at[rows + half, rows].set(-1.0)
    R = R.at[rows, rows + half].set(1.0)
    return cosf, sinf, R


def _pack_params(layers, rot, H, Kc, C, F, K, cdt):
    """Stack per-layer weights on a leading layer axis; fuse QKV(+RoPE), fold 1/sqrt(Kc)."""
    s = 1.0 / math.sqrt(Kc)

    def rot_w(wt):      # (C, C) columns head-major -> per-head @ R
        return (wt.reshape(C, H, Kc) @ rot).reshape(C, C)

    def rot_b(bb):
        return (bb.reshape(H, Kc) @ rot).reshape(C)

    w_all_l, b_all_l, wo_l, vecs_l, w1_l, b1_l, w2_l = [], [], [], [], [], [], []
    for L in layers:
        wq_t, wk_t, wv_t = L["wq"].T, L["wk"].T, L["wv"].T
        w_all_l.append(jnp.concatenate(
            [wq_t * s, rot_w(wq_t) * s, wk_t, rot_w(wk_t), wv_t], axis=1))   # (C, 5C)
        b_all_l.append(jnp.concatenate(
            [L["bq"] * s, rot_b(L["bq"]) * s, L["bk"], rot_b(L["bk"]), L["bv"]]
        ).reshape(1, 5 * C))
        wo_l.append(L["wo"].T)                                               # (C, C)
        vec = jnp.stack([L["bo"], L["g1"], L["be1"],
                         L["b2"], L["g2"], L["be2"]], axis=0)                # (6, C)
        vecs_l.append(jnp.concatenate([vec, jnp.zeros((2, C), jnp.float32)], axis=0))
        w1_l.append(jnp.transpose(L["w1"], (2, 1, 0)).reshape(K * C, F))     # (K*C, F)
        b1_l.append(L["b1"].reshape(1, F))
        w2_l.append(jnp.transpose(L["w2"], (2, 1, 0)).reshape(K * F, C))     # (K*F, C)

    return dict(
        w_all=jnp.stack(w_all_l).astype(cdt),   # (L, C, 5C)
        b_all=jnp.stack(b_all_l),               # (L, 1, 5C) f32
        wo=jnp.stack(wo_l).astype(cdt),         # (L, C, C)
        vecs=jnp.stack(vecs_l),                 # (L, 8, C)  f32 [bo,g1,be1,b2,g2,be2,0,0]
        w1=jnp.stack(w1_l).astype(cdt),         # (L, K*C, F)
        b1=jnp.stack(b1_l),                     # (L, 1, F)  f32
        w2=jnp.stack(w2_l).astype(cdt),         # (L, K*F, C)
    )


def encoder_forward_pallas(x_bct, x_mask_b1t, layers, *, n_heads, kernel_size,
                           filter_channels, compute_dtype=jnp.bfloat16):
    """Encoder.forward.  x_bct: (B, C, T); x_mask_b1t: (B, 1, T) prefix mask."""
    B, C, T = x_bct.shape
    H = n_heads
    assert C % H == 0
    Kc = C // H
    d = int(Kc * 0.5)            # RotaryPositionalEmbeddings(k_channels * 0.5)
    F = filter_channels
    K = kernel_size
    pad = K // 2
    nL = len(layers)
    prec = jax.lax.Precision.HIGHEST if compute_dtype == jnp.float32 else None

    x = jnp.transpose(x_bct, (0, 2, 1)).astype(jnp.float32)                 # (B, T, C)
    mask_bt1 = jnp.transpose(x_mask_b1t, (0, 2, 1)).astype(jnp.float32)     # (B, T, 1)
    # x_mask is a prefix mask built from lengths in Matcha; pass lengths via SMEM.
    lengths = jnp.sum(x_mask_b1t[:, 0, :], axis=-1).astype(jnp.int32)       # (B,)

    cosf, sinf, rot = _rope_tables(T, Kc, d)
    rope = jnp.stack([jnp.tile(cosf, (1, H)), jnp.tile(sinf, (1, H))], axis=0)  # (2,T,C)

    packed = _pack_params(layers, rot, H, Kc, C, F, K, compute_dtype)

    kernel = functools.partial(
        _encoder_layer_kernel, T=T, C=C, F=F, H=H, Kc=Kc, K=K, pad=pad,
        eps=1e-4, cdt=compute_dtype, prec=prec)

    # Explicit VMEM budget (weights double-buffered by the pipeline + temporaries).
    itm = jnp.dtype(compute_dtype).itemsize
    wbytes = (C * 5 * C + C * C + K * C * F + K * F * C) * itm
    sbytes = (5 * C + 8 * C + F) * 4
    abytes = (2 * T * C + 2 * T * C + 2 * T * C) * 4
    tbytes = (5 * T * C + 6 * T * C + H * T * T + 3 * T * F) * 4
    vmem_limit = int(min(60 * 1024 * 1024,
                         max(8 * 1024 * 1024,
                             2 * (2 * (wbytes + sbytes) + abytes + tbytes))))

    full = lambda b, l, lens: (0, 0, 0)     # constant blocks (rope)
    per_b = lambda b, l, lens: (b, 0, 0)    # activation / state blocks
    per_l = lambda b, l, lens: (l, 0, 0)    # per-layer weight blocks (pipelined over l)

    in_specs = [
        pl.BlockSpec((1, T, C), per_b),           # x (read at layer 0 only)
        pl.BlockSpec((2, T, C), full),            # rope cos/sin (head-tiled)
        pl.BlockSpec((1, C, 5 * C), per_l),       # fused qkv(+rot) weights
        pl.BlockSpec((1, 1, 5 * C), per_l),       # fused biases
        pl.BlockSpec((1, C, C), per_l),           # wo
        pl.BlockSpec((1, 8, C), per_l),           # packed [bo,g1,be1,b2,g2,be2]
        pl.BlockSpec((1, K * C, F), per_l),       # ffn w1 (per-tap rows)
        pl.BlockSpec((1, 1, F), per_l),           # ffn b1
        pl.BlockSpec((1, K * F, C), per_l),       # ffn w2 (per-tap rows)
    ]
    out_specs = pl.BlockSpec((1, T, C), per_b)    # resident state across the layer axis

    out = pl.pallas_call(
        kernel,
        out_shape=jax.ShapeDtypeStruct((B, T, C), jnp.float32),
        grid_spec=pltpu.PrefetchScalarGridSpec(
            num_scalar_prefetch=1,
            grid=(B, nL),
            in_specs=in_specs,
            out_specs=out_specs),
        compiler_params=pltpu.CompilerParams(
            dimension_semantics=("parallel", "arbitrary"),
            vmem_limit_bytes=vmem_limit),
    )(lengths, x, rope,
      packed["w_all"], packed["b_all"], packed["wo"], packed["vecs"],
      packed["w1"], packed["b1"], packed["w2"])

    out = out * mask_bt1                           # final x = x * x_mask (glue)
    return jnp.transpose(out, (0, 2, 1))           # back to (B, C, T)


# ----------------------------------------------------------------------------
# Deterministic synthetic parameters (shapes follow the PyTorch __init__)
# ----------------------------------------------------------------------------
def init_encoder_params(key, C, F, K, n_layers):
    layers = []
    for i in range(n_layers):
        ks = jax.random.split(jax.random.fold_in(key, i), 16)
        s_c = 1.0 / math.sqrt(C)
        layers.append(dict(
            wq=jax.random.normal(ks[0], (C, C), jnp.float32) * s_c,
            bq=jax.random.normal(ks[1], (C,), jnp.float32) * 0.1,
            wk=jax.random.normal(ks[2], (C, C), jnp.float32) * s_c,
            bk=jax.random.normal(ks[3], (C,), jnp.float32) * 0.1,
            wv=jax.random.normal(ks[4], (C, C), jnp.float32) * s_c,
            bv=jax.random.normal(ks[5], (C,), jnp.float32) * 0.1,
            wo=jax.random.normal(ks[6], (C, C), jnp.float32) * s_c,
            bo=jax.random.normal(ks[7], (C,), jnp.float32) * 0.1,
            g1=1.0 + 0.1 * jax.random.normal(ks[8], (C,), jnp.float32),
            be1=0.1 * jax.random.normal(ks[9], (C,), jnp.float32),
            w1=jax.random.normal(ks[10], (F, C, K), jnp.float32) / math.sqrt(C * K),
            b1=jax.random.normal(ks[11], (F,), jnp.float32) * 0.1,
            w2=jax.random.normal(ks[12], (C, F, K), jnp.float32) / math.sqrt(F * K),
            b2=jax.random.normal(ks[13], (C,), jnp.float32) * 0.1,
            g2=1.0 + 0.1 * jax.random.normal(ks[14], (C,), jnp.float32),
            be2=0.1 * jax.random.normal(ks[15], (C,), jnp.float32),
        ))
    return layers


# ----------------------------------------------------------------------------
# Pure-JAX reference (mirrors the PyTorch module, (B, C, T) layout, f32)
# ----------------------------------------------------------------------------
def encoder_ref(x, x_mask, layers, *, n_heads, kernel_size, base=10000):
    B, C, T = x.shape
    H, Kc = n_heads, C // n_heads
    d = int(Kc * 0.5)
    half = d // 2
    K = kernel_size
    pad = K // 2
    eps = 1e-4
    HI = jax.lax.Precision.HIGHEST

    theta = 1.0 / (base ** (jnp.arange(0, d, 2, dtype=jnp.float32) / d))
    idx = jnp.arange(T, dtype=jnp.float32)[:, None] * theta[None, :]
    idx2 = jnp.concatenate([idx, idx], axis=1)
    cos = jnp.cos(idx2)[None, None, :, :]
    sin = jnp.sin(idx2)[None, None, :, :]

    def rope(z):  # (B, H, T, Kc)
        zr, zp = z[..., :d], z[..., d:]
        neg = jnp.concatenate([-zr[..., half:], zr[..., :half]], axis=-1)
        return jnp.concatenate([zr * cos + neg * sin, zp], axis=-1)

    def ln(z, g, b):
        mean = jnp.mean(z, axis=1, keepdims=True)
        var = jnp.mean((z - mean) ** 2, axis=1, keepdims=True)
        return (z - mean) * jax.lax.rsqrt(var + eps) * g[None, :, None] + b[None, :, None]

    def conv1d(z, w, b):
        y = jax.lax.conv_general_dilated(
            z, w, window_strides=(1,), padding=[(pad, pad)],
            dimension_numbers=("NCH", "OIH", "NCH"), precision=HI)
        return y + b[None, :, None]

    attn_mask = x_mask[:, :, None, :] * x_mask[:, :, :, None]
    for L in layers:
        x = x * x_mask
        q = jnp.einsum("oc,bct->bot", L["wq"], x, precision=HI) + L["bq"][None, :, None]
        k = jnp.einsum("oc,bct->bot", L["wk"], x, precision=HI) + L["bk"][None, :, None]
        v = jnp.einsum("oc,bct->bot", L["wv"], x, precision=HI) + L["bv"][None, :, None]

        def to_heads(z):
            return z.reshape(B, H, Kc, T).transpose(0, 1, 3, 2)

        qh, kh, vh = rope(to_heads(q)), rope(to_heads(k)), to_heads(v)
        scores = jnp.einsum("bhtc,bhsc->bhts", qh, kh, precision=HI) / math.sqrt(Kc)
        scores = jnp.where(attn_mask == 0, -10000.0, scores)
        p = jax.nn.softmax(scores, axis=-1)
        out = jnp.einsum("bhts,bhsc->bhtc", p, vh, precision=HI)
        out = out.transpose(0, 1, 3, 2).reshape(B, C, T)
        y = jnp.einsum("oc,bct->bot", L["wo"], out, precision=HI) + L["bo"][None, :, None]
        x = ln(x + y, L["g1"], L["be1"])

        h1 = jax.nn.relu(conv1d(x * x_mask, L["w1"], L["b1"]))
        y2 = conv1d(h1 * x_mask, L["w2"], L["b2"]) * x_mask
        x = ln(x + y2, L["g2"], L["be2"])
    return x * x_mask


# ----------------------------------------------------------------------------
if __name__ == "__main__":
    B, C, T = 2, 32, 8          # batch, hidden_channels, seq_len
    F = 64                      # filter_channels
    H = 2                       # n_heads
    n_layers = 2
    K = 3                       # kernel_size

    key = jax.random.PRNGKey(0)
    kx, kp = jax.random.split(key, 2)
    x = jax.random.normal(kx, (B, C, T), jnp.float32)
    lengths = jnp.array([T, 5])
    x_mask = (jnp.arange(T)[None, :] < lengths[:, None]).astype(jnp.float32)[:, None, :]

    layers = init_encoder_params(kp, C, F, K, n_layers)

    ref = encoder_ref(x, x_mask, layers, n_heads=H, kernel_size=K)

    # f32 MXU path: must match the f32 reference tightly.
    out_f32 = encoder_forward_pallas(x, x_mask, layers, n_heads=H, kernel_size=K,
                                     filter_channels=F, compute_dtype=jnp.float32)
    out_f32 = jax.block_until_ready(out_f32)
    assert out_f32.shape == (B, C, T)
    err_f32 = float(jnp.max(jnp.abs(out_f32 - ref)))
    if err_f32 > 2e-3:
        raise AssertionError(f"f32 path mismatch vs reference: max abs err {err_f32}")

    # bf16 MXU path (default, fast): validated with a bf16-appropriate tolerance
    # since the reference is pure f32 (bf16 inputs, f32 accumulation).
    out_bf16 = encoder_forward_pallas(x, x_mask, layers, n_heads=H, kernel_size=K,
                                      filter_channels=F, compute_dtype=jnp.bfloat16)
    out_bf16 = jax.block_until_ready(out_bf16)
    err_bf16 = float(jnp.max(jnp.abs(out_bf16 - ref)))
    if err_bf16 > 5e-2:
        raise AssertionError(f"bf16 path mismatch vs reference: max abs err {err_bf16}")

    print("KERNEL_OK")
</pallas_src>

<mosaic_0001>
module attributes {stable_mosaic.version = 11 : i64} {
  func.func @_encoder_layer_kernel(%arg0: i32, %arg1: i32, %arg2: memref<2xi32, #tpu.memory_space<smem>>, %arg3: memref<1x8x32xf32, #tpu.memory_space<vmem>>, %arg4: memref<2x8x32xf32, #tpu.memory_space<vmem>>, %arg5: memref<1x32x160xf32, #tpu.memory_space<vmem>>, %arg6: memref<1x1x160xf32, #tpu.memory_space<vmem>>, %arg7: memref<1x32x32xf32, #tpu.memory_space<vmem>>, %arg8: memref<1x8x32xf32, #tpu.memory_space<vmem>>, %arg9: memref<1x96x64xf32, #tpu.memory_space<vmem>>, %arg10: memref<1x1x64xf32, #tpu.memory_space<vmem>>, %arg11: memref<1x192x32xf32, #tpu.memory_space<vmem>>, %arg12: memref<1x8x32xf32, #tpu.memory_space<vmem>>) attributes {dimension_semantics = [#tpu.dimension_semantics<parallel>, #tpu.dimension_semantics<arbitrary>], iteration_bounds = array<i64: 2, 2>, scalar_prefetch = 1 : i64, scratch_operands = 0 : i64, tpu.core_type = #tpu.core_type<tc>, window_params = [{transform_indices = @transform_0, window_bounds = array<i64: 1, 8, 32>}, {pipeline_mode = #tpu.pipeline_mode<synchronous>, transform_indices = @transform_1, window_bounds = array<i64: 2, 8, 32>}, {transform_indices = @transform_2, window_bounds = array<i64: 1, 32, 160>}, {transform_indices = @transform_3, window_bounds = array<i64: 1, 1, 160>}, {transform_indices = @transform_4, window_bounds = array<i64: 1, 32, 32>}, {transform_indices = @transform_5, window_bounds = array<i64: 1, 8, 32>}, {transform_indices = @transform_6, window_bounds = array<i64: 1, 96, 64>}, {transform_indices = @transform_7, window_bounds = array<i64: 1, 1, 64>}, {transform_indices = @transform_8, window_bounds = array<i64: 1, 192, 32>}, {transform_indices = @transform_9, window_bounds = array<i64: 1, 8, 32>}]} {
    %0 = arith.index_cast %arg0 : i32 to index
    %1 = memref.load %arg2[%0] : memref<2xi32, #tpu.memory_space<smem>>
    %c0_i32 = arith.constant 0 : i32
    %2 = arith.cmpi eq, %arg1, %c0_i32 : i32
    %3 = arith.extui %2 : i1 to i32
    %c0_i32_0 = arith.constant 0 : i32
    %4 = arith.cmpi ne, %3, %c0_i32_0 : i32
    scf.if %4 {
      %c0_79 = arith.constant 0 : index
      %c0_80 = arith.constant 0 : index
      %c0_81 = arith.constant 0 : index
      %198 = vector.load %arg3[%c0_79, %c0_80, %c0_81] : memref<1x8x32xf32, #tpu.memory_space<vmem>>, vector<1x8x32xf32>
      %199 = vector.shape_cast %198 : vector<1x8x32xf32> to vector<8x32xf32>
      %c0_82 = arith.constant 0 : index
      %c0_83 = arith.constant 0 : index
      %c0_84 = arith.constant 0 : index
      %200 = vector.load %arg12[%c0_82, %c0_83, %c0_84] : memref<1x8x32xf32, #tpu.memory_space<vmem>>, vector<1x8x32xf32>
      %201 = vector.shape_cast %200 : vector<1x8x32xf32> to vector<8x32xf32>
      %202 = vector.shape_cast %199 : vector<8x32xf32> to vector<1x8x32xf32>
      tpu.vector_store %arg12[%c0_82, %c0_83, %c0_84], %202 {strides = array<i32>} : memref<1x8x32xf32, #tpu.memory_space<vmem>>, vector<1x8x32xf32>,
    } else {
    }
    %5 = tpu.iota {dimensions = array<i32: 0>} : vector<8x1xi32>
    %6 = vector.broadcast %1 : i32 to vector<8x1xi32>
    %7 = arith.cmpi slt, %5, %6 : vector<8x1xi32>
    %8 = arith.extui %7 : vector<8x1xi1> to vector<8x1xi32>
    %9 = arith.sitofp %8 : vector<8x1xi32> to vector<8x1xf32>
    %10 = tpu.iota {dimensions = array<i32: 1>} : vector<1x8xi32>
    %11 = vector.broadcast %1 : i32 to vector<1x8xi32>
    %12 = arith.cmpi slt, %10, %11 : vector<1x8xi32>
    %cst = arith.constant 0.000000e+00 : f32
    %cst_1 = arith.constant -1.000000e+04 : f32
    %13 = vector.broadcast %cst : f32 to vector<1x8xf32>
    %14 = vector.broadcast %cst_1 : f32 to vector<1x8xf32>
    %15 = arith.select %12, %13, %14 : vector<1x8xi1>, vector<1x8xf32>
    %c0 = arith.constant 0 : index
    %c0_2 = arith.constant 0 : index
    %c0_3 = arith.constant 0 : index
    %16 = vector.load %arg8[%c0, %c0_2, %c0_3] : memref<1x8x32xf32, #tpu.memory_space<vmem>>, vector<1x8x32xf32>
    %17 = vector.shape_cast %16 : vector<1x8x32xf32> to vector<8x32xf32>
    %18 = vector.extract_strided_slice %17 {offsets = [0, 0], sizes = [1, 32], strides = [1, 1]} : vector<8x32xf32> to vector<1x32xf32>
    %19 = vector.extract_strided_slice %17 {offsets = [1, 0], sizes = [1, 32], strides = [1, 1]} : vector<8x32xf32> to vector<1x32xf32>
    %20 = vector.extract_strided_slice %17 {offsets = [2, 0], sizes = [1, 32], strides = [1, 1]} : vector<8x32xf32> to vector<1x32xf32>
    %21 = vector.extract_strided_slice %17 {offsets = [3, 0], sizes = [1, 32], strides = [1, 1]} : vector<8x32xf32> to vector<1x32xf32>
    %22 = vector.extract_strided_slice %17 {offsets = [4, 0], sizes = [1, 32], strides = [1, 1]} : vector<8x32xf32> to vector<1x32xf32>
    %23 = vector.extract_strided_slice %17 {offsets = [5, 0], sizes = [1, 32], strides = [1, 1]} : vector<8x32xf32> to vector<1x32xf32>
    %c0_4 = arith.constant 0 : index
    %c0_5 = arith.constant 0 : index
    %c0_6 = arith.constant 0 : index
    %24 = vector.load %arg12[%c0_4, %c0_5, %c0_6] : memref<1x8x32xf32, #tpu.memory_space<vmem>>, vector<1x8x32xf32>
    %25 = vector.shape_cast %24 : vector<1x8x32xf32> to vector<8x32xf32>
    %26 = vector.broadcast %9 : vector<8x1xf32> to vector<8x32xf32>
    %27 = arith.mulf %25, %26 : vector<8x32xf32>
    %c0_7 = arith.constant 0 : index
    %c0_8 = arith.constant 0 : index
    %c0_9 = arith.constant 0 : index
    %28 = vector.load %arg5[%c0_7, %c0_8, %c0_9] : memref<1x32x160xf32, #tpu.memory_space<vmem>>, vector<1x32x160xf32>
    %29 = vector.shape_cast %28 : vector<1x32x160xf32> to vector<32x160xf32>
    %cst_10 = arith.constant dense<0.000000e+00> : vector<8x160xf32>
    %30 = tpu.matmul %27, %29, %cst_10 {dimension_numbers = #tpu.dot_dimension_numbers<[1], [0], [0], [1], [0, 0, 1, 1], [], []>, precision = #tpu.contract_precision<fp32>} : vector<8x32xf32>, vector<32x160xf32>, vector<8x160xf32> -> vector<8x160xf32>
    %c0_11 = arith.constant 0 : index
    %c0_12 = arith.constant 0 : index
    %c0_13 = arith.constant 0 : index
    %31 = vector.load %arg6[%c0_11, %c0_12, %c0_13] : memref<1x1x160xf32, #tpu.memory_space<vmem>>, vector<1x1x160xf32>
    %32 = vector.shape_cast %31 : vector<1x1x160xf32> to vector<1x160xf32>
    %33 = vector.broadcast %32 : vector<1x160xf32> to vector<8x160xf32>
    %34 = arith.addf %30, %33 : vector<8x160xf32>
    %35 = vector.extract_strided_slice %34 {offsets = [0, 0], sizes = [8, 32], strides = [1, 1]} : vector<8x160xf32> to vector<8x32xf32>
    %36 = vector.extract_strided_slice %34 {offsets = [0, 32], sizes = [8, 32], strides = [1, 1]} : vector<8x160xf32> to vector<8x32xf32>
    %37 = vector.extract_strided_slice %34 {offsets = [0, 64], sizes = [8, 32], strides = [1, 1]} : vector<8x160xf32> to vector<8x32xf32>
    %38 = vector.extract_strided_slice %34 {offsets = [0, 96], sizes = [8, 32], strides = [1, 1]} : vector<8x160xf32> to vector<8x32xf32>
    %39 = vector.extract_strided_slice %34 {offsets = [0, 128], sizes = [8, 32], strides = [1, 1]} : vector<8x160xf32> to vector<8x32xf32>
    %c0_14 = arith.constant 0 : index
    %c0_15 = arith.constant 0 : index
    %c0_16 = arith.constant 0 : index
    %40 = vector.load %arg4[%c0_14, %c0_15, %c0_16] : memref<2x8x32xf32, #tpu.memory_space<vmem>>, vector<1x8x32xf32>
    %41 = vector.shape_cast %40 : vector<1x8x32xf32> to vector<8x32xf32>
    %c1 = arith.constant 1 : index
    %c0_17 = arith.constant 0 : index
    %c0_18 = arith.constant 0 : index
    %42 = vector.load %arg4[%c1, %c0_17, %c0_18] : memref<2x8x32xf32, #tpu.memory_space<vmem>>, vector<1x8x32xf32>
    %43 = vector.shape_cast %42 : vector<1x8x32xf32> to vector<8x32xf32>
    %44 = arith.mulf %35, %41 : vector<8x32xf32>
    %45 = arith.mulf %36, %43 : vector<8x32xf32>
    %46 = arith.addf %44, %45 : vector<8x32xf32>
    %47 = arith.mulf %37, %41 : vector<8x32xf32>
    %48 = arith.mulf %38, %43 : vector<8x32xf32>
    %49 = arith.addf %47, %48 : vector<8x32xf32>
    %c0_19 = arith.constant 0 : index
    %c0_20 = arith.constant 0 : index
    %c0_21 = arith.constant 0 : index
    %50 = vector.load %arg7[%c0_19, %c0_20, %c0_21] : memref<1x32x32xf32, #tpu.memory_space<vmem>>, vector<1x32x32xf32>
    %51 = vector.shape_cast %50 : vector<1x32x32xf32> to vector<32x32xf32>
    %cst_22 = arith.constant 0.000000e+00 : f32
    %52 = vector.broadcast %cst_22 : f32 to vector<8x32xf32>
    %53 = vector.extract_strided_slice %46 {offsets = [0, 0], sizes = [8, 16], strides = [1, 1]} : vector<8x32xf32> to vector<8x16xf32>
    %54 = vector.extract_strided_slice %49 {offsets = [0, 0], sizes = [8, 16], strides = [1, 1]} : vector<8x32xf32> to vector<8x16xf32>
    %55 = vector.extract_strided_slice %39 {offsets = [0, 0], sizes = [8, 16], strides = [1, 1]} : vector<8x32xf32> to vector<8x16xf32>
    %cst_23 = arith.constant dense<0.000000e+00> : vector<8x8xf32>
    %56 = tpu.matmul %53, %54, %cst_23 {dimension_numbers = #tpu.dot_dimension_numbers<[1], [1], [0], [0], [0, 0, 1, 0], [], []>, precision = #tpu.contract_precision<fp32>} : vector<8x16xf32>, vector<8x16xf32>, vector<8x8xf32> -> vector<8x8xf32>
    %57 = vector.broadcast %15 : vector<1x8xf32> to vector<8x8xf32>
    %58 = arith.addf %56, %57 : vector<8x8xf32>
    %cst_24 = arith.constant dense<0xFF800000> : vector<8xf32>
    %59 = vector.multi_reduction <maximumf>, %58, %cst_24 [1] : vector<8x8xf32> to vector<8xf32>
    %60 = vector.shape_cast %59 : vector<8xf32> to vector<8x1xf32>
    %61 = vector.broadcast %60 : vector<8x1xf32> to vector<8x8xf32>
    %62 = arith.subf %58, %61 : vector<8x8xf32>
    %63 = math.exp %62 : vector<8x8xf32>
    %cst_25 = arith.constant dense<0.000000e+00> : vector<8xf32>
    %64 = vector.multi_reduction <add>, %63, %cst_25 [1] : vector<8x8xf32> to vector<8xf32>
    %65 = vector.shape_cast %64 : vector<8xf32> to vector<8x1xf32>
    %66 = vector.broadcast %65 : vector<8x1xf32> to vector<8x8xf32>
    %67 = arith.divf %63, %66 : vector<8x8xf32>
    %cst_26 = arith.constant dense<0.000000e+00> : vector<8x16xf32>
    %68 = tpu.matmul %67, %55, %cst_26 {dimension_numbers = #tpu.dot_dimension_numbers<[1], [0], [0], [1], [0, 0, 1, 1], [], []>, precision = #tpu.contract_precision<fp32>} : vector<8x8xf32>, vector<8x16xf32>, vector<8x16xf32> -> vector<8x16xf32>
    %69 = vector.extract_strided_slice %51 {offsets = [0, 0], sizes = [16, 32], strides = [1, 1]} : vector<32x32xf32> to vector<16x32xf32>
    %cst_27 = arith.constant dense<0.000000e+00> : vector<8x32xf32>
    %70 = tpu.matmul %68, %69, %cst_27 {dimension_numbers = #tpu.dot_dimension_numbers<[1], [0], [0], [1], [0, 0, 1, 1], [], []>, precision = #tpu.contract_precision<fp32>} : vector<8x16xf32>, vector<16x32xf32>, vector<8x32xf32> -> vector<8x32xf32>
    %71 = arith.addf %52, %70 : vector<8x32xf32>
    %72 = vector.extract_strided_slice %46 {offsets = [0, 16], sizes = [8, 16], strides = [1, 1]} : vector<8x32xf32> to vector<8x16xf32>
    %73 = vector.extract_strided_slice %49 {offsets = [0, 16], sizes = [8, 16], strides = [1, 1]} : vector<8x32xf32> to vector<8x16xf32>
    %74 = vector.extract_strided_slice %39 {offsets = [0, 16], sizes = [8, 16], strides = [1, 1]} : vector<8x32xf32> to vector<8x16xf32>
    %cst_28 = arith.constant dense<0.000000e+00> : vector<8x8xf32>
    %75 = tpu.matmul %72, %73, %cst_28 {dimension_numbers = #tpu.dot_dimension_numbers<[1], [1], [0], [0], [0, 0, 1, 0], [], []>, precision = #tpu.contract_precision<fp32>} : vector<8x16xf32>, vector<8x16xf32>, vector<8x8xf32> -> vector<8x8xf32>
    %76 = vector.broadcast %15 : vector<1x8xf32> to vector<8x8xf32>
    %77 = arith.addf %75, %76 : vector<8x8xf32>
    %cst_29 = arith.constant dense<0xFF800000> : vector<8xf32>
    %78 = vector.multi_reduction <maximumf>, %77, %cst_29 [1] : vector<8x8xf32> to vector<8xf32>
    %79 = vector.shape_cast %78 : vector<8xf32> to vector<8x1xf32>
    %80 = vector.broadcast %79 : vector<8x1xf32> to vector<8x8xf32>
    %81 = arith.subf %77, %80 : vector<8x8xf32>
    %82 = math.exp %81 : vector<8x8xf32>
    %cst_30 = arith.constant dense<0.000000e+00> : vector<8xf32>
    %83 = vector.multi_reduction <add>, %82, %cst_30 [1] : vector<8x8xf32> to vector<8xf32>
    %84 = vector.shape_cast %83 : vector<8xf32> to vector<8x1xf32>
    %85 = vector.broadcast %84 : vector<8x1xf32> to vector<8x8xf32>
    %86 = arith.divf %82, %85 : vector<8x8xf32>
    %cst_31 = arith.constant dense<0.000000e+00> : vector<8x16xf32>
    %87 = tpu.matmul %86, %74, %cst_31 {dimension_numbers = #tpu.dot_dimension_numbers<[1], [0], [0], [1], [0, 0, 1, 1], [], []>, precision = #tpu.contract_precision<fp32>} : vector<8x8xf32>, vector<8x16xf32>, vector<8x16xf32> -> vector<8x16xf32>
    %88 = vector.extract_strided_slice %51 {offsets = [16, 0], sizes = [16, 32], strides = [1, 1]} : vector<32x32xf32> to vector<16x32xf32>
    %cst_32 = arith.constant dense<0.000000e+00> : vector<8x32xf32>
    %89 = tpu.matmul %87, %88, %cst_32 {dimension_numbers = #tpu.dot_dimension_numbers<[1], [0], [0], [1], [0, 0, 1, 1], [], []>, precision = #tpu.contract_precision<fp32>} : vector<8x16xf32>, vector<16x32xf32>, vector<8x32xf32> -> vector<8x32xf32>
    %90 = arith.addf %71, %89 : vector<8x32xf32>
    %91 = vector.broadcast %18 : vector<1x32xf32> to vector<8x32xf32>
    %92 = arith.addf %90, %91 : vector<8x32xf32>
    %93 = arith.addf %27, %92 : vector<8x32xf32>
    %cst_33 = arith.constant dense<0.000000e+00> : vector<8xf32>
    %94 = vector.multi_reduction <add>, %93, %cst_33 [1] : vector<8x32xf32> to vector<8xf32>
    %95 = vector.shape_cast %94 : vector<8xf32> to vector<8x1xf32>
    %cst_34 = arith.constant 3.200000e+01 : f32
    %96 = vector.broadcast %cst_34 : f32 to vector<8x1xf32>
    %97 = arith.divf %95, %96 : vector<8x1xf32>
    %98 = arith.mulf %93, %93 : vector<8x32xf32>
    %cst_35 = arith.constant dense<0.000000e+00> : vector<8xf32>
    %99 = vector.multi_reduction <add>, %98, %cst_35 [1] : vector<8x32xf32> to vector<8xf32>
    %100 = vector.shape_cast %99 : vector<8xf32> to vector<8x1xf32>
    %cst_36 = arith.constant 3.200000e+01 : f32
    %101 = vector.broadcast %cst_36 : f32 to vector<8x1xf32>
    %102 = arith.divf %100, %101 : vector<8x1xf32>
    %103 = arith.mulf %97, %97 : vector<8x1xf32>
    %104 = arith.subf %102, %103 : vector<8x1xf32>
    %cst_37 = arith.constant 0.000000e+00 : f32
    %105 = vector.broadcast %cst_37 : f32 to vector<8x1xf32>
    %106 = arith.maximumf %104, %105 : vector<8x1xf32>
    %107 = vector.broadcast %97 : vector<8x1xf32> to vector<8x32xf32>
    %108 = arith.subf %93, %107 : vector<8x32xf32>
    %cst_38 = arith.constant 9.99999974E-5 : f32
    %109 = vector.broadcast %cst_38 : f32 to vector<8x1xf32>
    %110 = arith.addf %106, %109 : vector<8x1xf32>
    %111 = math.rsqrt %110 : vector<8x1xf32>
    %112 = vector.broadcast %111 : vector<8x1xf32> to vector<8x32xf32>
    %113 = arith.mulf %108, %112 : vector<8x32xf32>
    %114 = vector.broadcast %19 : vector<1x32xf32> to vector<8x32xf32>
    %115 = arith.mulf %113, %114 : vector<8x32xf32>
    %116 = vector.broadcast %20 : vector<1x32xf32> to vector<8x32xf32>
    %117 = arith.addf %115, %116 : vector<8x32xf32>
    %118 = vector.broadcast %9 : vector<8x1xf32> to vector<8x32xf32>
    %119 = arith.mulf %117, %118 : vector<8x32xf32>
    %cst_39 = arith.constant 0.000000e+00 : f32
    %120 = vector.broadcast %cst_39 : f32 to vector<8x64xf32>
    %cst_40 = arith.constant 0.000000e+00 : f32
    %121 = vector.broadcast %cst_40 : f32 to vector<1x32xf32>
    %122 = vector.extract_strided_slice %119 {offsets = [0, 0], sizes = [7, 32], strides = [1, 1]} : vector<8x32xf32> to vector<7x32xf32>
    %123 = tpu.concatenate %121, %122 in 0 : vector<1x32xf32>, vector<7x32xf32> -> vector<8x32xf32>
    %c0_41 = arith.constant 0 : index
    %c0_42 = arith.constant 0 : index
    %c0_43 = arith.constant 0 : index
    %124 = vector.load %arg9[%c0_41, %c0_42, %c0_43] : memref<1x96x64xf32, #tpu.memory_space<vmem>>, vector<1x32x64xf32>
    %125 = vector.shape_cast %124 : vector<1x32x64xf32> to vector<32x64xf32>
    %cst_44 = arith.constant dense<0.000000e+00> : vector<8x64xf32>
    %126 = tpu.matmul %123, %125, %cst_44 {dimension_numbers = #tpu.dot_dimension_numbers<[1], [0], [0], [1], [0, 0, 1, 1], [], []>, precision = #tpu.contract_precision<fp32>} : vector<8x32xf32>, vector<32x64xf32>, vector<8x64xf32> -> vector<8x64xf32>
    %127 = arith.addf %120, %126 : vector<8x64xf32>
    %c0_45 = arith.constant 0 : index
    %c32 = arith.constant 32 : index
    %c0_46 = arith.constant 0 : index
    %128 = vector.load %arg9[%c0_45, %c32, %c0_46] : memref<1x96x64xf32, #tpu.memory_space<vmem>>, vector<1x32x64xf32>
    %129 = vector.shape_cast %128 : vector<1x32x64xf32> to vector<32x64xf32>
    %cst_47 = arith.constant dense<0.000000e+00> : vector<8x64xf32>
    %130 = tpu.matmul %119, %129, %cst_47 {dimension_numbers = #tpu.dot_dimension_numbers<[1], [0], [0], [1], [0, 0, 1, 1], [], []>, precision = #tpu.contract_precision<fp32>} : vector<8x32xf32>, vector<32x64xf32>, vector<8x64xf32> -> vector<8x64xf32>
    %131 = arith.addf %127, %130 : vector<8x64xf32>
    %cst_48 = arith.constant 0.000000e+00 : f32
    %132 = vector.broadcast %cst_48 : f32 to vector<1x32xf32>
    %133 = vector.extract_strided_slice %119 {offsets = [1, 0], sizes = [7, 32], strides = [1, 1]} : vector<8x32xf32> to vector<7x32xf32>
    %134 = tpu.concatenate %133, %132 in 0 : vector<7x32xf32>, vector<1x32xf32> -> vector<8x32xf32>
    %c0_49 = arith.constant 0 : index
    %c64 = arith.constant 64 : index
    %c0_50 = arith.constant 0 : index
    %135 = vector.load %arg9[%c0_49, %c64, %c0_50] : memref<1x96x64xf32, #tpu.memory_space<vmem>>, vector<1x32x64xf32>
    %136 = vector.shape_cast %135 : vector<1x32x64xf32> to vector<32x64xf32>
    %cst_51 = arith.constant dense<0.000000e+00> : vector<8x64xf32>
    %137 = tpu.matmul %134, %136, %cst_51 {dimension_numbers = #tpu.dot_dimension_numbers<[1], [0], [0], [1], [0, 0, 1, 1], [], []>, precision = #tpu.contract_precision<fp32>} : vector<8x32xf32>, vector<32x64xf32>, vector<8x64xf32> -> vector<8x64xf32>
    %138 = arith.addf %131, %137 : vector<8x64xf32>
    %c0_52 = arith.constant 0 : index
    %c0_53 = arith.constant 0 : index
    %c0_54 = arith.constant 0 : index
    %139 = vector.load %arg10[%c0_52, %c0_53, %c0_54] : memref<1x1x64xf32, #tpu.memory_space<vmem>>, vector<1x1x64xf32>
    %140 = vector.shape_cast %139 : vector<1x1x64xf32> to vector<1x64xf32>
    %141 = vector.broadcast %140 : vector<1x64xf32> to vector<8x64xf32>
    %142 = arith.addf %138, %141 : vector<8x64xf32>
    %cst_55 = arith.constant 0.000000e+00 : f32
    %143 = vector.broadcast %cst_55 : f32 to vector<8x64xf32>
    %144 = arith.maximumf %142, %143 : vector<8x64xf32>
    %145 = vector.broadcast %9 : vector<8x1xf32> to vector<8x64xf32>
    %146 = arith.mulf %144, %145 : vector<8x64xf32>
    %cst_56 = arith.constant 0.000000e+00 : f32
    %147 = vector.broadcast %cst_56 : f32 to vector<8x32xf32>
    %cst_57 = arith.constant 0.000000e+00 : f32
    %148 = vector.broadcast %cst_57 : f32 to vector<1x64xf32>
    %149 = vector.extract_strided_slice %146 {offsets = [0, 0], sizes = [7, 64], strides = [1, 1]} : vector<8x64xf32> to vector<7x64xf32>
    %150 = tpu.concatenate %148, %149 in 0 : vector<1x64xf32>, vector<7x64xf32> -> vector<8x64xf32>
    %c0_58 = arith.constant 0 : index
    %c0_59 = arith.constant 0 : index
    %c0_60 = arith.constant 0 : index
    %151 = vector.load %arg11[%c0_58, %c0_59, %c0_60] : memref<1x192x32xf32, #tpu.memory_space<vmem>>, vector<1x64x32xf32>
    %152 = vector.shape_cast %151 : vector<1x64x32xf32> to vector<64x32xf32>
    %cst_61 = arith.constant dense<0.000000e+00> : vector<8x32xf32>
    %153 = tpu.matmul %150, %152, %cst_61 {dimension_numbers = #tpu.dot_dimension_numbers<[1], [0], [0], [1], [0, 0, 1, 1], [], []>, precision = #tpu.contract_precision<fp32>} : vector<8x64xf32>, vector<64x32xf32>, vector<8x32xf32> -> vector<8x32xf32>
    %154 = arith.addf %147, %153 : vector<8x32xf32>
    %c0_62 = arith.constant 0 : index
    %c64_63 = arith.constant 64 : index
    %c0_64 = arith.constant 0 : index
    %155 = vector.load %arg11[%c0_62, %c64_63, %c0_64] : memref<1x192x32xf32, #tpu.memory_space<vmem>>, vector<1x64x32xf32>
    %156 = vector.shape_cast %155 : vector<1x64x32xf32> to vector<64x32xf32>
    %cst_65 = arith.constant dense<0.000000e+00> : vector<8x32xf32>
    %157 = tpu.matmul %146, %156, %cst_65 {dimension_numbers = #tpu.dot_dimension_numbers<[1], [0], [0], [1], [0, 0, 1, 1], [], []>, precision = #tpu.contract_precision<fp32>} : vector<8x64xf32>, vector<64x32xf32>, vector<8x32xf32> -> vector<8x32xf32>
    %158 = arith.addf %154, %157 : vector<8x32xf32>
    %cst_66 = arith.constant 0.000000e+00 : f32
    %159 = vector.broadcast %cst_66 : f32 to vector<1x64xf32>
    %160 = vector.extract_strided_slice %146 {offsets = [1, 0], sizes = [7, 64], strides = [1, 1]} : vector<8x64xf32> to vector<7x64xf32>
    %161 = tpu.concatenate %160, %159 in 0 : vector<7x64xf32>, vector<1x64xf32> -> vector<8x64xf32>
    %c0_67 = arith.constant 0 : index
    %c128 = arith.constant 128 : index
    %c0_68 = arith.constant 0 : index
    %162 = vector.load %arg11[%c0_67, %c128, %c0_68] : memref<1x192x32xf32, #tpu.memory_space<vmem>>, vector<1x64x32xf32>
    %163 = vector.shape_cast %162 : vector<1x64x32xf32> to vector<64x32xf32>
    %cst_69 = arith.constant dense<0.000000e+00> : vector<8x32xf32>
    %164 = tpu.matmul %161, %163, %cst_69 {dimension_numbers = #tpu.dot_dimension_numbers<[1], [0], [0], [1], [0, 0, 1, 1], [], []>, precision = #tpu.contract_precision<fp32>} : vector<8x64xf32>, vector<64x32xf32>, vector<8x32xf32> -> vector<8x32xf32>
    %165 = arith.addf %158, %164 : vector<8x32xf32>
    %166 = vector.broadcast %21 : vector<1x32xf32> to vector<8x32xf32>
    %167 = arith.addf %165, %166 : vector<8x32xf32>
    %168 = vector.broadcast %9 : vector<8x1xf32> to vector<8x32xf32>
    %169 = arith.mulf %167, %168 : vector<8x32xf32>
    %170 = arith.addf %117, %169 : vector<8x32xf32>
    %cst_70 = arith.constant dense<0.000000e+00> : vector<8xf32>
    %171 = vector.multi_reduction <add>, %170, %cst_70 [1] : vector<8x32xf32> to vector<8xf32>
    %172 = vector.shape_cast %171 : vector<8xf32> to vector<8x1xf32>
    %cst_71 = arith.constant 3.200000e+01 : f32
    %173 = vector.broadcast %cst_71 : f32 to vector<8x1xf32>
    %174 = arith.divf %172, %173 : vector<8x1xf32>
    %175 = arith.mulf %170, %170 : vector<8x32xf32>
    %cst_72 = arith.constant dense<0.000000e+00> : vector<8xf32>
    %176 = vector.multi_reduction <add>, %175, %cst_72 [1] : vector<8x32xf32> to vector<8xf32>
    %177 = vector.shape_cast %176 : vector<8xf32> to vector<8x1xf32>
    %cst_73 = arith.constant 3.200000e+01 : f32
    %178 = vector.broadcast %cst_73 : f32 to vector<8x1xf32>
    %179 = arith.divf %177, %178 : vector<8x1xf32>
    %180 = arith.mulf %174, %174 : vector<8x1xf32>
    %181 = arith.subf %179, %180 : vector<8x1xf32>
    %cst_74 = arith.constant 0.000000e+00 : f32
    %182 = vector.broadcast %cst_74 : f32 to vector<8x1xf32>
    %183 = arith.maximumf %181, %182 : vector<8x1xf32>
    %184 = vector.broadcast %174 : vector<8x1xf32> to vector<8x32xf32>
    %185 = arith.subf %170, %184 : vector<8x32xf32>
    %cst_75 = arith.constant 9.99999974E-5 : f32
    %186 = vector.broadcast %cst_75 : f32 to vector<8x1xf32>
    %187 = arith.addf %183, %186 : vector<8x1xf32>
    %188 = math.rsqrt %187 : vector<8x1xf32>
    %189 = vector.broadcast %188 : vector<8x1xf32> to vector<8x32xf32>
    %190 = arith.mulf %185, %189 : vector<8x32xf32>
    %191 = vector.broadcast %22 : vector<1x32xf32> to vector<8x32xf32>
    %192 = arith.mulf %190, %191 : vector<8x32xf32>
    %193 = vector.broadcast %23 : vector<1x32xf32> to vector<8x32xf32>
    %194 = arith.addf %192, %193 : vector<8x32xf32>
    %c0_76 = arith.constant 0 : index
    %c0_77 = arith.constant 0 : index
    %c0_78 = arith.constant 0 : index
    %195 = vector.load %arg12[%c0_76, %c0_77, %c0_78] : memref<1x8x32xf32, #tpu.memory_space<vmem>>, vector<1x8x32xf32>
    %196 = vector.shape_cast %195 : vector<1x8x32xf32> to vector<8x32xf32>
    %197 = vector.shape_cast %194 : vector<8x32xf32> to vector<1x8x32xf32>
    tpu.vector_store %arg12[%c0_76, %c0_77, %c0_78], %197 {strides = array<i32>} : memref<1x8x32xf32, #tpu.memory_space<vmem>>, vector<1x8x32xf32>,
    return
  }
  func.func @transform_0(%arg0: i32, %arg1: i32, %arg2: memref<2xi32, #tpu.memory_space<smem>>) -> (i32, i32, i32) {
    %c0_i32 = arith.constant 0 : i32
    %c0_i32_0 = arith.constant 0 : i32
    %c0_i32_1 = arith.constant 0 : i32
    return %arg0, %c0_i32, %c0_i32_0 : i32, i32, i32
  }
  func.func @transform_1(%arg0: i32, %arg1: i32, %arg2: memref<2xi32, #tpu.memory_space<smem>>) -> (i32, i32, i32) {
    %c0_i32 = arith.constant 0 : i32
    %c0_i32_0 = arith.constant 0 : i32
    %c0_i32_1 = arith.constant 0 : i32
    %c0_i32_2 = arith.constant 0 : i32
    return %c0_i32, %c0_i32_0, %c0_i32_1 : i32, i32, i32
  }
  func.func @transform_2(%arg0: i32, %arg1: i32, %arg2: memref<2xi32, #tpu.memory_space<smem>>) -> (i32, i32, i32) {
    %c0_i32 = arith.constant 0 : i32
    %c0_i32_0 = arith.constant 0 : i32
    %c0_i32_1 = arith.constant 0 : i32
    return %arg1, %c0_i32, %c0_i32_0 : i32, i32, i32
  }
  func.func @transform_3(%arg0: i32, %arg1: i32, %arg2: memref<2xi32, #tpu.memory_space<smem>>) -> (i32, i32, i32) {
    %c0_i32 = arith.constant 0 : i32
    %c0_i32_0 = arith.constant 0 : i32
    %c0_i32_1 = arith.constant 0 : i32
    return %arg1, %c0_i32, %c0_i32_0 : i32, i32, i32
  }
  func.func @transform_4(%arg0: i32, %arg1: i32, %arg2: memref<2xi32, #tpu.memory_space<smem>>) -> (i32, i32, i32) {
    %c0_i32 = arith.constant 0 : i32
    %c0_i32_0 = arith.constant 0 : i32
    %c0_i32_1 = arith.constant 0 : i32
    return %arg1, %c0_i32, %c0_i32_0 : i32, i32, i32
  }
  func.func @transform_5(%arg0: i32, %arg1: i32, %arg2: memref<2xi32, #tpu.memory_space<smem>>) -> (i32, i32, i32) {
    %c0_i32 = arith.constant 0 : i32
    %c0_i32_0 = arith.constant 0 : i32
    %c0_i32_1 = arith.constant 0 : i32
    return %arg1, %c0_i32, %c0_i32_0 : i32, i32, i32
  }
  func.func @transform_6(%arg0: i32, %arg1: i32, %arg2: memref<2xi32, #tpu.memory_space<smem>>) -> (i32, i32, i32) {
    %c0_i32 = arith.constant 0 : i32
    %c0_i32_0 = arith.constant 0 : i32
    %c0_i32_1 = arith.constant 0 : i32
    return %arg1, %c0_i32, %c0_i32_0 : i32, i32, i32
  }
  func.func @transform_7(%arg0: i32, %arg1: i32, %arg2: memref<2xi32, #tpu.memory_space<smem>>) -> (i32, i32, i32) {
    %c0_i32 = arith.constant 0 : i32
    %c0_i32_0 = arith.constant 0 : i32
    %c0_i32_1 = arith.constant 0 : i32
    return %arg1, %c0_i32, %c0_i32_0 : i32, i32, i32
  }
  func.func @transform_8(%arg0: i32, %arg1: i32, %arg2: memref<2xi32, #tpu.memory_space<smem>>) -> (i32, i32, i32) {
    %c0_i32 = arith.constant 0 : i32
    %c0_i32_0 = arith.constant 0 : i32
    %c0_i32_1 = arith.constant 0 : i32
    return %arg1, %c0_i32, %c0_i32_0 : i32, i32, i32
  }
  func.func @transform_9(%arg0: i32, %arg1: i32, %arg2: memref<2xi32, #tpu.memory_space<smem>>) -> (i32, i32, i32) {
    %c0_i32 = arith.constant 0 : i32
    %c0_i32_0 = arith.constant 0 : i32
    %c0_i32_1 = arith.constant 0 : i32
    return %arg0, %c0_i32, %c0_i32_0 : i32, i32, i32
  }
}

</mosaic_0001>

<bundles_post_ra>
// kernel: tpu_custom_call.1
= control target key start
LH: loop header
LB: loop body
LE: loop exit
PB: predicated region body
PF: predicated region fallthrough
CT: control target
= control target key end

     0   :  { %s10153_s0 = inlined_call_operand.vmem [shape: s32[2], index: 0, kind: input, shape index: {}]   ;;  %s10154_s1 = inlined_call_operand.vmem [shape: f32[2,8,32], index: 1, kind: input, shape index: {}]   ;;  %s10155_s2 = inlined_call_operand.vmem [shape: f32[2,8,32], index: 2, kind: input, shape index: {}]   ;;  %s10156_s3 = inlined_call_operand.vmem [shape: f32[2,32,160], index: 3, kind: input, shape index: {}]   ;;  %s10157_s4 = inlined_call_operand.vmem [shape: f32[2,1,160], index: 4, kind: input, shape index: {}]   ;;  %s10158_s5 = inlined_call_operand.vmem [shape: f32[2,32,32], index: 5, kind: input, shape index: {}]   ;;  %s10159_s6 = inlined_call_operand.vmem [shape: f32[2,8,32], index: 6, kind: input, shape index: {}]   ;;  %s10160_s7 = inlined_call_operand.vmem [shape: f32[2,96,64], index: 7, kind: input, shape index: {}]   ;;  %s10161_s8 = inlined_call_operand.vmem [shape: f32[2,1,64], index: 8, kind: input, shape index: {}]   ;;  %s10162_s9 = inlined_call_operand.vmem [shape: f32[2,192,32], index: 9, kind: input, shape index: {}]   ;;  %s10163_s10 = inlined_call_operand.hbm [shape: f32[2,8,32], index: 10, kind: output, shape index: {}]  }
   0x1   :  { %10176 = sst [smem:[#allocation18_spill]] %s10154_s1  ;;  %s15_s15 = sshll.u32 %s10153_s0, 4  ;;  %s16_s15 = int_to_ptr.vmem [resolvable:$true] %s15_s15 }
   0x2   :  { %10177 = sst [smem:[#allocation19_spill]] %s10156_s3  ;;  %s8433_s16 = scalar_lea.vmem %s16_s15, 16 }
   0x3   :  { %10178 = sst [smem:[#allocation20_spill]] %s10157_s4  ;;  %p8434_p0 = scmp.ne.s32.totalorder %s16_s15, %s8433_s16 }
   0x4   :  { %10179 = sst [smem:[#allocation21_spill]] %s10158_s5  ;;  %p8438_p1 = scmp.lt.s32.totalorder %s16_s15, %s16_s15 }
   0x5   :  { %10180 = sst [smem:[#allocation22_spill]] %s10163_s10  ;;  %p8439_p2 = scmp.lt.s32.totalorder %s8433_s16, %s8433_s16 }
   0x7   :  { %p8440_p3 = por %p8439_p2, %p8438_p1 }
   0x9   :  { %p8441_p4 = pnand %p8440_p3, %p8434_p0 }
   0xb   :  { %8444 = shalt.err (!%p8441_p4)  }
   0xc   :  { %s8541_s17 = smov [#allocation3]  }
   0xd   :  { %18 = dma.vmem_to_smem %s16_s15, 16, %s8541_s17, [#allocation2] }
   0xe   :  { %8503 = dma.done.wait [#allocation2], 16 }
   0xf   :  { %8504 = vsyncadd [#allocation2], 4294967280 }
  0x10   :  { %20 = sfence }
  0x11   :  { %21 = vsyncpa [#allocation5], 0 }
  0x12   :  { %23 = vsyncpa [#allocation5 + $0x1], 0  ;;  %s8609_s18 = smov 0   ;;  %s8611_s19 = smov 0  }
  0x13   :  { %s8613_s0 = smov 0   ;;  %s8615_s20 = smov 0  }
  0x14   :  { %s8617_s21 = smov 0   ;;  %s8619_s22 = smov 0  }
  0x15   :  { %s8621_s23 = smov 0   ;;  %s8623_s24 = smov 0  }
  0x16 LB: > { %10181 = sst [smem:[#allocation8_spill]] %s8511_s18  ;;  %s7233_s25 = sadd.s32 4294967295, %s8539_s24   ;;  %s8539_s24 = sphi %s8623_s24, %s29_s24   ;;  %s8535_s23 = sphi %s8621_s23, %s10208_s23   ;;  %s8531_s22 = sphi %s8619_s22, %s10207_s22   ;;  %s8527_s21 = sphi %s8617_s21, %s10206_s21   ;;  %s8523_s20 = sphi %s8615_s20, %s10205_s20   ;;  %s8519_s0 = sphi %s8613_s0, %s10204_s0   ;;  %s8515_s19 = sphi %s8611_s19, %s10210_s19   ;;  %s8511_s18 = sphi %s8609_s18, %s10209_s18  }
  0x17   : > { %10182 = sst [smem:[#allocation9_spill]] %s8519_s0  ;;  %s7234_s26 = sadd.s32 4294967294, %s8539_s24  }
  0x18   : > { %10183 = sst [smem:[#allocation10_spill]] %s8531_s22  ;;  %s38_s27 = sadd.s32 1, %s8531_s22 }
  0x19   : > { %10184 = sst [smem:[#allocation11_spill]] %s8535_s23  ;;  %p39_p5 = scmp.ge.s32.totalorder %s38_s27, 2 }
  0x1a   : > { %10185 = sst [smem:[#allocation12_spill]] %s8539_s24  ;;  %s41_s28 = sadd.s32 1, %s8535_s23 }
  0x1b   : > { %p287_p6 = scmp.ne.s32.totalorder %s8519_s0, %s8515_s19  ;;  %p288_p7 = scmp.eq.s32.totalorder %s7233_s25, 3 }
  0x1c   : > { %s10212_s27 = smov (%p39_p5, %s38_s27), 0  ;;  %s10214_s28 = smov (!%p39_p5, %s41_s28), %s8535_s23 }
  0x1d   : > { %10186 = sst [smem:[#allocation13_spill]] %s10212_s27  ;;  %p8658_p8 = por %p288_p7, %p287_p6 }
  0x1e   : > { %p293_p9 = scmp.ne.s32.totalorder %s8515_s19, %s8511_s18  ;;  %p43_p10 = scmp.ge.s32.totalorder %s10214_s28, 2 }
  0x1f   : > { %s10187_s29 = scalar_select %p8658_p8, 1, 0 }
  0x20   : > { %p294_p11 = scmp.eq.s32.totalorder %s7234_s26, 3  ;;  %p7237_p12 = scmp.ge.s32.totalorder %s8539_s24, 1 }
  0x21   : > { %10188 = sst [smem:[#allocation14_spill]] %s10187_s29  ;;  %p374_p13 = scmp.lt.s32.totalorder %s8539_s24, 5 }
  0x22   : > { %s10216_s28 = smov (%p43_p10, %s10214_s28), 0  ;;  %p8668_p0 = por %p294_p11, %p293_p9 }
  0x23   : > { %10189 = sst [smem:[#allocation15_spill]] %s10216_s28  ;;  %p375_p1 = pnand %p7237_p12, %p374_p13 }
  0x24   : > { %s10190_s30 = scalar_select %p8668_p0, 1, 0 }
  0x25   : > { %s274_s11 = ssub.s32 %s8535_s23, %s10216_s28  ;;  %s277_s12 = sadd.s32 1, %s8519_s0 }
  0x26   : > { %10191 = sst [smem:[#allocation16_spill]] %s10190_s30  ;;  %p275_p2 = scmp.eq.s32.totalorder %s274_s11, 0 }
  0x27   : > { %378 = sbr.rel (%p375_p1) target bundleno = 3068 (0xbfc), region = 56  ;;  %s10165_s14 = sand.u32 (!%p375_p1), 1, %s8515_s19  }
  0x28   : > { %s8676_s13 = scalar_select %p275_p2, %s8519_s0, %s277_s12  }
  0x29   : > { %p440_p3 = scmp.lt.s32.totalorder (!%p375_p1), %s8527_s21, 1  ;;  %s7238_s15 = sshll.u32 (!%p375_p1), %s10165_s14, 3 }
  0x2a   : > { %10192 = sst [smem:[#allocation17_spill]] %s8676_s13  ;;  %p444_p4 = scmp.lt.s32.totalorder (!%p375_p1), %s8523_s20, 1 }
  0x2b   : > { %s8684_s16 = sld [smem:[#allocation3 + %s8527_s21]] (!%p375_p1)  ;;  %p7248_p5 = scmp.ne.s32.totalorder (!%p375_p1), %s8523_s20, 0 }
  0x2c   : > { %s441_s17 = scalar_select %p440_p3, %s8527_s21, 1 }
  0x2d   : > { %s8688_s25 = scalar_select %p444_p4, %s8523_s20, 1 }
  0x2e   : > { %s7239_s26 = sshll.u32 %s441_s17, 3  ;;  %s10193_s1 = sld [smem:[#allocation18_spill]] }
  0x2f   : > { %s7256_s27 = sshll.u32 %s8688_s25, 6  ;;  %s10194_s3 = sld [smem:[#allocation19_spill]] }
  0x30   : > { %s7242_s13 = sshll.u32 %s8688_s25, 1  ;;  %s10195_s4 = sld [smem:[#allocation20_spill]] }
  0x31   : > { %s7257_s24 = sshll.u32 %s8688_s25, 5  ;;  %s10196_s5 = sld [smem:[#allocation21_spill]] }
  0x32   : > { %s7245_s11 = sshll.u32 %s8688_s25, 3  ;;  %s8338_s23 = smul.u32 96, %s8688_s25 }
  0x33   : > { %s8339_s0 = smul.u32 192, %s8688_s25 }
  0x34   : > { %s443_s28 = scalar_lea.vmem %s10193_s1, %s7239_s26  ;;  %s8715_s1 = scalar_lea.vmem %s10159_s6, %s7245_s11 }
  0x35   : > { %s8697_s22 = scalar_lea.vmem %s10194_s3, %s7256_s27  ;;  %s469_s3 = scalar_lea.vmem %s10161_s8, %s8688_s25 }
  0x36   : > { %s8703_s18 = scalar_lea.vmem %s10195_s4, %s7242_s13  ;;  %s8726_s4 = scalar_lea.vmem %s10160_s7, %s8338_s23 }
  0x37   : > { %s8709_s17 = scalar_lea.vmem %s10196_s5, %s7257_s24  ;;  %s8731_s29 = scalar_lea.vmem %s10162_s9, %s8339_s0 }
  0x38   : > { %s8733_s5 = scalar_lea.vmem [#allocation4], %s7238_s15  ;;  %479 = sbr.rel (%p7248_p5) target bundleno = 63 (0x3f), region = 60 }
  0x3d   : > { %v480_v0 = vld [vmem:[%s443_s28] sm:$0xff]  ;;  %vm481_vm0 = vcmask 261120  }
  0x3e   : > { %482 = vst.msk [vmem:[%s8733_s5] sm:$0xff] %vm481_vm0, %v480_v0 }
  0x3f PF: > { %v503_v1 = vld [vmem:[%s8697_s22 + $0x38] sm:$0xff]  ;;  %v502_v2 = vld [vmem:[%s8697_s22 + $0x30] sm:$0xff]  ;;  %v501_v3 = vld [vmem:[%s8697_s22 + $0x28] sm:$0xff]  ;;  %v483_v4 = vlaneseq  ;;  %v8542_v11 = vmov 0.0   ;;  %v485_v12 = vstv %s8684_s16  ;;  %s8544_s15 = smov 32   ;;  %s8545_s12 = smov 64  }
  0x40   : > { %v8740_v5 = vand.u32 4294901760, %v503_v1  ;;  %v8742_v6 = vand.u32 4294901760, %v502_v2  ;;  %v8744_v7 = vand.u32 4294901760, %v501_v3  ;;  %v500_v8 = vld [vmem:[%s8697_s22 + $0x20] sm:$0xff]  ;;  %v499_v9 = vld [vmem:[%s8697_s22 + $0x18] sm:$0xff]  ;;  %v498_v10 = vld [vmem:[%s8697_s22 + $0x10] sm:$0xff]  ;;  %592 = vmatprep.mubr.f32.mxu0 %v8542_v11  ;;  %708 = vmatprep.mubr.f32.mxu1 %v8542_v11 }
  0x41   : > { %v8752_v13 = vand.u32 4294901760, %v500_v8  ;;  %v8754_v14 = vand.u32 4294901760, %v499_v9  ;;  %v8756_v15 = vand.u32 4294901760, %v498_v10  ;;  %v497_v16 = vld [vmem:[%s8697_s22 + $0x8] sm:$0xff]  ;;  %v496_v17 = vld [vmem:[%s8697_s22] sm:$0xff]  ;;  %v8761_v18 = vshrl.u32 %v483_v4, 7 }
  0x42   : > { %545 = vmatprep.subr.mxu0 %v8740_v5  ;;  %v8765_v19 = vsub.f32 %v503_v1, %v8740_v5  ;;  %v8768_v20 = vsub.f32 %v502_v2, %v8742_v6  ;;  %v8771_v21 = vsub.f32 %v501_v3, %v8744_v7  ;;  %v8773_v22 = vand.u32 4294901760, %v497_v16  ;;  %v7250_v23 = vld [vmem:[%s10155_s2 + $0x8] sm:$0xff]  ;;  %s8543_s22 = smov 96   ;;  %v8801_v32 = vld [vmem:[%s10155_s2] sm:$0xff]  ;;  %s8549_s16 = smov 112  }
  0x43   : > { %547 = vmatpush1.msra.mxu0 %v8742_v6  ;;  %v8780_v24 = vsub.f32 %v500_v8, %v8752_v13  ;;  %v8783_v25 = vsub.f32 %v499_v9, %v8754_v14  ;;  %v8786_v26 = vsub.f32 %v498_v10, %v8756_v15  ;;  %v8788_v27 = vand.u32 4294901760, %v496_v17  ;;  %1082 = vrot.lane.b32.xlu0 %v7250_v23, %s8543_s22  ;;  %v504_v2 = vld [vmem:[%s8703_s18] sm:$0x3]  ;;  %s8548_s18 = smov 48   ;;  %s7082_s25 = sshll.u32 %s8733_s5, 4  ;;  %s7083_s25 = int_to_ptr.vmem [resolvable:$true] %s7082_s25 }
  0x44   : > { %v630_v28 = vand.u32 4294901760, %v8765_v19  ;;  %549 = vmatprep.subr.mxu0 %v8744_v7  ;;  %v636_v29 = vand.u32 4294901760, %v8768_v20  ;;  %v642_v30 = vand.u32 4294901760, %v8771_v21  ;;  %v8796_v31 = vsub.f32 %v497_v16, %v8773_v22  ;;  %1068 = vrot.lane.b32.xlu1 %v7250_v23, %s8544_s15  ;;  %s10198_s14 = sld [smem:[#allocation22_spill]]  ;;  %s10199_s30 = sand.u32 1, %s8515_s19  }
  0x45   : > { %551 = vmatpush1.msra.mxu0 %v8752_v13  ;;  %v648_v33 = vand.u32 4294901760, %v8780_v24  ;;  %v654_v34 = vand.u32 4294901760, %v8783_v25  ;;  %v660_v35 = vand.u32 4294901760, %v8786_v26  ;;  %v8808_v36 = vsub.f32 %v496_v17, %v8788_v27  ;;  %v494_v51 = vld [vmem:[%s8733_s5] sm:$0xff]  ;;  %s7069_s13 = scalar_lea.sflag [#allocation5], %s10199_s30  ;;  %s8445_s10 = scalar_lea.vmem %s7083_s25, 128 }
  0x46   : > { %v631_v37 = vsub.f32 %v8765_v19, %v630_v28  ;;  %v637_v38 = vsub.f32 %v8768_v20, %v636_v29  ;;  %v643_v39 = vsub.f32 %v8771_v21, %v642_v30  ;;  %553 = vmatprep.subr.mxu0 %v8754_v14  ;;  %v666_v40 = vand.u32 4294901760, %v8796_v31  ;;  %p8446_p6 = scmp.ne.s32.totalorder %s7083_s25, %s8445_s10  ;;  %s8550_s24 = smov [#allocation4]  }
  0x47   : > { %v649_v41 = vsub.f32 %v8780_v24, %v648_v33  ;;  %555 = vmatpush1.msra.mxu0 %v8756_v15  ;;  %v655_v42 = vsub.f32 %v8783_v25, %v654_v34  ;;  %v661_v43 = vsub.f32 %v8786_v26, %v660_v35  ;;  %v672_v44 = vand.u32 4294901760, %v8808_v36  ;;  %1078 = vrot.lane.b32.xlu0 %v8801_v32, %s8545_s12 }
  0x48   : > { %v632_v45 = vand.u32 4294901760, %v631_v37  ;;  %v638_v46 = vand.u32 4294901760, %v637_v38  ;;  %v644_v47 = vand.u32 4294901760, %v643_v39  ;;  %557 = vmatprep.subr.mxu0 %v8773_v22  ;;  %v667_v48 = vsub.f32 %v8796_v31, %v666_v40  ;;  %p8447_p7 = pnand %p8446_p6, %p8658_p8 }
  0x49   : > { %v650_v49 = vand.u32 4294901760, %v649_v41  ;;  %559 = vmatpush1.msra.mxu0 %v8788_v27  ;;  %v673_v50 = vsub.f32 %v8808_v36, %v672_v44  ;;  %v656_v52 = vand.u32 4294901760, %v655_v42  ;;  %vm486_vm1 = vcmp.lt.s32.totalorder %v8761_v18, %v485_v12 }
  0x4a   : > { %633 = vmatprep.subr.mxu1 %v632_v45  ;;  %742 = vmatprep.subr.mxu0 %v8765_v19  ;;  %v662_v53 = vand.u32 4294901760, %v661_v43  ;;  %v8848_v54 = vsel %vm486_vm1, 1.0, %v8542_v11  ;;  %vm516_vm2 = vcmask 261120   ;;  %v668_v55 = vand.u32 4294901760, %v667_v48  ;;  %p8448_p9 = pneg %p8447_p7 }
  0x4b   : > { %639 = vmatpush1.msra.mxu1 %v638_v46  ;;  %v8851_v56 = vmul.f32 %v8848_v54, %v494_v51  ;;  %v674_v57 = vand.u32 4294901760, %v673_v50  ;;  %v512_v0 = vsub.s32 1, %v8761_v18  ;;  %v508_v1 = vsub.s32 0, %v8761_v18 }
  0x4c   : > { %645 = vmatprep.subr.mxu1 %v644_v47  ;;  %vm8546_vm3 = vmmov 0   ;;  %vm1098_vm4 = vcmask 130048   ;;  %vm1550_vm6 = vcmask 64512   ;;  %vm3890_vm7 = vcmask 1040384  }
  0x4d   : > { %651 = vmatpush1.msra.mxu1 %v650_v49  ;;  %v518_v58 = vsel %vm516_vm2, %v8851_v56, 0  ;;  %v513_v3 = vrot.slane %v504_v2, %v512_v0  ;;  %vm4877_vm8 = vcmask 1046528   ;;  %vm5402_vm9 = vcmask 523264  }
  0x4e   : > { %657 = vmatprep.subr.mxu1 %v656_v52  ;;  %v593_v59 = vand.u32 4294901760, %v518_v58 }
  0x4f   : > { %663 = vmatpush1.msra.mxu1 %v662_v53 }
  0x50   : > { %669 = vmatprep.subr.mxu1 %v668_v55  ;;  %v594_v60 = vsub.f32 %v518_v58, %v593_v59 }
  0x51   : > { %675 = vmatpush1.msra.mxu1 %v674_v57 }
  0x52   : > { %710 = vmatmul.mubr.f32.vlgmr.msra.gmra.mxu1 %v593_v59  ;;  %830 = vmatprep.subr.mxu1 %v8740_v5  ;;  %v595_v61 = vand.u32 4294901760, %v594_v60 }
  0x53   : > { %832 = vmatpush1.msra.mxu1 %v8742_v6  ;;  %877 = vmatprep.mubr.f32.mxu1 %v8542_v11 }
  0x54   : > { %834 = vmatprep.subr.mxu1 %v8744_v7  ;;  %v596_v62 = vsub.f32 %v594_v60, %v595_v61 }
  0x55   : > { %836 = vmatpush1.msra.mxu1 %v8752_v13 }
  0x56   : > { %838 = vmatprep.subr.mxu1 %v8754_v14  ;;  %v597_v63 = vand.u32 4294901760, %v596_v62 }
  0x57   : > { %840 = vmatpush1.msra.mxu1 %v8756_v15 }
  0x58   : > { %842 = vmatprep.subr.mxu1 %v8773_v22  ;;  %598 = vmatmul.mubr.f32.vlgmr.msra.gmra.mxu0 %v597_v63 }
  0x59   : > { %844 = vmatpush1.msra.mxu1 %v8788_v27  ;;  %745 = vmatpush1.msra.mxu0 %v8768_v20 }
  0x5a   : > { %796 = vmatprep.mubr.f32.mxu0 %v8542_v11  ;;  %748 = vmatprep.subr.mxu0 %v8771_v21 }
  0x5b   : > { %881 = vmatmul.mubr.f32.vlgmr.msra.gmra.mxu1 %v595_v61  ;;  %751 = vmatpush1.msra.mxu0 %v8780_v24 }
  0x5c   : > { %1008 = vmatprep.subr.mxu1 %v8740_v5  ;;  %754 = vmatprep.subr.mxu0 %v8783_v25 }
  0x5d   : > { %1010 = vmatpush1.msra.mxu1 %v8742_v6  ;;  %757 = vmatpush1.msra.mxu0 %v8786_v26 }
  0x5e   : > { %1012 = vmatprep.subr.mxu1 %v8744_v7  ;;  %760 = vmatprep.subr.mxu0 %v8796_v31  ;;  %v509_v7 = vrot.slane %v504_v2, %v508_v1  ;;  %v490_v2 = vand.u32 127, %v483_v4 }
  0x5f   : > { %1014 = vmatpush1.msra.mxu1 %v8752_v13  ;;  %763 = vmatpush1.msra.mxu0 %v8808_v36 }
  0x60   : > { %1016 = vmatprep.subr.mxu1 %v8754_v14  ;;  %799 = vmatmul.mubr.f32.vlgmr.msra.gmra.mxu0 %v594_v60  ;;  %vm491_vm5 = vcmp.lt.s32.totalorder %v490_v2, %v485_v12 }
  0x61   : > { %914 = vmatprep.subr.mxu0 %v630_v28  ;;  %1018 = vmatpush1.msra.mxu1 %v8756_v15 }
  0x62   : > { %918 = vmatpush1.msra.mxu0 %v636_v29  ;;  %975 = vmatprep.mubr.f32.mxu0 %v8542_v11 }
  0x63   : > { %922 = vmatprep.subr.mxu0 %v642_v30  ;;  %1020 = vmatprep.subr.mxu1 %v8773_v22 }
  0x64   : > { %926 = vmatpush1.msra.mxu0 %v648_v33  ;;  %1022 = vmatpush1.msra.mxu1 %v8788_v27 }
  0x65   : > { %930 = vmatprep.subr.mxu0 %v654_v34  ;;  %1055 = vmatprep.mubr.f32.mxu1 %v8542_v11 }
  0x66   : > { %934 = vmatpush1.msra.mxu0 %v660_v35  ;;  %1057 = vmatmul.mubr.f32.vlgmr.msra.gmra.mxu1 %v593_v59 }
  0x67   : > { %938 = vmatprep.subr.mxu0 %v666_v40  ;;  %7599 = vmatprep.subr.mxu1 %v8542_v11 }
  0x68   : > { %942 = vmatpush1.msra.mxu0 %v672_v44  ;;  %7601 = vmatprep.mubr.msk.f32.mxu1 %vm8546_vm3, %v8542_v11 }
  0x69   : > { %977 = vmatmul.mubr.f32.vlgmr.msra.gmra.mxu0 %v593_v59  ;;  %7594 = vmatprep.subr.mxu0 %v8542_v11 }
  0x6a   : > { %7596 = vmatprep.mubr.msk.f32.mxu0 %vm8546_vm3, %v8542_v11 }
  0xb5   : > { %v1083_v30 = vpop.permute.xlu0 %1082 }
  0xb6   : > { %v1069_v28 = vpop.permute.xlu1 %1068 }
  0xb9   : > { %v1079_v34 = vpop.permute.xlu0 %1078 }
 0x112   : > { %v711_v6 = vpop.f32.mrf.mxu1 }
 0x114   : > { %v713_v10 = vpop.f32.mrf.mxu1 }
 0x118   : > { %v599_v5 = vpop.f32.mrf.mxu0 }
 0x119   : > { %v600_v13 = vadd.f32 %v599_v5, %v509_v7 }
 0x11a   : > { %v601_v8 = vpop.f32.mrf.mxu0 }
 0x11b   : > { %v602_v9 = vadd.f32 %v601_v8, %v513_v3  ;;  %v882_v15 = vpop.f32.mrf.mxu1  ;;  %v712_v17 = vadd.f32 %v711_v6, %v600_v13  ;;  %v8547_v6 = vmov -10000.0  }
 0x11c   : > { %v8960_v7 = vsel %vm491_vm5, 0.0, %v8547_v6 }
 0x11d   : > { %v714_v14 = vadd.f32 %v713_v10, %v602_v9  ;;  %v884_v20 = vpop.f32.mrf.mxu1 }
 0x120   : > { %v800_v16 = vpop.f32.mrf.mxu0 }
 0x121   : > { %v801_v21 = vadd.f32 %v800_v16, %v712_v17 }
 0x122   : > { %v802_v19 = vpop.f32.mrf.mxu0 }
 0x123   : > { %v803_v22 = vadd.f32 %v802_v19, %v714_v14  ;;  %v883_v24 = vadd.f32 %v882_v15, %v801_v21 }
 0x125   : > { %v885_v23 = vadd.f32 %v884_v20, %v803_v22 }
 0x126   : > { %v1058_v26 = vpop.f32.mrf.mxu1 }
 0x128   : > { %v1060_v47 = vpop.f32.mrf.mxu1 }
 0x129   : > { %v978_v25 = vpop.f32.mrf.mxu0 }
 0x12a   : > { %v979_v27 = vadd.f32 %v978_v25, %v883_v24 }
 0x12b   : > { %v980_v44 = vpop.f32.mrf.mxu0 }
 0x12c   : > { %v1059_v29 = vadd.f32 %v1058_v26, %v979_v27  ;;  %v981_v46 = vadd.f32 %v980_v44, %v885_v23 }
 0x12e   : > { %v1071_v31 = vmul.f32 %v1069_v28, %v1059_v29  ;;  %v1085_v33 = vmul.f32 %v1083_v30, %v1059_v29  ;;  %v1081_v35 = vmul.f32 %v1079_v34, %v1059_v29  ;;  %v1066_v39 = vmul.f32 %v8801_v32, %v1059_v29 }
 0x12f   : > { %v8923_v51 = vadd.f32 %v1060_v47, %v981_v46 }
 0x130   : > { %1087 = vrot.lane.b32.xlu1 %v1085_v33, %s8543_s22  ;;  %1073 = vrot.lane.b32.xlu0 %v1071_v31, %s8543_s22 }
 0x131   : > { %v8927_v55 = vand.u32 4294901760, %v8923_v51 }
 0x133   : > { %v8934_v59 = vsub.f32 %v8923_v51, %v8927_v55 }
 0x135   : > { %v1674_v61 = vand.u32 4294901760, %v8934_v59 }
 0x137   : > { %v1675_v62 = vsub.f32 %v8934_v59, %v1674_v61 }
 0x139   : > { %v1676_v63 = vand.u32 4294901760, %v1675_v62 }
 0x1a2   : > { %v1088_v36 = vpop.permute.xlu1 %1087  ;;  %v1074_v38 = vpop.permute.xlu0 %1073 }
 0x1a3   : > { %v8913_v37 = vadd.f32 %v1088_v36, %v1081_v35  ;;  %v8918_v40 = vadd.f32 %v1074_v38, %v1066_v39 }
 0x1a5   : > { %1096 = vrot.lane.b32.xlu1 %v8913_v37, %s8545_s12  ;;  %v1100_v41 = vsel %vm1098_vm4, %v8918_v40, 0 }
 0x1a6   : > { %v1170_v42 = vand.u32 4294901760, %v1100_v41 }
 0x1a8   : > { %v1171_v43 = vsub.f32 %v1100_v41, %v1170_v42 }
 0x1aa   : > { %v1172_v45 = vand.u32 4294901760, %v1171_v43 }
 0x1ac   : > { %v1173_v50 = vsub.f32 %v1171_v43, %v1172_v45 }
 0x1ae   : > { %v1174_v53 = vand.u32 4294901760, %v1173_v50 }
 0x217   : > { %v1097_v48 = vpop.permute.xlu1 %1096 }
 0x218   : > { %v1102_v49 = vsel %vm1098_vm4, %v1097_v48, 0 }
 0x219   : > { %v1135_v52 = vand.u32 4294901760, %v1102_v49 }
 0x21b   : > { %v1212_v32 = vsub.f32 %v1102_v49, %v1135_v52  ;;  %7595 = vmatpush3.xpose.msra.mxu0 %v1135_v52 }
 0x21c   : > { %7604 = vmatprep.subr.mxu0 %v8542_v11 }
 0x21d   : > { %v1213_v57 = vand.u32 4294901760, %v1212_v32 }
 0x21e   : > { %7597 = vmatmul.mubr.f32.vlgmr.msra.gmra.mxu0 %v1174_v53 }
 0x21f   : > { %v1214_v58 = vsub.f32 %v1212_v32, %v1213_v57  ;;  %7605 = vmatpush3.xpose.msra.mxu0 %v1212_v32  ;;  %7606 = vmatprep.mubr.msk.f32.mxu0 %vm8546_vm3, %v8542_v11 }
 0x220   : > { %7614 = vmatprep.subr.mxu0 %v8542_v11 }
 0x221   : > { %v1215_v60 = vand.u32 4294901760, %v1214_v58 }
 0x222   : > { %7607 = vmatmul.mubr.f32.vlgmr.msra.gmra.mxu0 %v1171_v43 }
 0x223   : > { %7600 = vmatpush3.xpose.msra.mxu1 %v1215_v60  ;;  %7615 = vmatpush3.xpose.msra.mxu0 %v1213_v57 }
 0x224   : > { %7616 = vmatprep.mubr.msk.f32.mxu0 %vm8546_vm3, %v8542_v11  ;;  %7609 = vmatprep.subr.mxu1 %v8542_v11 }
 0x225   : > { %7624 = vmatprep.subr.mxu0 %v8542_v11 }
 0x226   : > { %7602 = vmatmul.mubr.f32.vlgmr.msra.gmra.mxu1 %v1170_v42  ;;  %7617 = vmatmul.mubr.f32.vlgmr.msra.gmra.mxu0 %v1170_v42 }
 0x227   : > { %7610 = vmatpush3.xpose.msra.mxu1 %v1135_v52  ;;  %7625 = vmatpush3.msra.mxu0 %v8927_v55 }
 0x228   : > { %7611 = vmatprep.mubr.msk.f32.mxu1 %vm8546_vm3, %v8542_v11  ;;  %7619 = vmatprep.subr.mxu1 %v8542_v11 }
 0x229   : > { %7626 = vmatprep.mubr.msk.f32.mxu0 %vm8546_vm3, %v8542_v11  ;;  %7634 = vmatprep.subr.mxu0 %v8542_v11 }
 0x22a   : > { %7612 = vmatmul.mubr.f32.vlgmr.msra.gmra.mxu1 %v1172_v45 }
 0x22b   : > { %7620 = vmatpush3.xpose.msra.mxu1 %v1135_v52  ;;  %7621 = vmatprep.mubr.msk.f32.mxu1 %vm8546_vm3, %v8542_v11 }
 0x22c   : > { %7629 = vmatprep.subr.mxu1 %v8542_v11 }
 0x22e   : > { %7622 = vmatmul.mubr.f32.vlgmr.msra.gmra.mxu1 %v1170_v42 }
 0x22f   : > { %7630 = vmatpush3.msra.mxu1 %v1676_v63  ;;  %7631 = vmatprep.mubr.msk.f32.mxu1 %vm8546_vm3, %v8542_v11 }
 0x230   : > { %7639 = vmatprep.subr.mxu1 %v8542_v11 }
 0x2de   : > { %v1176_v3 = vpop.f32.mrf.mxu0 }
 0x2df   : > { %v1177_v10 = vadd.f32 %v1176_v3, %v8960_v7 }
 0x2e0   : > { %v7598_v5 = vpop.f32.mrf.mxu0 }
 0x2e2   : > { %v1326_v8 = vpop.f32.mrf.mxu0 }
 0x2e4   : > { %v7608_v9 = vpop.f32.mrf.mxu0 }
 0x2e6   : > { %v1252_v13 = vpop.f32.mrf.mxu1  ;;  %v1474_v14 = vpop.f32.mrf.mxu0 }
 0x2e7   : > { %v1253_v15 = vadd.f32 %v1252_v13, %v1177_v10 }
 0x2e8   : > { %v7603_v16 = vpop.f32.mrf.mxu1  ;;  %v7618_v17 = vpop.f32.mrf.mxu0 }
 0x2e9   : > { %v1327_v19 = vadd.f32 %v1326_v8, %v1253_v15 }
 0x2ea   : > { %v1400_v20 = vpop.f32.mrf.mxu1 }
 0x2eb   : > { %v1401_v21 = vadd.f32 %v1400_v20, %v1327_v19 }
 0x2ec   : > { %v7613_v4 = vpop.f32.mrf.mxu1 }
 0x2ed   : > { %v1475_v22 = vadd.f32 %v1474_v14, %v1401_v21 }
 0x2ee   : > { %v1546_v23 = vpop.f32.mrf.mxu1 }
 0x2ef   : > { %v1547_v12 = vadd.f32 %v1546_v23, %v1475_v22 }
 0x2f0   : > { %v7623_v24 = vpop.f32.mrf.mxu1 }
 0x2f1   : > { %v1551_v25 = vsel %vm1550_vm6, %v1547_v12, -inf }
 0x2f2   : > { %1552 = vmax.xlane.f32.xlu0 %v1551_v25 }
 0x308   : > { %2013 = vrot.lane.b32.xlu0 %v8913_v37, %s8548_s18 }
 0x37b   : > { %v1553_v26 = vpop.xlane.xlu0 %1552 }
 0x37c   : > { %v1554_v27 = vsub.f32 %v1547_v12, %v1553_v26 }
 0x37e   : > { %v1555_v28 = vmul.f32 1.442695, %v1554_v27 }
 0x37f   : > { %v2014_v33 = vpop.permute.xlu0 %2013 }
 0x380   : > { %8420 = vpow2.f32 %v1555_v28  ;;  %v2017_v34 = vsel %vm1098_vm4, %v2014_v33, 0 }
 0x381   : > { %v2050_v35 = vand.u32 4294901760, %v2017_v34 }
 0x383   : > { %v2127_v37 = vsub.f32 %v2017_v34, %v2050_v35 }
 0x385   : > { %v2128_v43 = vand.u32 4294901760, %v2127_v37 }
 0x387   : > { %v2129_v47 = vsub.f32 %v2127_v37, %v2128_v43 }
 0x389   : > { %v2130_v52 = vand.u32 4294901760, %v2129_v47 }
 0x38d   : > { %v8421_v29 = vpop.eup %8420 }
 0x38e   : > { %v1557_v30 = vsel %vm1550_vm6, %v8421_v29, 0.0 }
 0x38f   : > { %1558 = vadd.xlane.f32.xlu1 %v1557_v30 }
 0x3a0   : > { %2011 = vrot.lane.b32.xlu1 %v8918_v40, %s8549_s16 }
 0x418   : > { %v1559_v31 = vpop.xlane.xlu1 %1558 }
 0x419   : > { %8422 = vrcp.f32 %v1559_v31 }
 0x41c   : > { %v2012_v39 = vpop.permute.xlu1 %2011 }
 0x41d   : > { %v2015_v44 = vsel %vm1098_vm4, %v2012_v39, 0 }
 0x41e   : > { %v2085_v40 = vand.u32 4294901760, %v2015_v44 }
 0x420   : > { %v2086_v49 = vsub.f32 %v2015_v44, %v2085_v40 }
 0x422   : > { %v2087_v32 = vand.u32 4294901760, %v2086_v49 }
 0x424   : > { %v2088_v53 = vsub.f32 %v2086_v49, %v2087_v32 }
 0x426   : > { %v8423_v36 = vpop.eup %8422 }
 0x427   : > { %v1561_v38 = vmul.f32 %v8423_v36, %v8421_v29 }
 0x429   : > { %v1563_v41 = vsel %vm1550_vm6, %v1561_v38, 0 }
 0x42a   : > { %v1631_v42 = vand.u32 4294901760, %v1563_v41 }
 0x42c   : > { %v1632_v45 = vsub.f32 %v1563_v41, %v1631_v42  ;;  %7632 = vmatmul.mubr.f32.vlgmr.msra.gmra.mxu1 %v1631_v42 }
 0x42d   : > { %7640 = vmatpush3.msra.mxu1 %v8927_v55  ;;  %7641 = vmatprep.mubr.msk.f32.mxu1 %vm8546_vm3, %v8542_v11 }
 0x42e   : > { %7649 = vmatprep.subr.mxu1 %v8542_v11  ;;  %v1633_v46 = vand.u32 4294901760, %v1632_v45 }
 0x430   : > { %7642 = vmatmul.mubr.f32.vlgmr.msra.gmra.mxu1 %v1633_v46  ;;  %v1634_v48 = vsub.f32 %v1632_v45, %v1633_v46 }
 0x431   : > { %7650 = vmatpush3.msra.mxu1 %v8927_v55  ;;  %7651 = vmatprep.mubr.msk.f32.mxu1 %vm8546_vm3, %v8542_v11  ;;  %v2089_v55 = vand.u32 4294901760, %v2088_v53  ;;  %v1094_v53 = vld [vmem:[%s8709_s17 + $0x18] sm:$0xff] }
 0x432   : > { %7659 = vmatprep.subr.mxu1 %v8542_v11  ;;  %v1635_v50 = vand.u32 4294901760, %v1634_v48 }
 0x434   : > { %7627 = vmatmul.mubr.f32.vlgmr.msra.gmra.mxu0 %v1635_v50  ;;  %7652 = vmatmul.mubr.f32.vlgmr.msra.gmra.mxu1 %v1631_v42 }
 0x435   : > { %7635 = vmatpush3.msra.mxu0 %v8934_v59  ;;  %7660 = vmatpush3.xpose.msra.mxu1 %v2130_v52 }
 0x436   : > { %7636 = vmatprep.mubr.msk.f32.mxu0 %vm8546_vm3, %v8542_v11  ;;  %7644 = vmatprep.subr.mxu0 %v8542_v11 }
 0x437   : > { %7661 = vmatprep.mubr.msk.f32.mxu1 %vm8546_vm3, %v8542_v11  ;;  %7669 = vmatprep.subr.mxu1 %v8542_v11 }
 0x438   : > { %7637 = vmatmul.mubr.f32.vlgmr.msra.gmra.mxu0 %v1632_v45  ;;  %7662 = vmatmul.mubr.f32.vlgmr.msra.gmra.mxu1 %v2085_v40 }
 0x439   : > { %7645 = vmatpush3.msra.mxu0 %v1674_v61  ;;  %7670 = vmatpush3.xpose.msra.mxu1 %v2050_v35 }
 0x43a   : > { %7646 = vmatprep.mubr.msk.f32.mxu0 %vm8546_vm3, %v8542_v11  ;;  %7654 = vmatprep.subr.mxu0 %v8542_v11 }
 0x43b   : > { %7671 = vmatprep.mubr.msk.f32.mxu1 %vm8546_vm3, %v8542_v11  ;;  %7679 = vmatprep.subr.mxu1 %v8542_v11 }
 0x43c   : > { %7647 = vmatmul.mubr.f32.vlgmr.msra.gmra.mxu0 %v1631_v42  ;;  %7672 = vmatmul.mubr.f32.vlgmr.msra.gmra.mxu1 %v2087_v32 }
 0x43d   : > { %7655 = vmatpush3.xpose.msra.mxu0 %v2050_v35  ;;  %7680 = vmatpush3.xpose.msra.mxu1 %v2050_v35 }
 0x43e   : > { %7656 = vmatprep.mubr.msk.f32.mxu0 %vm8546_vm3, %v8542_v11  ;;  %7664 = vmatprep.subr.mxu0 %v8542_v11 }
 0x43f   : > { %7681 = vmatprep.mubr.msk.f32.mxu1 %vm8546_vm3, %v8542_v11  ;;  %7689 = vmatprep.subr.mxu1 %v8542_v11 }
 0x440   : > { %7657 = vmatmul.mubr.f32.vlgmr.msra.gmra.mxu0 %v2089_v55  ;;  %7682 = vmatmul.mubr.f32.vlgmr.msra.gmra.mxu1 %v2085_v40  ;;  %v2961_v55 = vand.u32 4294901760, %v1094_v53 }
 0x441   : > { %7665 = vmatpush3.xpose.msra.mxu0 %v2127_v37  ;;  %7666 = vmatprep.mubr.msk.f32.mxu0 %vm8546_vm3, %v8542_v11 }
 0x442   : > { %7674 = vmatprep.subr.mxu0 %v8542_v11  ;;  %7691 = vmatprep.mubr.msk.f32.mxu1 %vm8546_vm3, %v8542_v11 }
 0x444   : > { %7667 = vmatmul.mubr.f32.vlgmr.msra.gmra.mxu0 %v2086_v49 }
 0x445   : > { %7675 = vmatpush3.xpose.msra.mxu0 %v2128_v43  ;;  %7676 = vmatprep.mubr.msk.f32.mxu0 %vm8546_vm3, %v8542_v11 }
 0x446   : > { %7684 = vmatprep.subr.mxu0 %v8542_v11 }
 0x448   : > { %7677 = vmatmul.mubr.f32.vlgmr.msra.gmra.mxu0 %v2085_v40 }
 0x449   : > { %7686 = vmatprep.mubr.msk.f32.mxu0 %vm8546_vm3, %v8542_v11 }
 0x4ec   : > { %v1713_v57 = vpop.f32.mrf.mxu1 }
 0x4ee   : > { %v7633_v58 = vpop.f32.mrf.mxu1 }
 0x4ef   : > { %v9038_v58 = vsub.f32 %v1094_v53, %v2961_v55 }
 0x4f0   : > { %v1861_v59 = vpop.f32.mrf.mxu1 }
 0x4f2   : > { %v7643_v60 = vpop.f32.mrf.mxu1 }
 0x4f3   : > { %v3040_v60 = vand.u32 4294901760, %v9038_v58 }
 0x4f4   : > { %v1637_v61 = vpop.f32.mrf.mxu0  ;;  %v2007_v62 = vpop.f32.mrf.mxu1 }
 0x4f5   : > { %v1714_v63 = vadd.f32 %v1713_v57, %v1637_v61  ;;  %v1093_v57 = vld [vmem:[%s8709_s17 + $0x10] sm:$0xff] }
 0x4f6   : > { %v7628_v2 = vpop.f32.mrf.mxu0  ;;  %v7653_v3 = vpop.f32.mrf.mxu1 }
 0x4f8   : > { %v1787_v5 = vpop.f32.mrf.mxu0  ;;  %v2167_v6 = vpop.f32.mrf.mxu1 }
 0x4f9   : > { %v1788_v8 = vadd.f32 %v1787_v5, %v1714_v63 }
 0x4fa   : > { %v7638_v9 = vpop.f32.mrf.mxu0  ;;  %v7663_v10 = vpop.f32.mrf.mxu1 }
 0x4fb   : > { %v1862_v13 = vadd.f32 %v1861_v59, %v1788_v8  ;;  %v2964_v59 = vand.u32 4294901760, %v1093_v57 }
 0x4fc   : > { %v1935_v14 = vpop.f32.mrf.mxu0  ;;  %v2315_v15 = vpop.f32.mrf.mxu1 }
 0x4fd   : > { %v1936_v16 = vadd.f32 %v1935_v14, %v1862_v13  ;;  %v9042_v61 = vsub.f32 %v1093_v57, %v2964_v59 }
 0x4fe   : > { %v7648_v17 = vpop.f32.mrf.mxu0  ;;  %v7673_v19 = vpop.f32.mrf.mxu1 }
 0x4ff   : > { %v9010_v20 = vadd.f32 %v2007_v62, %v1936_v16  ;;  %v3041_v62 = vsub.f32 %v9038_v58, %v3040_v60  ;;  %v3047_v63 = vand.u32 4294901760, %v9042_v61  ;;  %v1092_v19 = vld [vmem:[%s8709_s17 + $0x8] sm:$0xff] }
 0x500   : > { %v2091_v21 = vpop.f32.mrf.mxu0  ;;  %v2461_v4 = vpop.f32.mrf.mxu1 }
 0x501   : > { %v2092_v22 = vadd.f32 %v2091_v21, %v8960_v7  ;;  %v3042_v2 = vand.u32 4294901760, %v3041_v62  ;;  %v3048_v3 = vsub.f32 %v9042_v61, %v3047_v63 }
 0x502   : > { %v7658_v23 = vpop.f32.mrf.mxu0  ;;  %v7683_v12 = vpop.f32.mrf.mxu1 }
 0x503   : > { %v2168_v24 = vadd.f32 %v2167_v6, %v2092_v22  ;;  %v3049_v5 = vand.u32 4294901760, %v3048_v3  ;;  %v1091_v22 = vld [vmem:[%s8709_s17] sm:$0xff]  ;;  %v9056_v12 = vand.u32 4294901760, %v1092_v19 }
 0x504   : > { %v2241_v25 = vpop.f32.mrf.mxu0 }
 0x505   : > { %v2242_v26 = vadd.f32 %v2241_v25, %v2168_v24 }
 0x506   : > { %v7668_v27 = vpop.f32.mrf.mxu0 }
 0x507   : > { %v2316_v28 = vadd.f32 %v2315_v15, %v2242_v26  ;;  %v9058_v26 = vand.u32 4294901760, %v1091_v22 }
 0x508   : > { %v2389_v29 = vpop.f32.mrf.mxu0 }
 0x509   : > { %v2390_v30 = vadd.f32 %v2389_v29, %v2316_v28  ;;  %v9061_v29 = vsub.f32 %v1092_v19, %v9056_v12 }
 0x50a   : > { %v7678_v31 = vpop.f32.mrf.mxu0 }
 0x50b   : > { %v2462_v33 = vadd.f32 %v2461_v4, %v2390_v30  ;;  %v9064_v31 = vsub.f32 %v1091_v22, %v9058_v26  ;;  %v9140_v22 = vld [vmem:[%s8715_s1] sm:$0xff] }
 0x50d   : > { %v2465_v34 = vsel %vm1550_vm6, %v2462_v33, -inf }
 0x50e   : > { %2466 = vmax.xlane.f32.xlu0 %v2465_v34 }
 0x524   : > { %2477 = vrot.lane.b32.xlu0 %v8923_v51, %s8549_s16 }
 0x597   : > { %v2467_v35 = vpop.xlane.xlu0 %2466 }
 0x598   : > { %v2468_v36 = vsub.f32 %v2462_v33, %v2467_v35  ;;  %v3502_v35 = vand.u32 4294901760, %v9061_v29 }
 0x59a   : > { %v2469_v7 = vmul.f32 1.442695, %v2468_v36 }
 0x59b   : > { %v2478_v37 = vpop.permute.xlu0 %2477 }
 0x59c   : > { %8424 = vpow2.f32 %v2469_v7  ;;  %v2514_v38 = vand.u32 4294901760, %v2478_v37  ;;  %v3509_v7 = vand.u32 4294901760, %v9064_v31 }
 0x59e   : > { %v2591_v39 = vsub.f32 %v2478_v37, %v2514_v38  ;;  %7685 = vmatpush3.msra.mxu0 %v2514_v38 }
 0x59f   : > { %7694 = vmatprep.subr.mxu0 %v8542_v11 }
 0x5a0   : > { %v2592_v41 = vand.u32 4294901760, %v2591_v39 }
 0x5a2   : > { %v2593_v42 = vsub.f32 %v2591_v39, %v2592_v41 }
 0x5a4   : > { %v2594_v43 = vand.u32 4294901760, %v2593_v42  ;;  %v3510_v42 = vsub.f32 %v9064_v31, %v3509_v7 }
 0x5a6   : > { %7690 = vmatpush3.msra.mxu1 %v2594_v43 }
 0x5a7   : > { %7699 = vmatprep.subr.mxu1 %v8542_v11 }
 0x5a9   : > { %v8425_v44 = vpop.eup %8424 }
 0x5aa   : > { %v2471_v45 = vsel %vm1550_vm6, %v8425_v44, 0.0 }
 0x5ab   : > { %2472 = vadd.xlane.f32.xlu1 %v2471_v45 }
 0x634   : > { %v2473_v51 = vpop.xlane.xlu1 %2472 }
 0x635   : > { %8426 = vrcp.f32 %v2473_v51 }
 0x642   : > { %v8427_v40 = vpop.eup %8426 }
 0x643   : > { %v2475_v46 = vmul.f32 %v8427_v40, %v8425_v44 }
 0x645   : > { %v2481_v47 = vsel %vm1550_vm6, %v2475_v46, 0 }
 0x646   : > { %v2549_v48 = vand.u32 4294901760, %v2481_v47 }
 0x648   : > { %v2550_v49 = vsub.f32 %v2481_v47, %v2549_v48  ;;  %7692 = vmatmul.mubr.f32.vlgmr.msra.gmra.mxu1 %v2549_v48 }
 0x649   : > { %7700 = vmatpush3.msra.mxu1 %v2514_v38  ;;  %7701 = vmatprep.mubr.msk.f32.mxu1 %vm8546_vm3, %v8542_v11 }
 0x64a   : > { %7709 = vmatprep.subr.mxu1 %v8542_v11  ;;  %v2551_v50 = vand.u32 4294901760, %v2550_v49 }
 0x64c   : > { %7702 = vmatmul.mubr.f32.vlgmr.msra.gmra.mxu1 %v2551_v50  ;;  %v2552_v52 = vsub.f32 %v2550_v49, %v2551_v50 }
 0x64d   : > { %7710 = vmatpush3.msra.mxu1 %v2514_v38  ;;  %7711 = vmatprep.mubr.msk.f32.mxu1 %vm8546_vm3, %v8542_v11  ;;  %v3503_v38 = vsub.f32 %v9061_v29, %v3502_v35 }
 0x64e   : > { %v2553_v32 = vand.u32 4294901760, %v2552_v52  ;;  %7721 = vmatprep.subr.mxu1 %v8542_v11 }
 0x64f   : > { %v3504_v44 = vand.u32 4294901760, %v3503_v38 }
 0x650   : > { %7687 = vmatmul.mubr.f32.vlgmr.msra.gmra.mxu0 %v2553_v32  ;;  %7712 = vmatmul.mubr.f32.vlgmr.msra.gmra.mxu1 %v2549_v48 }
 0x651   : > { %7695 = vmatpush3.msra.mxu0 %v2591_v39  ;;  %7696 = vmatprep.mubr.msk.f32.mxu0 %vm8546_vm3, %v8542_v11  ;;  %v3392_v39 = vsel %vm1098_vm4, %v9010_v20, 0  ;;  %v3511_v20 = vand.u32 4294901760, %v3510_v42  ;;  %v3896_v42 = vld [vmem:[%s8726_s4 + $0x20] sm:$0xff] }
 0x652   : > { %7704 = vmatprep.subr.mxu0 %v8542_v11  ;;  %7725 = vmatprep.mubr.msk.f32.mxu1 %vm8546_vm3, %v8542_v11  ;;  %v3461_v45 = vand.u32 4294901760, %v3392_v39 }
 0x653   : > { %7722 = vmatpush3.msra.mxu1 %v3042_v2 }
 0x654   : > { %7697 = vmatmul.mubr.f32.vlgmr.msra.gmra.mxu0 %v2550_v49  ;;  %7723 = vmatprep.subr.mxu1 %v8542_v11  ;;  %v3462_v51 = vsub.f32 %v3392_v39, %v3461_v45 }
 0x655   : > { %7705 = vmatpush3.msra.mxu0 %v2592_v41  ;;  %7706 = vmatprep.mubr.msk.f32.mxu0 %vm8546_vm3, %v8542_v11 }
 0x656   : > { %7714 = vmatprep.subr.mxu0 %v8542_v11  ;;  %7724 = vmatpush3.msra.mxu1 %v3049_v5  ;;  %v3463_v40 = vand.u32 4294901760, %v3462_v51 }
 0x657   : > { %7735 = vmatprep.subr.mxu1 %v8542_v11 }
 0x658   : > { %7707 = vmatmul.mubr.f32.vlgmr.msra.gmra.mxu0 %v2549_v48  ;;  %v3464_v46 = vsub.f32 %v3462_v51, %v3463_v40 }
 0x659   : > { %7718 = vmatprep.mubr.msk.f32.mxu0 %vm8546_vm3, %v8542_v11  ;;  %7715 = vmatpush3.msra.mxu0 %v2961_v55 }
 0x65a   : > { %7716 = vmatprep.subr.mxu0 %v8542_v11  ;;  %v3465_v47 = vand.u32 4294901760, %v3464_v46 }
 0x65b   : > { %7717 = vmatpush3.msra.mxu0 %v2964_v59 }
 0x65c   : > { %7728 = vmatprep.subr.mxu0 %v8542_v11 }
 0x708   : > { %v2631_v6 = vpop.f32.mrf.mxu1 }
 0x70a   : > { %v7693_v8 = vpop.f32.mrf.mxu1 }
 0x70c   : > { %v2779_v9 = vpop.f32.mrf.mxu1 }
 0x70e   : > { %v7703_v10 = vpop.f32.mrf.mxu1 }
 0x710   : > { %v2555_v13 = vpop.f32.mrf.mxu0  ;;  %v2925_v14 = vpop.f32.mrf.mxu1 }
 0x711   : > { %v2632_v17 = vadd.f32 %v2631_v6, %v2555_v13 }
 0x712   : > { %v7688_v15 = vpop.f32.mrf.mxu0  ;;  %v7713_v16 = vpop.f32.mrf.mxu1 }
 0x714   : > { %v2705_v21 = vpop.f32.mrf.mxu0 }
 0x715   : > { %v2706_v4 = vadd.f32 %v2705_v21, %v2632_v17 }
 0x716   : > { %v7698_v23 = vpop.f32.mrf.mxu0 }
 0x717   : > { %v2780_v24 = vadd.f32 %v2779_v9, %v2706_v4 }
 0x718   : > { %v2853_v25 = vpop.f32.mrf.mxu0 }
 0x719   : > { %v2854_v27 = vadd.f32 %v2853_v25, %v2780_v24 }
 0x71a   : > { %v7708_v28 = vpop.f32.mrf.mxu0 }
 0x71b   : > { %v2926_v30 = vadd.f32 %v2925_v14, %v2854_v27 }
 0x71d   : > { %v2930_v33 = vsel %vm1098_vm4, %v2926_v30, 0 }
 0x71e   : > { %v2999_v34 = vand.u32 4294901760, %v2930_v33 }
 0x720   : > { %v3000_v36 = vsub.f32 %v2930_v33, %v2999_v34  ;;  %7726 = vmatmul.mubr.f32.vlgmr.msra.gmra.mxu1 %v2999_v34 }
 0x721   : > { %7736 = vmatpush3.msra.mxu1 %v2961_v55  ;;  %7739 = vmatprep.mubr.msk.f32.mxu1 %vm8546_vm3, %v8542_v11 }
 0x722   : > { %7737 = vmatprep.subr.mxu1 %v8542_v11  ;;  %v3001_v37 = vand.u32 4294901760, %v3000_v36 }
 0x723   : > { %7738 = vmatpush3.msra.mxu1 %v2964_v59 }
 0x724   : > { %7740 = vmatmul.mubr.f32.vlgmr.msra.gmra.mxu1 %v3001_v37  ;;  %7749 = vmatprep.subr.mxu1 %v8542_v11  ;;  %v3002_v41 = vsub.f32 %v3000_v36, %v3001_v37 }
 0x725   : > { %7750 = vmatpush3.msra.mxu1 %v2961_v55  ;;  %7753 = vmatprep.mubr.msk.f32.mxu1 %vm8546_vm3, %v8542_v11 }
 0x726   : > { %7751 = vmatprep.subr.mxu1 %v8542_v11  ;;  %v3003_v43 = vand.u32 4294901760, %v3002_v41 }
 0x727   : > { %7752 = vmatpush3.msra.mxu1 %v2964_v59 }
 0x728   : > { %7719 = vmatmul.mubr.f32.vlgmr.msra.gmra.mxu0 %v3003_v43  ;;  %7754 = vmatmul.mubr.f32.vlgmr.msra.gmra.mxu1 %v2999_v34 }
 0x729   : > { %7763 = vmatprep.subr.mxu1 %v8542_v11  ;;  %7729 = vmatpush3.msra.mxu0 %v9038_v58 }
 0x72a   : > { %7764 = vmatpush3.msra.mxu1 %v3504_v44  ;;  %7730 = vmatprep.subr.mxu0 %v8542_v11 }
 0x72b   : > { %7765 = vmatprep.subr.mxu1 %v8542_v11  ;;  %7731 = vmatpush3.msra.mxu0 %v9042_v61 }
 0x72c   : > { %7732 = vmatprep.mubr.msk.f32.mxu0 %vm8546_vm3, %v8542_v11  ;;  %7766 = vmatpush3.msra.mxu1 %v3511_v20  ;;  %v9176_v20 = vand.u32 4294901760, %v3896_v42 }
 0x72d   : > { %7767 = vmatprep.mubr.msk.f32.mxu1 %vm8546_vm3, %v8542_v11  ;;  %7733 = vmatmul.mubr.f32.vlgmr.msra.gmra.mxu0 %v3000_v36 }
 0x72e   : > { %7742 = vmatprep.subr.mxu0 %v8542_v11  ;;  %7768 = vmatmul.mubr.f32.vlgmr.msra.gmra.mxu1 %v3461_v45 }
 0x72f   : > { %7777 = vmatprep.subr.mxu1 %v8542_v11  ;;  %7743 = vmatpush3.msra.mxu0 %v3040_v60 }
 0x730   : > { %7778 = vmatpush3.msra.mxu1 %v9056_v12  ;;  %7744 = vmatprep.subr.mxu0 %v8542_v11 }
 0x731   : > { %7779 = vmatprep.subr.mxu1 %v8542_v11  ;;  %7745 = vmatpush3.msra.mxu0 %v3047_v63 }
 0x732   : > { %7746 = vmatprep.mubr.msk.f32.mxu0 %vm8546_vm3, %v8542_v11  ;;  %7780 = vmatpush3.msra.mxu1 %v9058_v26 }
 0x733   : > { %7781 = vmatprep.mubr.msk.f32.mxu1 %vm8546_vm3, %v8542_v11  ;;  %7747 = vmatmul.mubr.f32.vlgmr.msra.gmra.mxu0 %v2999_v34 }
 0x734   : > { %7756 = vmatprep.subr.mxu0 %v8542_v11  ;;  %7782 = vmatmul.mubr.f32.vlgmr.msra.gmra.mxu1 %v3463_v40 }
 0x735   : > { %7791 = vmatprep.subr.mxu1 %v8542_v11  ;;  %7757 = vmatpush3.msra.mxu0 %v9056_v12 }
 0x736   : > { %7792 = vmatpush3.msra.mxu1 %v9056_v12  ;;  %7758 = vmatprep.subr.mxu0 %v8542_v11 }
 0x737   : > { %7793 = vmatprep.subr.mxu1 %v8542_v11  ;;  %7759 = vmatpush3.msra.mxu0 %v9058_v26 }
 0x738   : > { %7760 = vmatprep.mubr.msk.f32.mxu0 %vm8546_vm3, %v8542_v11  ;;  %7794 = vmatpush3.msra.mxu1 %v9058_v26  ;;  %v3856_v26 = vrot.slane %v9140_v22, %v508_v1 }
 0x739   : > { %7795 = vmatprep.mubr.msk.f32.mxu1 %vm8546_vm3, %v8542_v11  ;;  %7761 = vmatmul.mubr.f32.vlgmr.msra.gmra.mxu0 %v3465_v47  ;;  %v9185_v47 = vsub.f32 %v3896_v42, %v9176_v20 }
 0x73a   : > { %7770 = vmatprep.subr.mxu0 %v8542_v11  ;;  %7796 = vmatmul.mubr.f32.vlgmr.msra.gmra.mxu1 %v3461_v45 }
 0x73b   : > { %7771 = vmatpush3.msra.mxu0 %v9061_v29  ;;  %7774 = vmatprep.mubr.msk.f32.mxu0 %vm8546_vm3, %v8542_v11 }
 0x73c   : > { %7772 = vmatprep.subr.mxu0 %v8542_v11  ;;  %7809 = vmatprep.subr.mxu1 %v8542_v11 }
 0x73d   : > { %7773 = vmatpush3.msra.mxu0 %v9064_v31  ;;  %7817 = vmatprep.mubr.msk.f32.mxu1 %vm8546_vm3, %v8542_v11 }
 0x73e   : > { %7775 = vmatmul.mubr.f32.vlgmr.msra.gmra.mxu0 %v3462_v51  ;;  %7784 = vmatprep.subr.mxu0 %v8542_v11 }
 0x73f   : > { %7785 = vmatpush3.msra.mxu0 %v3502_v35  ;;  %7788 = vmatprep.mubr.msk.f32.mxu0 %vm8546_vm3, %v8542_v11  ;;  %v3899_v35 = vld [vmem:[%s8726_s4 + $0x38] sm:$0xff] }
 0x740   : > { %7786 = vmatprep.subr.mxu0 %v8542_v11  ;;  %v9149_v36 = vand.u32 4294901760, %v3899_v35 }
 0x741   : > { %7787 = vmatpush3.msra.mxu0 %v3509_v7  ;;  %v3898_v7 = vld [vmem:[%s8726_s4 + $0x30] sm:$0xff] }
 0x742   : > { %7789 = vmatmul.mubr.f32.vlgmr.msra.gmra.mxu0 %v3461_v45  ;;  %7798 = vmatprep.subr.mxu0 %v8542_v11  ;;  %v9153_v1 = vsub.f32 %v3899_v35, %v9149_v36  ;;  %v9155_v37 = vand.u32 4294901760, %v3898_v7 }
 0x743   : > { %7806 = vmatprep.mubr.msk.f32.mxu0 %vm8546_vm3, %v8542_v11  ;;  %7799 = vmatpush3.msra.mxu0 %v9149_v36 }
 0x744   : > { %7800 = vmatprep.subr.mxu0 %v8542_v11  ;;  %v4008_v38 = vand.u32 4294901760, %v9153_v1  ;;  %v9162_v39 = vsub.f32 %v3898_v7, %v9155_v37 }
 0x745   : > { %7801 = vmatpush3.msra.mxu0 %v9155_v37 }
 0x746   : > { %7802 = vmatprep.subr.mxu0 %v8542_v11  ;;  %v4009_v43 = vsub.f32 %v9153_v1, %v4008_v38  ;;  %v4015_v44 = vand.u32 4294901760, %v9162_v39 }
 0x748   : > { %v4010_v51 = vand.u32 4294901760, %v4009_v43  ;;  %v4016_v40 = vsub.f32 %v9162_v39, %v4015_v44 }
 0x74a   : > { %7810 = vmatpush3.msra.mxu1 %v4010_v51 }
 0x74b   : > { %7811 = vmatprep.subr.mxu1 %v8542_v11 }
 0x7e0   : > { %v3086_v48 = vpop.f32.mrf.mxu1 }
 0x7e2   : > { %v7727_v49 = vpop.f32.mrf.mxu1 }
 0x7e4   : > { %v3237_v50 = vpop.f32.mrf.mxu1 }
 0x7e6   : > { %v7741_v52 = vpop.f32.mrf.mxu1 }
 0x7e8   : > { %v3005_v32 = vpop.f32.mrf.mxu0  ;;  %v3387_v53 = vpop.f32.mrf.mxu1 }
 0x7e9   : > { %v3087_v58 = vadd.f32 %v3086_v48, %v3005_v32  ;;  %v4017_v48 = vand.u32 4294901760, %v4016_v40 }
 0x7ea   : > { %v7720_v55 = vpop.f32.mrf.mxu0  ;;  %v7755_v57 = vpop.f32.mrf.mxu1 }
 0x7eb   : > { %7812 = vmatpush3.msra.mxu1 %v4017_v48 }
 0x7ec   : > { %7813 = vmatprep.subr.mxu1 %v8542_v11 }
 0x7ed   : > { %v3162_v59 = vpop.f32.mrf.mxu0 }
 0x7ee   : > { %v3163_v60 = vadd.f32 %v3162_v59, %v3087_v58  ;;  %v3548_v61 = vpop.f32.mrf.mxu1 }
 0x7ef   : > { %v7734_v62 = vpop.f32.mrf.mxu0 }
 0x7f0   : > { %v7769_v63 = vpop.f32.mrf.mxu1  ;;  %v3238_v2 = vadd.f32 %v3237_v50, %v3163_v60  ;;  %v4029_v50 = vand.u32 4294901760, %v9185_v47 }
 0x7f2   : > { %v4030_v32 = vsub.f32 %v9185_v47, %v4029_v50 }
 0x7f3   : > { %v3314_v3 = vpop.f32.mrf.mxu0 }
 0x7f4   : > { %v3315_v5 = vadd.f32 %v3314_v3, %v3238_v2  ;;  %v3699_v6 = vpop.f32.mrf.mxu1  ;;  %v3883_v2 = vsub.s32 2, %v8761_v18  ;;  %v3879_v3 = vrot.slane %v9140_v22, %v512_v0  ;;  %v3894_v0 = vld [vmem:[%s8726_s4 + $0x10] sm:$0xff] }
 0x7f5   : > { %v7748_v8 = vpop.f32.mrf.mxu0 }
 0x7f6   : > { %v7783_v9 = vpop.f32.mrf.mxu1  ;;  %v3388_v10 = vadd.f32 %v3387_v53, %v3315_v5  ;;  %v4031_v53 = vand.u32 4294901760, %v4030_v32  ;;  %v4879_v32 = vld [vmem:[%s8726_s4 + $0x40] sm:$0xff] }
 0x7f7   : > { %v3884_v9 = vrot.slane %v9140_v22, %v3883_v2 }
 0x7f9   : > { %v3467_v13 = vpop.f32.mrf.mxu0 }
 0x7fa   : > { %v3468_v14 = vadd.f32 %v3467_v13, %v3388_v10  ;;  %v3849_v15 = vpop.f32.mrf.mxu1 }
 0x7fb   : > { %v7762_v16 = vpop.f32.mrf.mxu0 }
 0x7fc   : > { %v7797_v17 = vpop.f32.mrf.mxu1  ;;  %v3549_v19 = vadd.f32 %v3548_v61, %v3468_v14  ;;  %v3895_v16 = vld [vmem:[%s8726_s4 + $0x18] sm:$0xff] }
 0x7fe   : > { %v3624_v21 = vpop.f32.mrf.mxu0 }
 0x7ff   : > { %v3625_v4 = vadd.f32 %v3624_v21, %v3549_v19  ;;  %v9219_v21 = vand.u32 4294901760, %v3895_v16 }
 0x800   : > { %v7776_v23 = vpop.f32.mrf.mxu0 }
 0x801   : > { %v3700_v12 = vadd.f32 %v3699_v6, %v3625_v4  ;;  %v3893_v4 = vld [vmem:[%s8726_s4 + $0x8] sm:$0xff]  ;;  %v9226_v23 = vand.u32 4294901760, %v3894_v0 }
 0x802   : > { %v3776_v24 = vpop.f32.mrf.mxu0 }
 0x803   : > { %v3777_v25 = vadd.f32 %v3776_v24, %v3700_v12  ;;  %v3892_v12 = vld [vmem:[%s8726_s4] sm:$0xff] }
 0x804   : > { %v7790_v27 = vpop.f32.mrf.mxu0 }
 0x805   : > { %v3850_v28 = vadd.f32 %v3849_v15, %v3777_v25  ;;  %v9232_v25 = vsub.f32 %v3895_v16, %v9219_v21 }
 0x807   : > { %v3857_v29 = vadd.f32 %v3856_v26, %v3850_v28  ;;  %v9234_v26 = vand.u32 4294901760, %v3893_v4  ;;  %v9239_v28 = vsub.f32 %v3894_v0, %v9226_v23 }
 0x809   : > { %v3858_v30 = vadd.f32 %v3857_v29, %v8851_v56  ;;  %v3897_v56 = vld [vmem:[%s8726_s4 + $0x28] sm:$0xff]  ;;  %v9241_v29 = vand.u32 4294901760, %v3892_v12 }
 0x80a   : > { %v9164_v41 = vand.u32 4294901760, %v3897_v56 }
 0x80b   : > { %v3859_v31 = vsel %vm516_vm2, %v3858_v30, 0.0  ;;  %v3864_v33 = vmul.f32 %v3858_v30, %v3858_v30  ;;  %v9255_v35 = vsub.f32 %v3892_v12, %v9241_v29 }
 0x80c   : > { %3860 = vadd.xlane.f32.xlu1 %v3859_v31  ;;  %v9174_v45 = vsub.f32 %v3897_v56, %v9164_v41  ;;  %7803 = vmatpush3.msra.mxu0 %v9164_v41  ;;  %v9247_v31 = vsub.f32 %v3893_v4, %v9234_v26 }
 0x80d   : > { %v3865_v34 = vsel %vm516_vm2, %v3864_v33, 0.0  ;;  %7804 = vmatprep.subr.mxu0 %v8542_v11  ;;  %v4517_v42 = vand.u32 4294901760, %v9255_v35 }
 0x80e   : > { %v4022_v46 = vand.u32 4294901760, %v9174_v45  ;;  %7805 = vmatpush3.msra.mxu0 %v9176_v20  ;;  %v4510_v7 = vand.u32 4294901760, %v9247_v31 }
 0x80f   : > { %7820 = vmatprep.subr.mxu0 %v8542_v11 }
 0x810   : > { %3866 = vadd.xlane.f32.xlu1 %v3865_v34  ;;  %v4023_v49 = vsub.f32 %v9174_v45, %v4022_v46  ;;  %v4503_v34 = vand.u32 4294901760, %v9239_v28  ;;  %v4511_v43 = vsub.f32 %v9247_v31, %v4510_v7 }
 0x812   : > { %v4024_v52 = vand.u32 4294901760, %v4023_v49  ;;  %v4512_v49 = vand.u32 4294901760, %v4511_v43 }
 0x814   : > { %7814 = vmatpush3.msra.mxu1 %v4024_v52 }
 0x815   : > { %7815 = vmatprep.subr.mxu1 %v8542_v11 }
 0x816   : > { %7816 = vmatpush3.msra.mxu1 %v4031_v53 }
 0x817   : > { %7831 = vmatprep.subr.mxu1 %v8542_v11 }
 0x895   : > { %v3861_v55 = vpop.xlane.xlu1 %3860 }
 0x896   : > { %v3863_v57 = vmul.f32 0.03125, %v3861_v55 }
 0x898   : > { %v3869_v59 = vmul.f32 %v3863_v57, %v3863_v57  ;;  %v3872_v5 = vsub.f32 %v3858_v30, %v3863_v57  ;;  %v4496_v30 = vand.u32 4294901760, %v9232_v25 }
 0x899   : > { %v3867_v58 = vpop.xlane.xlu1 %3866 }
 0x89a   : > { %v3868_v60 = vmul.f32 0.03125, %v3867_v58 }
 0x89c   : > { %v3870_v61 = vsub.f32 %v3868_v60, %v3869_v59  ;;  %v9352_v59 = vand.u32 4294901760, %v4879_v32 }
 0x89e   : > { %v3871_v62 = vmax.f32 %v3870_v61, 0.0  ;;  %v9368_v2 = vsub.f32 %v4879_v32, %v9352_v59  ;;  %v5394_v32 = vld [vmem:[%s8731_s29 + $0x40] sm:$0xff] }
 0x8a0   : > { %v3873_v63 = vadd.f32 0.0001, %v3871_v62 }
 0x8a2   : > { %8428 = vrsqrt.f32 %v3873_v63 }
 0x8af   : > { %v8429_v6 = vpop.eup %8428 }
 0x8b0   : > { %v3875_v8 = vmul.f32 %v8429_v6, %v3872_v5 }
 0x8b2   : > { %v3880_v10 = vmul.f32 %v3879_v3, %v3875_v8 }
 0x8b4   : > { %v9205_v13 = vadd.f32 %v3884_v9, %v3880_v10  ;;  %v5013_v9 = vand.u32 4294901760, %v9368_v2 }
 0x8b6   : > { %v9209_v14 = vmul.f32 %v8848_v54, %v9205_v13 }
 0x8b8   : > { %v3900_v15 = vsel %vm516_vm2, %v9209_v14, 0  ;;  %v3888_v33 = vrot.slane %v9209_v14, 7  ;;  %v4875_v62 = vrot.slane %v9209_v14, 1 }
 0x8b9   : > { %v9214_v17 = vand.u32 4294901760, %v3900_v15 }
 0x8ba   : > { %v3891_v56 = vsel %vm3890_vm7, 0.0, %v3888_v33  ;;  %v4878_v6 = vsel %vm4877_vm8, %v4875_v62, 0.0 }
 0x8bb   : > { %v3972_v19 = vsub.f32 %v3900_v15, %v9214_v17  ;;  %7818 = vmatmul.mubr.f32.vlgmr.msra.gmra.mxu1 %v9214_v17  ;;  %v4388_v51 = vsel %vm516_vm2, %v3891_v56, 0  ;;  %v4884_v15 = vsel %vm516_vm2, %v4878_v6, 0 }
 0x8bc   : > { %7832 = vmatpush3.msra.mxu1 %v9149_v36  ;;  %7839 = vmatprep.mubr.msk.f32.mxu1 %vm8546_vm3, %v8542_v11  ;;  %v9293_v48 = vand.u32 4294901760, %v4388_v51  ;;  %v9407_v0 = vand.u32 4294901760, %v4884_v15 }
 0x8bd   : > { %7833 = vmatprep.subr.mxu1 %v8542_v11  ;;  %v3973_v22 = vand.u32 4294901760, %v3972_v19 }
 0x8be   : > { %7834 = vmatpush3.msra.mxu1 %v9155_v37  ;;  %v4956_v4 = vsub.f32 %v4884_v15, %v9407_v0 }
 0x8bf   : > { %7835 = vmatprep.subr.mxu1 %v8542_v11  ;;  %v3974_v24 = vsub.f32 %v3972_v19, %v3973_v22 }
 0x8c0   : > { %7836 = vmatpush3.msra.mxu1 %v9164_v41 }
 0x8c1   : > { %7837 = vmatprep.subr.mxu1 %v8542_v11  ;;  %v3975_v27 = vand.u32 4294901760, %v3974_v24  ;;  %v5401_v24 = vld [vmem:[%s8731_s29 + $0x78] sm:$0xff] }
 0x8c2   : > { %7838 = vmatpush3.msra.mxu1 %v9176_v20 }
 0x8c3   : > { %7840 = vmatmul.mubr.f32.vlgmr.msra.gmra.mxu1 %v3973_v22  ;;  %7853 = vmatprep.subr.mxu1 %v8542_v11  ;;  %v4957_v22 = vand.u32 4294901760, %v4956_v4 }
 0x8c4   : > { %7807 = vmatmul.mubr.f32.vlgmr.msra.gmra.mxu0 %v3975_v27  ;;  %7854 = vmatpush3.msra.mxu1 %v9149_v36  ;;  %v4497_v36 = vsub.f32 %v9232_v25, %v4496_v30 }
 0x8c5   : > { %7821 = vmatpush3.msra.mxu0 %v9153_v1  ;;  %7855 = vmatprep.subr.mxu1 %v8542_v11  ;;  %v9304_v1 = vsub.f32 %v4388_v51, %v9293_v48 }
 0x8c6   : > { %7822 = vmatprep.subr.mxu0 %v8542_v11  ;;  %7856 = vmatpush3.msra.mxu1 %v9155_v37  ;;  %v4504_v37 = vsub.f32 %v9239_v28, %v4503_v34 }
 0x8c7   : > { %7823 = vmatpush3.msra.mxu0 %v9162_v39  ;;  %7857 = vmatprep.subr.mxu1 %v8542_v11  ;;  %v4882_v39 = vld [vmem:[%s8726_s4 + $0x58] sm:$0xff] }
 0x8c8   : > { %7824 = vmatprep.subr.mxu0 %v8542_v11  ;;  %7858 = vmatpush3.msra.mxu1 %v9164_v41  ;;  %v4498_v41 = vand.u32 4294901760, %v4497_v36  ;;  %v4505_v40 = vand.u32 4294901760, %v4504_v37  ;;  %v5397_v37 = vld [vmem:[%s8731_s29 + $0x58] sm:$0xff] }
 0x8c9   : > { %7825 = vmatpush3.msra.mxu0 %v9174_v45  ;;  %7859 = vmatprep.subr.mxu1 %v8542_v11  ;;  %v9324_v45 = vand.u32 4294901760, %v4882_v39 }
 0x8ca   : > { %7826 = vmatprep.subr.mxu0 %v8542_v11  ;;  %7828 = vmatprep.mubr.msk.f32.mxu0 %vm8546_vm3, %v8542_v11 }
 0x8cb   : > { %7827 = vmatpush3.msra.mxu0 %v9185_v47  ;;  %7860 = vmatpush3.msra.mxu1 %v9176_v20  ;;  %v4518_v20 = vsub.f32 %v9255_v35, %v4517_v42  ;;  %v4880_v47 = vld [vmem:[%s8726_s4 + $0x48] sm:$0xff]  ;;  %v9340_v53 = vsub.f32 %v4882_v39, %v9324_v45 }
 0x8cc   : > { %7861 = vmatprep.mubr.msk.f32.mxu1 %vm8546_vm3, %v8542_v11  ;;  %7829 = vmatmul.mubr.f32.vlgmr.msra.gmra.mxu0 %v3972_v19  ;;  %v9342_v55 = vand.u32 4294901760, %v4880_v47  ;;  %v5395_v39 = vld [vmem:[%s8731_s29 + $0x48] sm:$0xff] }
 0x8cd   : > { %7842 = vmatprep.subr.mxu0 %v8542_v11  ;;  %7862 = vmatmul.mubr.f32.vlgmr.msra.gmra.mxu1 %v9214_v17  ;;  %v4519_v52 = vand.u32 4294901760, %v4518_v20  ;;  %v4992_v60 = vand.u32 4294901760, %v9340_v53  ;;  %v5396_v20 = vld [vmem:[%s8731_s29 + $0x50] sm:$0xff] }
 0x8ce   : > { %7875 = vmatprep.subr.mxu1 %v8542_v11  ;;  %7843 = vmatpush3.msra.mxu0 %v4008_v38  ;;  %v4461_v38 = vand.u32 4294901760, %v9304_v1  ;;  %v9359_v61 = vsub.f32 %v4880_v47, %v9342_v55  ;;  %v9553_v47 = vand.u32 4294901760, %v5395_v39 }
 0x8cf   : > { %7876 = vmatpush3.msra.mxu1 %v4498_v41  ;;  %7844 = vmatprep.subr.mxu0 %v8542_v11  ;;  %v4993_v3 = vsub.f32 %v9340_v53, %v4992_v60 }
 0x8d0   : > { %7877 = vmatprep.subr.mxu1 %v8542_v11  ;;  %7845 = vmatpush3.msra.mxu0 %v4015_v44  ;;  %v4881_v44 = vld [vmem:[%s8726_s4 + $0x50] sm:$0xff]  ;;  %v5006_v5 = vand.u32 4294901760, %v9359_v61 }
 0x8d1   : > { %7878 = vmatpush3.msra.mxu1 %v4505_v40  ;;  %7846 = vmatprep.subr.mxu0 %v8542_v11  ;;  %v4994_v10 = vand.u32 4294901760, %v4993_v3  ;;  %v9531_v40 = vand.u32 4294901760, %v5397_v37 }
 0x8d2   : > { %7879 = vmatprep.subr.mxu1 %v8542_v11  ;;  %7847 = vmatpush3.msra.mxu0 %v4022_v46  ;;  %v4462_v46 = vsub.f32 %v9304_v1, %v4461_v38  ;;  %v5007_v14 = vsub.f32 %v9359_v61, %v5006_v5 }
 0x8d3   : > { %7880 = vmatpush3.msra.mxu1 %v4512_v49  ;;  %7848 = vmatprep.subr.mxu0 %v8542_v11 }
 0x8d4   : > { %7881 = vmatprep.subr.mxu1 %v8542_v11  ;;  %7849 = vmatpush3.msra.mxu0 %v4029_v50  ;;  %v9332_v50 = vand.u32 4294901760, %v4881_v44  ;;  %v4463_v57 = vand.u32 4294901760, %v4462_v46  ;;  %v5008_v19 = vand.u32 4294901760, %v5007_v14 }
 0x8d5   : > { %7850 = vmatprep.mubr.msk.f32.mxu0 %vm8546_vm3, %v8542_v11  ;;  %7882 = vmatpush3.msra.mxu1 %v4519_v52 }
 0x8d6   : > { %7883 = vmatprep.mubr.msk.f32.mxu1 %vm8546_vm3, %v8542_v11  ;;  %7851 = vmatmul.mubr.f32.vlgmr.msra.gmra.mxu0 %v9214_v17  ;;  %v9350_v58 = vsub.f32 %v4881_v44, %v9332_v50  ;;  %v5014_v17 = vsub.f32 %v9368_v2, %v5013_v9 }
 0x8d7   : > { %7864 = vmatprep.subr.mxu0 %v8542_v11  ;;  %7884 = vmatmul.mubr.f32.vlgmr.msra.gmra.mxu1 %v9293_v48 }
 0x8d8   : > { %7897 = vmatprep.subr.mxu1 %v8542_v11  ;;  %7865 = vmatpush3.msra.mxu0 %v9219_v21  ;;  %v4999_v63 = vand.u32 4294901760, %v9350_v58 }
 0x8d9   : > { %7898 = vmatpush3.msra.mxu1 %v9219_v21  ;;  %7866 = vmatprep.subr.mxu0 %v8542_v11 }
 0x8da   : > { %7899 = vmatprep.subr.mxu1 %v8542_v11  ;;  %7867 = vmatpush3.msra.mxu0 %v9226_v23  ;;  %v5000_v8 = vsub.f32 %v9350_v58, %v4999_v63 }
 0x8db   : > { %7900 = vmatpush3.msra.mxu1 %v9226_v23  ;;  %7868 = vmatprep.subr.mxu0 %v8542_v11 }
 0x8dc   : > { %7901 = vmatprep.subr.mxu1 %v8542_v11  ;;  %7869 = vmatpush3.msra.mxu0 %v9234_v26  ;;  %v5001_v16 = vand.u32 4294901760, %v5000_v8 }
 0x8dd   : > { %7902 = vmatpush3.msra.mxu1 %v9234_v26  ;;  %7870 = vmatprep.subr.mxu0 %v8542_v11 }
 0x8de   : > { %7903 = vmatprep.subr.mxu1 %v8542_v11  ;;  %7871 = vmatpush3.msra.mxu0 %v9241_v29 }
 0x8df   : > { %7872 = vmatprep.mubr.msk.f32.mxu0 %vm8546_vm3, %v8542_v11  ;;  %7904 = vmatpush3.msra.mxu1 %v9241_v29 }
 0x8e0   : > { %7905 = vmatprep.mubr.msk.f32.mxu1 %vm8546_vm3, %v8542_v11  ;;  %7873 = vmatmul.mubr.f32.vlgmr.msra.gmra.mxu0 %v4463_v57  ;;  %v9562_v57 = vsub.f32 %v5395_v39, %v9553_v47 }
 0x8e1   : > { %7886 = vmatprep.subr.mxu0 %v8542_v11  ;;  %7906 = vmatmul.mubr.f32.vlgmr.msra.gmra.mxu1 %v4461_v38  ;;  %v9543_v38 = vsub.f32 %v5397_v37, %v9531_v40 }
 0x8e2   : > { %7919 = vmatprep.subr.mxu1 %v8542_v11  ;;  %7887 = vmatpush3.msra.mxu0 %v9232_v25  ;;  %v9491_v25 = vand.u32 4294901760, %v5401_v24 }
 0x8e3   : > { %7920 = vmatpush3.msra.mxu1 %v9219_v21  ;;  %7888 = vmatprep.subr.mxu0 %v8542_v11  ;;  %v5015_v21 = vand.u32 4294901760, %v5014_v17 }
 0x8e4   : > { %7921 = vmatprep.subr.mxu1 %v8542_v11  ;;  %7889 = vmatpush3.msra.mxu0 %v9239_v28  ;;  %v9495_v27 = vsub.f32 %v5401_v24, %v9491_v25 }
 0x8e5   : > { %7922 = vmatpush3.msra.mxu1 %v9226_v23  ;;  %7890 = vmatprep.subr.mxu0 %v8542_v11  ;;  %v4958_v23 = vsub.f32 %v4956_v4, %v4957_v22 }
 0x8e6   : > { %7923 = vmatprep.subr.mxu1 %v8542_v11  ;;  %7891 = vmatpush3.msra.mxu0 %v9247_v31 }
 0x8e7   : > { %7924 = vmatpush3.msra.mxu1 %v9234_v26  ;;  %7892 = vmatprep.subr.mxu0 %v8542_v11  ;;  %v4959_v12 = vand.u32 4294901760, %v4958_v23  ;;  %v5400_v26 = vld [vmem:[%s8731_s29 + $0x70] sm:$0xff] }
 0x8e8   : > { %7925 = vmatprep.subr.mxu1 %v8542_v11  ;;  %7893 = vmatpush3.msra.mxu0 %v9255_v35  ;;  %v9497_v28 = vand.u32 4294901760, %v5400_v26 }
 0x8e9   : > { %7894 = vmatprep.mubr.msk.f32.mxu0 %vm8546_vm3, %v8542_v11  ;;  %7926 = vmatpush3.msra.mxu1 %v9241_v29  ;;  %v5399_v29 = vld [vmem:[%s8731_s29 + $0x68] sm:$0xff] }
 0x8ea   : > { %7927 = vmatprep.mubr.msk.f32.mxu1 %vm8546_vm3, %v8542_v11  ;;  %7895 = vmatmul.mubr.f32.vlgmr.msra.gmra.mxu0 %v9304_v1  ;;  %v9504_v31 = vsub.f32 %v5400_v26, %v9497_v28  ;;  %v9506_v33 = vand.u32 4294901760, %v5399_v29  ;;  %v9539_v1 = vand.u32 4294901760, %v5396_v20 }
 0x8eb   : > { %7908 = vmatprep.subr.mxu0 %v8542_v11  ;;  %7928 = vmatmul.mubr.f32.vlgmr.msra.gmra.mxu1 %v9293_v48 }
 0x8ec   : > { %7941 = vmatprep.subr.mxu1 %v8542_v11  ;;  %7909 = vmatpush3.msra.mxu0 %v4496_v30  ;;  %v5507_v30 = vand.u32 4294901760, %v9495_v27  ;;  %v5514_v36 = vand.u32 4294901760, %v9504_v31  ;;  %v9551_v46 = vsub.f32 %v5396_v20, %v9539_v1 }
 0x8ed   : > { %7942 = vmatpush3.msra.mxu1 %v4994_v10  ;;  %7910 = vmatprep.subr.mxu0 %v8542_v11 }
 0x8ee   : > { %7943 = vmatprep.subr.mxu1 %v8542_v11  ;;  %7911 = vmatpush3.msra.mxu0 %v4503_v34  ;;  %v5398_v34 = vld [vmem:[%s8731_s29 + $0x60] sm:$0xff]  ;;  %v5508_v35 = vsub.f32 %v9495_v27, %v5507_v30  ;;  %v5515_v41 = vsub.f32 %v9504_v31, %v5514_v36 }
 0x8ef   : > { %7944 = vmatpush3.msra.mxu1 %v5001_v16  ;;  %7912 = vmatprep.subr.mxu0 %v8542_v11  ;;  %v9518_v56 = vand.u32 4294901760, %v5398_v34 }
 0x8f0   : > { %7945 = vmatprep.subr.mxu1 %v8542_v11  ;;  %7913 = vmatpush3.msra.mxu0 %v4510_v7  ;;  %v9516_v7 = vsub.f32 %v5399_v29, %v9506_v33 }
 0x8f1   : > { %7946 = vmatpush3.msra.mxu1 %v5008_v19  ;;  %7914 = vmatprep.subr.mxu0 %v8542_v11  ;;  %v9528_v51 = vsub.f32 %v5398_v34, %v9518_v56 }
 0x8f2   : > { %7947 = vmatprep.subr.mxu1 %v8542_v11  ;;  %7915 = vmatpush3.msra.mxu0 %v4517_v42  ;;  %v5509_v42 = vand.u32 4294901760, %v5508_v35  ;;  %v5521_v43 = vand.u32 4294901760, %v9516_v7 }
 0x8f3   : > { %7916 = vmatprep.mubr.msk.f32.mxu0 %vm8546_vm3, %v8542_v11  ;;  %7948 = vmatpush3.msra.mxu1 %v5015_v21  ;;  %v5528_v52 = vand.u32 4294901760, %v9528_v51 }
 0x8f4   : > { %7949 = vmatprep.mubr.msk.f32.mxu1 %vm8546_vm3, %v8542_v11  ;;  %7917 = vmatmul.mubr.f32.vlgmr.msra.gmra.mxu0 %v9293_v48  ;;  %v5516_v48 = vand.u32 4294901760, %v5515_v41  ;;  %v5522_v49 = vsub.f32 %v9516_v7, %v5521_v43 }
 0x8f5   : > { %7930 = vmatprep.subr.mxu0 %v8542_v11  ;;  %7950 = vmatmul.mubr.f32.vlgmr.msra.gmra.mxu1 %v9407_v0 }
 0x8f6   : > { %7963 = vmatprep.subr.mxu1 %v8542_v11  ;;  %7931 = vmatpush3.msra.mxu0 %v9324_v45  ;;  %v5523_v44 = vand.u32 4294901760, %v5522_v49 }
 0x8f7   : > { %7964 = vmatpush3.msra.mxu1 %v9324_v45  ;;  %7932 = vmatprep.subr.mxu0 %v8542_v11 }
 0x8f8   : > { %7965 = vmatprep.subr.mxu1 %v8542_v11  ;;  %7933 = vmatpush3.msra.mxu0 %v9332_v50 }
 0x8f9   : > { %7966 = vmatpush3.msra.mxu1 %v9332_v50  ;;  %7934 = vmatprep.subr.mxu0 %v8542_v11 }
 0x8fa   : > { %7967 = vmatprep.subr.mxu1 %v8542_v11  ;;  %7935 = vmatpush3.msra.mxu0 %v9342_v55 }
 0x8fb   : > { %7968 = vmatpush3.msra.mxu1 %v9342_v55  ;;  %7936 = vmatprep.subr.mxu0 %v8542_v11 }
 0x8fc   : > { %7969 = vmatprep.subr.mxu1 %v8542_v11  ;;  %7937 = vmatpush3.msra.mxu0 %v9352_v59 }
 0x8fd   : > { %7938 = vmatprep.mubr.msk.f32.mxu0 %vm8546_vm3, %v8542_v11  ;;  %7970 = vmatpush3.msra.mxu1 %v9352_v59 }
 0x8fe   : > { %7971 = vmatprep.mubr.msk.f32.mxu1 %vm8546_vm3, %v8542_v11  ;;  %7939 = vmatmul.mubr.f32.vlgmr.msra.gmra.mxu0 %v4959_v12 }
 0x8ff   : > { %7952 = vmatprep.subr.mxu0 %v8542_v11  ;;  %7972 = vmatmul.mubr.f32.vlgmr.msra.gmra.mxu1 %v4957_v22 }
 0x900   : > { %7985 = vmatprep.subr.mxu1 %v8542_v11  ;;  %7953 = vmatpush3.msra.mxu0 %v9340_v53 }
 0x901   : > { %7986 = vmatpush3.msra.mxu1 %v9324_v45  ;;  %7954 = vmatprep.subr.mxu0 %v8542_v11  ;;  %v5529_v45 = vsub.f32 %v9528_v51, %v5528_v52 }
 0x902   : > { %7987 = vmatprep.subr.mxu1 %v8542_v11  ;;  %7955 = vmatpush3.msra.mxu0 %v9350_v58  ;;  %v9564_v58 = vand.u32 4294901760, %v5394_v32 }
 0x903   : > { %7988 = vmatpush3.msra.mxu1 %v9332_v50  ;;  %7956 = vmatprep.subr.mxu0 %v8542_v11  ;;  %v5535_v50 = vand.u32 4294901760, %v9543_v38  ;;  %v5530_v53 = vand.u32 4294901760, %v5529_v45 }
 0x904   : > { %7989 = vmatprep.subr.mxu1 %v8542_v11  ;;  %7957 = vmatpush3.msra.mxu0 %v9359_v61  ;;  %v5549_v61 = vand.u32 4294901760, %v9562_v57  ;;  %v9577_v62 = vsub.f32 %v5394_v32, %v9564_v58 }
 0x905   : > { %7990 = vmatpush3.msra.mxu1 %v9342_v55  ;;  %7958 = vmatprep.subr.mxu0 %v8542_v11  ;;  %v5542_v55 = vand.u32 4294901760, %v9551_v46 }
 0x906   : > { %7991 = vmatprep.subr.mxu1 %v8542_v11  ;;  %7959 = vmatpush3.msra.mxu0 %v9368_v2  ;;  %v5550_v3 = vsub.f32 %v9562_v57, %v5549_v61 }
 0x907   : > { %7960 = vmatprep.mubr.msk.f32.mxu0 %vm8546_vm3, %v8542_v11  ;;  %7992 = vmatpush3.msra.mxu1 %v9352_v59  ;;  %v5536_v59 = vsub.f32 %v9543_v38, %v5535_v50 }
 0x908   : > { %7993 = vmatprep.mubr.msk.f32.mxu1 %vm8546_vm3, %v8542_v11  ;;  %7961 = vmatmul.mubr.f32.vlgmr.msra.gmra.mxu0 %v4956_v4  ;;  %v5551_v6 = vand.u32 4294901760, %v5550_v3 }
 0x909   : > { %7974 = vmatprep.subr.mxu0 %v8542_v11  ;;  %7994 = vmatmul.mubr.f32.vlgmr.msra.gmra.mxu1 %v9407_v0 }
 0x90a   : > { %7975 = vmatpush3.msra.mxu0 %v4992_v60  ;;  %7982 = vmatprep.mubr.msk.f32.mxu0 %vm8546_vm3, %v8542_v11  ;;  %v5543_v60 = vsub.f32 %v9551_v46, %v5542_v55 }
 0x90b   : > { %7976 = vmatprep.subr.mxu0 %v8542_v11  ;;  %8015 = vmatprep.subr.mxu1 %v8542_v11 }
 0x90c   : > { %7977 = vmatpush3.msra.mxu0 %v4999_v63  ;;  %8031 = vmatprep.mubr.msk.f32.mxu1 %vm8546_vm3, %v8542_v11  ;;  %v5537_v63 = vand.u32 4294901760, %v5536_v59  ;;  %v5544_v2 = vand.u32 4294901760, %v5543_v60 }
 0x90d   : > { %7978 = vmatprep.subr.mxu0 %v8542_v11  ;;  %8016 = vmatpush3.msra.mxu1 %v5509_v42 }
 0x90e   : > { %7979 = vmatpush3.msra.mxu0 %v5006_v5  ;;  %8017 = vmatprep.subr.mxu1 %v8542_v11  ;;  %v5556_v5 = vand.u32 4294901760, %v9577_v62 }
 0x90f   : > { %7980 = vmatprep.subr.mxu0 %v8542_v11  ;;  %8018 = vmatpush3.msra.mxu1 %v5516_v48 }
 0x910   : > { %7981 = vmatpush3.msra.mxu0 %v5013_v9  ;;  %8019 = vmatprep.subr.mxu1 %v8542_v11  ;;  %v5557_v8 = vsub.f32 %v9577_v62, %v5556_v5 }
 0x911   : > { %7983 = vmatmul.mubr.f32.vlgmr.msra.gmra.mxu0 %v9407_v0  ;;  %7996 = vmatprep.subr.mxu0 %v8542_v11 }
 0x912   : > { %8012 = vmatprep.mubr.msk.f32.mxu0 %vm8546_vm3, %v8542_v11  ;;  %7997 = vmatpush3.msra.mxu0 %v9491_v25  ;;  %v5558_v9 = vand.u32 4294901760, %v5557_v8 }
 0x913   : > { %7998 = vmatprep.subr.mxu0 %v8542_v11  ;;  %8020 = vmatpush3.msra.mxu1 %v5523_v44 }
 0x914   : > { %7999 = vmatpush3.msra.mxu0 %v9497_v28  ;;  %8021 = vmatprep.subr.mxu1 %v8542_v11 }
 0x915   : > { %8000 = vmatprep.subr.mxu0 %v8542_v11  ;;  %8022 = vmatpush3.msra.mxu1 %v5530_v53 }
 0x916   : > { %8001 = vmatpush3.msra.mxu0 %v9506_v33  ;;  %8023 = vmatprep.subr.mxu1 %v8542_v11 }
 0x917   : > { %8002 = vmatprep.subr.mxu0 %v8542_v11  ;;  %8024 = vmatpush3.msra.mxu1 %v5537_v63 }
 0x918   : > { %8003 = vmatpush3.msra.mxu0 %v9518_v56  ;;  %8025 = vmatprep.subr.mxu1 %v8542_v11 }
 0x919   : > { %8004 = vmatprep.subr.mxu0 %v8542_v11  ;;  %8026 = vmatpush3.msra.mxu1 %v5544_v2 }
 0x91a   : > { %8005 = vmatpush3.msra.mxu0 %v9531_v40  ;;  %8027 = vmatprep.subr.mxu1 %v8542_v11 }
 0x91b   : > { %8006 = vmatprep.subr.mxu0 %v8542_v11  ;;  %8028 = vmatpush3.msra.mxu1 %v5551_v6 }
 0x91c   : > { %8007 = vmatpush3.msra.mxu0 %v9539_v1  ;;  %8029 = vmatprep.subr.mxu1 %v8542_v11 }
 0x91d   : > { %8008 = vmatprep.subr.mxu0 %v8542_v11  ;;  %8030 = vmatpush3.msra.mxu1 %v5558_v9 }
 0x91e   : > { %8009 = vmatpush3.msra.mxu0 %v9553_v47  ;;  %8053 = vmatprep.subr.mxu1 %v8542_v11 }
 0x91f   : > { %8010 = vmatprep.subr.mxu0 %v8542_v11 }
 0x920   : > { %8011 = vmatpush3.msra.mxu0 %v9564_v58 }
 0x921   : > { %8034 = vmatprep.subr.mxu0 %v8542_v11 }
 0x97b   : > { %v4068_v10 = vpop.f32.mrf.mxu1 }
 0x97d   : > { %v7819_v14 = vpop.f32.mrf.mxu1 }
 0x983   : > { %v4225_v15 = vpop.f32.mrf.mxu1 }
 0x984   : > { %v3977_v16 = vpop.f32.mrf.mxu0 }
 0x985   : > { %v7841_v17 = vpop.f32.mrf.mxu1  ;;  %v4069_v19 = vadd.f32 %v4068_v10, %v3977_v16 }
 0x986   : > { %v7808_v0 = vpop.f32.mrf.mxu0 }
 0x98c   : > { %v4148_v21 = vpop.f32.mrf.mxu0 }
 0x98d   : > { %v4149_v4 = vadd.f32 %v4148_v21, %v4069_v19  ;;  %v4383_v22 = vpop.f32.mrf.mxu1 }
 0x98e   : > { %v7830_v23 = vpop.f32.mrf.mxu0 }
 0x98f   : > { %v7863_v12 = vpop.f32.mrf.mxu1  ;;  %v4226_v24 = vadd.f32 %v4225_v15, %v4149_v4 }
 0x996   : > { %v4308_v26 = vpop.f32.mrf.mxu0 }
 0x997   : > { %v4556_v29 = vpop.f32.mrf.mxu1  ;;  %v4309_v60 = vadd.f32 %v4308_v26, %v4226_v24 }
 0x998   : > { %v7852_v34 = vpop.f32.mrf.mxu0 }
 0x999   : > { %v7885_v35 = vpop.f32.mrf.mxu1  ;;  %v4384_v8 = vadd.f32 %v4383_v22, %v4309_v60  ;;  %v7251_v22 = vld [vmem:[%s469_s3] ss:$0 sm:$0xff]  ;;  %s7253_s3 = sshll.u32 %s8527_s21, 7 }
 0x99a   : > { %s7080_s0 = scalar_lea.hbm %s10198_s14, %s7253_s3 }
 0x9a0   : > { %v4465_v37 = vpop.f32.mrf.mxu0 }
 0x9a1   : > { %v4713_v42 = vpop.f32.mrf.mxu1  ;;  %v4466_v9 = vadd.f32 %v4465_v37, %v4384_v8 }
 0x9a2   : > { %v7874_v41 = vpop.f32.mrf.mxu0 }
 0x9a3   : > { %v7907_v20 = vpop.f32.mrf.mxu1  ;;  %v4557_v10 = vadd.f32 %v4556_v29, %v4466_v9  ;;  %v5390_v9 = vld [vmem:[%s8731_s29 + $0x20] sm:$0xff] }
 0x9aa   : > { %v4636_v48 = vpop.f32.mrf.mxu0 }
 0x9ab   : > { %v4871_v49 = vpop.f32.mrf.mxu1  ;;  %v4637_v16 = vadd.f32 %v4636_v48, %v4557_v10 }
 0x9ac   : > { %v7896_v39 = vpop.f32.mrf.mxu0 }
 0x9ad   : > { %v7929_v44 = vpop.f32.mrf.mxu1  ;;  %v4714_v4 = vadd.f32 %v4713_v42, %v4637_v16 }
 0x9b4   : > { %v4796_v45 = vpop.f32.mrf.mxu0 }
 0x9b5   : > { %v5052_v32 = vpop.f32.mrf.mxu1  ;;  %v4797_v23 = vadd.f32 %v4796_v45, %v4714_v4 }
 0x9b6   : > { %v7918_v53 = vpop.f32.mrf.mxu0 }
 0x9b7   : > { %v7951_v59 = vpop.f32.mrf.mxu1  ;;  %v4872_v35 = vadd.f32 %v4871_v49, %v4797_v23  ;;  %v5386_v23 = vld [vmem:[%s8731_s29] sm:$0xff] }
 0x9be   : > { %v4961_v63 = vpop.f32.mrf.mxu0 }
 0x9bf   : > { %v5209_v2 = vpop.f32.mrf.mxu1  ;;  %v5053_v17 = vadd.f32 %v5052_v32, %v4961_v63  ;;  %v5393_v63 = vld [vmem:[%s8731_s29 + $0x38] sm:$0xff] }
 0x9c0   : > { %v7940_v3 = vpop.f32.mrf.mxu0 }
 0x9c1   : > { %v7973_v6 = vpop.f32.mrf.mxu1  ;;  %v9640_v3 = vand.u32 4294901760, %v5393_v63 }
 0x9c2   : > { %v5391_v6 = vld [vmem:[%s8731_s29 + $0x28] sm:$0xff] }
 0x9c3   : > { %v9655_v10 = vsub.f32 %v5393_v63, %v9640_v3  ;;  %v6490_v63 = vld [vmem:[%s8731_s29 + $0xa8] sm:$0xff] }
 0x9c8   : > { %v5132_v14 = vpop.f32.mrf.mxu0 }
 0x9c9   : > { %v5367_v15 = vpop.f32.mrf.mxu1  ;;  %v5133_v21 = vadd.f32 %v5132_v14, %v5053_v17  ;;  %v9657_v14 = vand.u32 4294901760, %v5391_v6  ;;  %v5388_v17 = vld [vmem:[%s8731_s29 + $0x10] sm:$0xff] }
 0x9ca   : > { %v7962_v0 = vpop.f32.mrf.mxu0  ;;  %v9692_v4 = vand.u32 4294901760, %v5388_v17 }
 0x9cb   : > { %v7995_v19 = vpop.f32.mrf.mxu1  ;;  %v5210_v12 = vadd.f32 %v5209_v2, %v5133_v21  ;;  %v5392_v2 = vld [vmem:[%s8731_s29 + $0x30] sm:$0xff]  ;;  %v9676_v16 = vsub.f32 %v5391_v6, %v9657_v14  ;;  %v5387_v21 = vld [vmem:[%s8731_s29 + $0x8] sm:$0xff]  ;;  %v6489_v6 = vld [vmem:[%s8731_s29 + $0xa0] sm:$0xff] }
 0x9cc   : > { %v9647_v8 = vand.u32 4294901760, %v5392_v2 }
 0x9d1   : > { %v5292_v34 = vpop.f32.mrf.mxu0 }
 0x9d2   : > { %v5293_v24 = vadd.f32 %v5292_v34, %v5210_v12  ;;  %v9707_v12 = vand.u32 4294901760, %v5387_v21  ;;  %v9721_v34 = vand.u32 4294901760, %v5386_v23 }
 0x9d3   : > { %v7984_v26 = vpop.f32.mrf.mxu0 }
 0x9d4   : > { %v5368_v41 = vadd.f32 %v5367_v15, %v5293_v24  ;;  %v5389_v15 = vld [vmem:[%s8731_s29 + $0x18] sm:$0xff]  ;;  %v9734_v24 = vsub.f32 %v5387_v21, %v9707_v12 }
 0x9d5   : > { %v9680_v0 = vand.u32 4294901760, %v5389_v15 }
 0x9d6   : > { %v5371_v29 = vadd.f32 %v5368_v41, %v4872_v35  ;;  %v9747_v35 = vsub.f32 %v5386_v23, %v9721_v34 }
 0x9d8   : > { %v5379_v37 = vadd.f32 %v7251_v22, %v5371_v29 }
 0x9da   : > { %v5380_v20 = vmax.f32 %v5379_v37, 0.0 }
 0x9dc   : > { %v9600_v48 = vmul.f32 %v8848_v54, %v5380_v20 }
 0x9de   : > { %v5403_v42 = vsel %vm5402_vm9, %v9600_v48, 0  ;;  %v6482_v39 = vrot.slane %v9600_v48, 1  ;;  %v5383_v26 = vrot.slane %v9600_v48, 7 }
 0x9df   : > { %v9605_v44 = vand.u32 4294901760, %v5403_v42 }
 0x9e0   : > { %v6484_v49 = vsel %vm4877_vm8, %v6482_v39, 0.0 }
 0x9e1   : > { %v5479_v45 = vsub.f32 %v5403_v42, %v9605_v44  ;;  %8032 = vmatmul.mubr.f32.vlgmr.msra.gmra.mxu1 %v9605_v44  ;;  %v9611_v32 = vsel %vm5402_vm9, %v6484_v49, 0 }
 0x9e2   : > { %8054 = vmatpush3.msra.mxu1 %v9491_v25  ;;  %8069 = vmatprep.mubr.msk.f32.mxu1 %vm8546_vm3, %v8542_v11 }
 0x9e3   : > { %8055 = vmatprep.subr.mxu1 %v8542_v11  ;;  %v5480_v53 = vand.u32 4294901760, %v5479_v45 }
 0x9e4   : > { %8056 = vmatpush3.msra.mxu1 %v9497_v28 }
 0x9e5   : > { %8057 = vmatprep.subr.mxu1 %v8542_v11  ;;  %v5481_v59 = vsub.f32 %v5479_v45, %v5480_v53 }
 0x9e6   : > { %8058 = vmatpush3.msra.mxu1 %v9506_v33 }
 0x9e7   : > { %8059 = vmatprep.subr.mxu1 %v8542_v11  ;;  %v5482_v60 = vand.u32 4294901760, %v5481_v59  ;;  %v6491_v59 = vld [vmem:[%s8731_s29 + $0xb0] sm:$0xff] }
 0x9e8   : > { %8060 = vmatpush3.msra.mxu1 %v9518_v56 }
 0x9e9   : > { %8061 = vmatprep.subr.mxu1 %v8542_v11  ;;  %8013 = vmatmul.mubr.f32.vlgmr.msra.gmra.mxu0 %v5482_v60 }
 0x9ea   : > { %8035 = vmatpush3.msra.mxu0 %v9495_v27  ;;  %8062 = vmatpush3.msra.mxu1 %v9531_v40 }
 0x9eb   : > { %8036 = vmatprep.subr.mxu0 %v8542_v11  ;;  %8063 = vmatprep.subr.mxu1 %v8542_v11 }
 0x9ec   : > { %8037 = vmatpush3.msra.mxu0 %v9504_v31  ;;  %8064 = vmatpush3.msra.mxu1 %v9539_v1 }
 0x9ed   : > { %8038 = vmatprep.subr.mxu0 %v8542_v11  ;;  %8065 = vmatprep.subr.mxu1 %v8542_v11 }
 0x9ee   : > { %8039 = vmatpush3.msra.mxu0 %v9516_v7  ;;  %8066 = vmatpush3.msra.mxu1 %v9553_v47 }
 0x9ef   : > { %8040 = vmatprep.subr.mxu0 %v8542_v11  ;;  %8067 = vmatprep.subr.mxu1 %v8542_v11 }
 0x9f0   : > { %8041 = vmatpush3.msra.mxu0 %v9528_v51  ;;  %8068 = vmatpush3.msra.mxu1 %v9564_v58 }
 0x9f1   : > { %8042 = vmatprep.subr.mxu0 %v8542_v11  ;;  %8070 = vmatmul.mubr.f32.vlgmr.msra.gmra.mxu1 %v5480_v53  ;;  %v6492_v53 = vld [vmem:[%s8731_s29 + $0xb8] sm:$0xff] }
 0x9f2   : > { %8091 = vmatprep.subr.mxu1 %v8542_v11  ;;  %8043 = vmatpush3.msra.mxu0 %v9543_v38  ;;  %v6089_v38 = vand.u32 4294901760, %v9734_v24  ;;  %v9841_v60 = vand.u32 4294901760, %v6492_v53 }
 0x9f3   : > { %8092 = vmatpush3.msra.mxu1 %v9491_v25  ;;  %8044 = vmatprep.subr.mxu0 %v8542_v11  ;;  %v9664_v25 = vsub.f32 %v5392_v2, %v9647_v8  ;;  %v9848_v2 = vand.u32 4294901760, %v6491_v59 }
 0x9f4   : > { %8093 = vmatprep.subr.mxu1 %v8542_v11  ;;  %8045 = vmatpush3.msra.mxu0 %v9551_v46 }
 0x9f5   : > { %8094 = vmatpush3.msra.mxu1 %v9497_v28  ;;  %8046 = vmatprep.subr.mxu0 %v8542_v11  ;;  %v9666_v28 = vand.u32 4294901760, %v5390_v9  ;;  %v6054_v19 = vand.u32 4294901760, %v9664_v25 }
 0x9f6   : > { %8095 = vmatprep.subr.mxu1 %v8542_v11  ;;  %8047 = vmatpush3.msra.mxu0 %v9562_v57  ;;  %v6090_v57 = vsub.f32 %v9734_v24, %v6089_v38 }
 0x9f7   : > { %8096 = vmatpush3.msra.mxu1 %v9506_v33  ;;  %8048 = vmatprep.subr.mxu0 %v8542_v11  ;;  %v6047_v33 = vand.u32 4294901760, %v9655_v10  ;;  %v6055_v31 = vsub.f32 %v9664_v25, %v6054_v19 }
 0x9f8   : > { %8097 = vmatprep.subr.mxu1 %v8542_v11  ;;  %8049 = vmatpush3.msra.mxu0 %v9577_v62 }
 0x9f9   : > { %8050 = vmatprep.mubr.msk.f32.mxu0 %vm8546_vm3, %v8542_v11  ;;  %8098 = vmatpush3.msra.mxu1 %v9518_v56  ;;  %v9687_v56 = vsub.f32 %v5390_v9, %v9666_v28  ;;  %v6048_v27 = vsub.f32 %v9655_v10, %v6047_v33  ;;  %v6056_v51 = vand.u32 4294901760, %v6055_v31  ;;  %v9856_v9 = vsub.f32 %v6492_v53, %v9841_v60 }
 0x9fa   : > { %8051 = vmatmul.mubr.f32.vlgmr.msra.gmra.mxu0 %v5479_v45  ;;  %8072 = vmatprep.subr.mxu0 %v8542_v11 }
 0x9fb   : > { %8099 = vmatprep.subr.mxu1 %v8542_v11  ;;  %8073 = vmatpush3.msra.mxu0 %v5507_v30  ;;  %v6061_v30 = vand.u32 4294901760, %v9676_v16  ;;  %v6049_v7 = vand.u32 4294901760, %v6048_v27  ;;  %v6487_v27 = vld [vmem:[%s8731_s29 + $0x90] sm:$0xff] }
 0x9fc   : > { %8100 = vmatpush3.msra.mxu1 %v9531_v40  ;;  %8074 = vmatprep.subr.mxu0 %v8542_v11  ;;  %v9705_v40 = vsub.f32 %v5389_v15, %v9680_v0  ;;  %v9858_v15 = vand.u32 4294901760, %v6490_v63 }
 0x9fd   : > { %8101 = vmatprep.subr.mxu1 %v8542_v11  ;;  %8075 = vmatpush3.msra.mxu0 %v5514_v36  ;;  %v6068_v36 = vand.u32 4294901760, %v9687_v56 }
 0x9fe   : > { %8102 = vmatpush3.msra.mxu1 %v9539_v1  ;;  %8076 = vmatprep.subr.mxu0 %v8542_v11  ;;  %v9719_v1 = vsub.f32 %v5388_v17, %v9692_v4  ;;  %v6488_v17 = vld [vmem:[%s8731_s29 + $0x98] sm:$0xff]  ;;  %v9877_v21 = vsub.f32 %v6490_v63, %v9858_v15 }
 0x9ff   : > { %8103 = vmatprep.subr.mxu1 %v8542_v11  ;;  %8077 = vmatpush3.msra.mxu0 %v5521_v43  ;;  %v6062_v43 = vsub.f32 %v9676_v16, %v6061_v30  ;;  %v9882_v23 = vand.u32 4294901760, %v6488_v17 }
 0xa00   : > { %8104 = vmatpush3.msra.mxu1 %v9553_v47  ;;  %8078 = vmatprep.subr.mxu0 %v8542_v11  ;;  %v6075_v47 = vand.u32 4294901760, %v9705_v40 }
 0xa01   : > { %8105 = vmatprep.subr.mxu1 %v8542_v11  ;;  %8079 = vmatpush3.msra.mxu0 %v5528_v52  ;;  %v6069_v52 = vsub.f32 %v9687_v56, %v6068_v36  ;;  %v6063_v41 = vand.u32 4294901760, %v6062_v43  ;;  %v9894_v43 = vand.u32 4294901760, %v6487_v27 }
 0xa02   : > { %8106 = vmatpush3.msra.mxu1 %v9564_v58  ;;  %8107 = vmatprep.mubr.msk.f32.mxu1 %vm8546_vm3, %v8542_v11  ;;  %v6082_v58 = vand.u32 4294901760, %v9719_v1  ;;  %v6076_v22 = vsub.f32 %v9705_v40, %v6075_v47 }
 0xa03   : > { %8080 = vmatprep.subr.mxu0 %v8542_v11  ;;  %8108 = vmatmul.mubr.f32.vlgmr.msra.gmra.mxu1 %v9605_v44  ;;  %v6070_v29 = vand.u32 4294901760, %v6069_v52 }
 0xa04   : > { %8129 = vmatprep.subr.mxu1 %v8542_v11  ;;  %8081 = vmatpush3.msra.mxu0 %v5535_v50  ;;  %v5385_v50 = vsel %vm3890_vm7, 0.0, %v5383_v26  ;;  %v6083_v46 = vsub.f32 %v9719_v1, %v6082_v58  ;;  %v6077_v20 = vand.u32 4294901760, %v6076_v22  ;;  %v6485_v26 = vld [vmem:[%s8731_s29 + $0x80] sm:$0xff] }
 0xa05   : > { %8130 = vmatpush3.msra.mxu1 %v6049_v7  ;;  %8082 = vmatprep.subr.mxu0 %v8542_v11  ;;  %v5943_v37 = vsel %vm5402_vm9, %v5385_v50, 0  ;;  %v6486_v7 = vld [vmem:[%s8731_s29 + $0x88] sm:$0xff]  ;;  %v9923_v52 = vand.u32 4294901760, %v6485_v26  ;;  %s8449_s29 = sshll.u32 %s8550_s24, 4  ;;  %s8450_s29 = int_to_ptr.vmem [resolvable:$false] %s8449_s29 }
 0xa06   : > { %8131 = vmatprep.subr.mxu1 %v8542_v11  ;;  %8083 = vmatpush3.msra.mxu0 %v5542_v55  ;;  %v6096_v55 = vand.u32 4294901760, %v9747_v35  ;;  %v9781_v62 = vand.u32 4294901760, %v5943_v37  ;;  %s8451_s21 = scalar_lea.vmem %s8450_s29, 256  ;;  %p8452_p10 = scmp.lt.s32.totalorder %s7083_s25, %s8450_s29 }
 0xa07   : > { %8132 = vmatpush3.msra.mxu1 %v6056_v51  ;;  %8084 = vmatprep.subr.mxu0 %v8542_v11  ;;  %v9909_v51 = vand.u32 4294901760, %v6486_v7  ;;  %v9948_v22 = vsub.f32 %v6485_v26, %v9923_v52  ;;  %p8453_p11 = scmp.lt.s32.totalorder %s8451_s21, %s8445_s10 }
 0xa08   : > { %8133 = vmatprep.subr.mxu1 %v8542_v11  ;;  %8085 = vmatpush3.msra.mxu0 %v5549_v61  ;;  %v6084_v61 = vand.u32 4294901760, %v6083_v46  ;;  %v6097_v48 = vsub.f32 %v9747_v35, %v6096_v55  ;;  %v9790_v39 = vsub.f32 %v5943_v37, %v9781_v62 }
 0xa09   : > { %8134 = vmatpush3.msra.mxu1 %v6063_v41  ;;  %8086 = vmatprep.subr.mxu0 %v8542_v11  ;;  %v9936_v41 = vsub.f32 %v6486_v7, %v9909_v51  ;;  %p8454_p12 = por %p8453_p11, %p8452_p10 }
 0xa0a   : > { %8135 = vmatprep.subr.mxu1 %v8542_v11  ;;  %8087 = vmatpush3.msra.mxu0 %v5556_v5  ;;  %v6091_v5 = vand.u32 4294901760, %v6090_v57  ;;  %v6098_v42 = vand.u32 4294901760, %v6097_v48 }
 0xa0b   : > { %8088 = vmatprep.mubr.msk.f32.mxu0 %vm8546_vm3, %v8542_v11  ;;  %8136 = vmatpush3.msra.mxu1 %v6070_v29  ;;  %p8455_p13 = pnand %p8454_p12, %p8448_p9 }
 0xa0c   : > { %8089 = vmatmul.mubr.f32.vlgmr.msra.gmra.mxu0 %v9605_v44  ;;  %8110 = vmatprep.subr.mxu0 %v8542_v11  ;;  %v6020_v44 = vand.u32 4294901760, %v9790_v39 }
 0xa0d   : > { %8137 = vmatprep.subr.mxu1 %v8542_v11  ;;  %8111 = vmatpush3.msra.mxu0 %v9640_v3 }
 0xa0e   : > { %8138 = vmatpush3.msra.mxu1 %v6077_v20  ;;  %8112 = vmatprep.subr.mxu0 %v8542_v11  ;;  %v6021_v49 = vsub.f32 %v9790_v39, %v6020_v44 }
 0xa0f   : > { %8139 = vmatprep.subr.mxu1 %v8542_v11  ;;  %8113 = vmatpush3.msra.mxu0 %v9647_v8 }
 0xa10   : > { %8140 = vmatpush3.msra.mxu1 %v6084_v61  ;;  %8114 = vmatprep.subr.mxu0 %v8542_v11  ;;  %v6022_v45 = vand.u32 4294901760, %v6021_v49 }
 0xa11   : > { %8141 = vmatprep.subr.mxu1 %v8542_v11  ;;  %8115 = vmatpush3.msra.mxu0 %v9657_v14 }
 0xa12   : > { %8142 = vmatpush3.msra.mxu1 %v6091_v5  ;;  %8116 = vmatprep.subr.mxu0 %v8542_v11 }
 0xa13   : > { %8143 = vmatprep.subr.mxu1 %v8542_v11  ;;  %8117 = vmatpush3.msra.mxu0 %v9666_v28 }
 0xa14   : > { %8144 = vmatpush3.msra.mxu1 %v6098_v42  ;;  %8145 = vmatprep.mubr.msk.f32.mxu1 %vm8546_vm3, %v8542_v11 }
 0xa15   : > { %8118 = vmatprep.subr.mxu0 %v8542_v11  ;;  %8146 = vmatmul.mubr.f32.vlgmr.msra.gmra.mxu1 %v9781_v62 }
 0xa16   : > { %8167 = vmatprep.subr.mxu1 %v8542_v11  ;;  %8119 = vmatpush3.msra.mxu0 %v9680_v0 }
 0xa17   : > { %8168 = vmatpush3.msra.mxu1 %v9640_v3  ;;  %8120 = vmatprep.subr.mxu0 %v8542_v11 }
 0xa18   : > { %8169 = vmatprep.subr.mxu1 %v8542_v11  ;;  %8121 = vmatpush3.msra.mxu0 %v9692_v4 }
 0xa19   : > { %8170 = vmatpush3.msra.mxu1 %v9647_v8  ;;  %8122 = vmatprep.subr.mxu0 %v8542_v11 }
 0xa1a   : > { %8171 = vmatprep.subr.mxu1 %v8542_v11  ;;  %8123 = vmatpush3.msra.mxu0 %v9707_v12 }
 0xa1b   : > { %8172 = vmatpush3.msra.mxu1 %v9657_v14  ;;  %8124 = vmatprep.subr.mxu0 %v8542_v11 }
 0xa1c   : > { %8173 = vmatprep.subr.mxu1 %v8542_v11  ;;  %8125 = vmatpush3.msra.mxu0 %v9721_v34 }
 0xa1d   : > { %8126 = vmatprep.mubr.msk.f32.mxu0 %vm8546_vm3, %v8542_v11  ;;  %8174 = vmatpush3.msra.mxu1 %v9666_v28 }
 0xa1e   : > { %8127 = vmatmul.mubr.f32.vlgmr.msra.gmra.mxu0 %v6022_v45  ;;  %8148 = vmatprep.subr.mxu0 %v8542_v11 }
 0xa1f   : > { %8175 = vmatprep.subr.mxu1 %v8542_v11  ;;  %8149 = vmatpush3.msra.mxu0 %v9655_v10 }
 0xa20   : > { %8176 = vmatpush3.msra.mxu1 %v9680_v0  ;;  %8150 = vmatprep.subr.mxu0 %v8542_v11 }
 0xa21   : > { %8177 = vmatprep.subr.mxu1 %v8542_v11  ;;  %8151 = vmatpush3.msra.mxu0 %v9664_v25 }
 0xa22   : > { %8178 = vmatpush3.msra.mxu1 %v9692_v4  ;;  %8152 = vmatprep.subr.mxu0 %v8542_v11 }
 0xa23   : > { %8179 = vmatprep.subr.mxu1 %v8542_v11  ;;  %8153 = vmatpush3.msra.mxu0 %v9676_v16 }
 0xa24   : > { %8180 = vmatpush3.msra.mxu1 %v9707_v12  ;;  %8154 = vmatprep.subr.mxu0 %v8542_v11 }
 0xa25   : > { %8181 = vmatprep.subr.mxu1 %v8542_v11  ;;  %8155 = vmatpush3.msra.mxu0 %v9687_v56 }
 0xa26   : > { %8182 = vmatpush3.msra.mxu1 %v9721_v34  ;;  %8183 = vmatprep.mubr.msk.f32.mxu1 %vm8546_vm3, %v8542_v11 }
 0xa27   : > { %8156 = vmatprep.subr.mxu0 %v8542_v11  ;;  %8184 = vmatmul.mubr.f32.vlgmr.msra.gmra.mxu1 %v6020_v44 }
 0xa28   : > { %8205 = vmatprep.subr.mxu1 %v8542_v11  ;;  %8157 = vmatpush3.msra.mxu0 %v9705_v40  ;;  %v6640_v40 = vand.u32 4294901760, %v9936_v41 }
 0xa29   : > { %8206 = vmatpush3.msra.mxu1 %v9640_v3  ;;  %8158 = vmatprep.subr.mxu0 %v8542_v11  ;;  %v9865_v3 = vsub.f32 %v6491_v59, %v9848_v2 }
 0xa2a   : > { %8207 = vmatprep.subr.mxu1 %v8542_v11  ;;  %8159 = vmatpush3.msra.mxu0 %v9719_v1 }
 0xa2b   : > { %8208 = vmatpush3.msra.mxu1 %v9647_v8  ;;  %8160 = vmatprep.subr.mxu0 %v8542_v11  ;;  %v9867_v8 = vand.u32 4294901760, %v6489_v6 }
 0xa2c   : > { %8209 = vmatprep.subr.mxu1 %v8542_v11  ;;  %8161 = vmatpush3.msra.mxu0 %v9734_v24  ;;  %v6641_v24 = vsub.f32 %v9936_v41, %v6640_v40 }
 0xa2d   : > { %8210 = vmatpush3.msra.mxu1 %v9657_v14  ;;  %8162 = vmatprep.subr.mxu0 %v8542_v11  ;;  %v6598_v14 = vand.u32 4294901760, %v9856_v9  ;;  %v9889_v31 = vsub.f32 %v6489_v6, %v9867_v8 }
 0xa2e   : > { %8211 = vmatprep.subr.mxu1 %v8542_v11  ;;  %8163 = vmatpush3.msra.mxu0 %v9747_v35  ;;  %v9981_v35 = vand.u32 4294901760, %v9611_v32 }
 0xa2f   : > { %8164 = vmatprep.mubr.msk.f32.mxu0 %vm8546_vm3, %v8542_v11  ;;  %8212 = vmatpush3.msra.mxu1 %v9666_v28  ;;  %v6605_v28 = vand.u32 4294901760, %v9865_v3  ;;  %v6599_v10 = vsub.f32 %v9856_v9, %v6598_v14 }
 0xa30   : > { %8165 = vmatmul.mubr.f32.vlgmr.msra.gmra.mxu0 %v9790_v39  ;;  %8186 = vmatprep.subr.mxu0 %v8542_v11  ;;  %v9991_v57 = vsub.f32 %v9611_v32, %v9981_v35 }
 0xa31   : > { %8213 = vmatprep.subr.mxu1 %v8542_v11  ;;  %8187 = vmatpush3.msra.mxu0 %v6047_v33  ;;  %v6612_v33 = vand.u32 4294901760, %v9877_v21  ;;  %v6606_v25 = vsub.f32 %v9865_v3, %v6605_v28  ;;  %v6600_v16 = vand.u32 4294901760, %v6599_v10 }
 0xa32   : > { %8214 = vmatpush3.msra.mxu1 %v9680_v0  ;;  %8188 = vmatprep.subr.mxu0 %v8542_v11  ;;  %v9907_v0 = vsub.f32 %v6488_v17, %v9882_v23  ;;  %v6571_v61 = vand.u32 4294901760, %v9991_v57 }
 0xa33   : > { %8215 = vmatprep.subr.mxu1 %v8542_v11  ;;  %8189 = vmatpush3.msra.mxu0 %v6054_v19  ;;  %v6619_v19 = vand.u32 4294901760, %v9889_v31  ;;  %v6607_v56 = vand.u32 4294901760, %v6606_v25 }
 0xa34   : > { %8216 = vmatpush3.msra.mxu1 %v9692_v4  ;;  %8190 = vmatprep.subr.mxu0 %v8542_v11  ;;  %v9921_v4 = vsub.f32 %v6487_v27, %v9894_v43  ;;  %v6572_v32 = vsub.f32 %v9991_v57, %v6571_v61 }
 0xa35   : > { %8217 = vmatprep.subr.mxu1 %v8542_v11  ;;  %8191 = vmatpush3.msra.mxu0 %v6061_v30  ;;  %v6613_v30 = vsub.f32 %v9877_v21, %v6612_v33 }
 0xa36   : > { %8218 = vmatpush3.msra.mxu1 %v9707_v12  ;;  %8192 = vmatprep.subr.mxu0 %v8542_v11  ;;  %v6626_v12 = vand.u32 4294901760, %v9907_v0  ;;  %v6573_v48 = vand.u32 4294901760, %v6572_v32 }
 0xa37   : > { %8219 = vmatprep.subr.mxu1 %v8542_v11  ;;  %8193 = vmatpush3.msra.mxu0 %v6068_v36  ;;  %v6620_v36 = vsub.f32 %v9889_v31, %v6619_v19  ;;  %v6614_v50 = vand.u32 4294901760, %v6613_v30 }
 0xa38   : > { %8220 = vmatpush3.msra.mxu1 %v9721_v34  ;;  %8221 = vmatprep.mubr.msk.f32.mxu1 %vm8546_vm3, %v8542_v11  ;;  %v6633_v34 = vand.u32 4294901760, %v9921_v4  ;;  %v6627_v29 = vsub.f32 %v9907_v0, %v6626_v12 }
 0xa39   : > { %8194 = vmatprep.subr.mxu0 %v8542_v11  ;;  %8222 = vmatmul.mubr.f32.vlgmr.msra.gmra.mxu1 %v9781_v62 }
 0xa3a   : > { %8243 = vmatprep.subr.mxu1 %v8542_v11  ;;  %8195 = vmatpush3.msra.mxu0 %v6075_v47  ;;  %v6621_v47 = vand.u32 4294901760, %v6620_v36  ;;  %v6634_v1 = vsub.f32 %v9921_v4, %v6633_v34  ;;  %v6628_v46 = vand.u32 4294901760, %v6627_v29 }
 0xa3b   : > { %8244 = vmatpush3.msra.mxu1 %v6600_v16  ;;  %8196 = vmatprep.subr.mxu0 %v8542_v11 }
 0xa3c   : > { %8245 = vmatprep.subr.mxu1 %v8542_v11  ;;  %8197 = vmatpush3.msra.mxu0 %v6082_v58  ;;  %v6647_v58 = vand.u32 4294901760, %v9948_v22 }
 0xa3d   : > { %8246 = vmatpush3.msra.mxu1 %v6607_v56  ;;  %8198 = vmatprep.subr.mxu0 %v8542_v11 }
 0xa3e   : > { %8247 = vmatprep.subr.mxu1 %v8542_v11  ;;  %8199 = vmatpush3.msra.mxu0 %v6089_v38  ;;  %v6635_v38 = vand.u32 4294901760, %v6634_v1  ;;  %v6648_v37 = vsub.f32 %v9948_v22, %v6647_v58  ;;  %v7036_v1 = vsub.s32 3, %v8761_v18 }
 0xa3f   : > { %8248 = vmatpush3.msra.mxu1 %v6614_v50  ;;  %8200 = vmatprep.subr.mxu0 %v8542_v11 }
 0xa40   : > { %8249 = vmatprep.subr.mxu1 %v8542_v11  ;;  %8201 = vmatpush3.msra.mxu0 %v6096_v55  ;;  %v6642_v55 = vand.u32 4294901760, %v6641_v24  ;;  %v6649_v20 = vand.u32 4294901760, %v6648_v37  ;;  %v8432_v37 = vld [vmem:[%s8715_s1] sm:$0xff] }
 0xa41   : > { %8202 = vmatprep.mubr.msk.f32.mxu0 %vm8546_vm3, %v8542_v11  ;;  %8250 = vmatpush3.msra.mxu1 %v6621_v47 }
 0xa42   : > { %8203 = vmatmul.mubr.f32.vlgmr.msra.gmra.mxu0 %v9781_v62  ;;  %8224 = vmatprep.subr.mxu0 %v8542_v11 }
 0xa43   : > { %8251 = vmatprep.subr.mxu1 %v8542_v11  ;;  %8225 = vmatpush3.msra.mxu0 %v9841_v60 }
 0xa44   : > { %8252 = vmatpush3.msra.mxu1 %v6628_v46  ;;  %8226 = vmatprep.subr.mxu0 %v8542_v11 }
 0xa45   : > { %8253 = vmatprep.subr.mxu1 %v8542_v11  ;;  %8227 = vmatpush3.msra.mxu0 %v9848_v2 }
 0xa46   : > { %8254 = vmatpush3.msra.mxu1 %v6635_v38  ;;  %8228 = vmatprep.subr.mxu0 %v8542_v11 }
 0xa47   : > { %8255 = vmatprep.subr.mxu1 %v8542_v11  ;;  %8229 = vmatpush3.msra.mxu0 %v9858_v15 }
 0xa48   : > { %8256 = vmatpush3.msra.mxu1 %v6642_v55  ;;  %8230 = vmatprep.subr.mxu0 %v8542_v11 }
 0xa49   : > { %8257 = vmatprep.subr.mxu1 %v8542_v11  ;;  %8231 = vmatpush3.msra.mxu0 %v9867_v8 }
 0xa4a   : > { %8258 = vmatpush3.msra.mxu1 %v6649_v20  ;;  %8259 = vmatprep.mubr.msk.f32.mxu1 %vm8546_vm3, %v8542_v11 }
 0xa4b   : > { %8232 = vmatprep.subr.mxu0 %v8542_v11  ;;  %8260 = vmatmul.mubr.f32.vlgmr.msra.gmra.mxu1 %v9981_v35 }
 0xa4c   : > { %8281 = vmatprep.subr.mxu1 %v8542_v11  ;;  %8233 = vmatpush3.msra.mxu0 %v9882_v23 }
 0xa4d   : > { %8282 = vmatpush3.msra.mxu1 %v9841_v60  ;;  %8234 = vmatprep.subr.mxu0 %v8542_v11 }
 0xa4e   : > { %8283 = vmatprep.subr.mxu1 %v8542_v11  ;;  %8235 = vmatpush3.msra.mxu0 %v9894_v43 }
 0xa4f   : > { %8284 = vmatpush3.msra.mxu1 %v9848_v2  ;;  %8236 = vmatprep.subr.mxu0 %v8542_v11 }
 0xa50   : > { %8285 = vmatprep.subr.mxu1 %v8542_v11  ;;  %8237 = vmatpush3.msra.mxu0 %v9909_v51 }
 0xa51   : > { %8286 = vmatpush3.msra.mxu1 %v9858_v15  ;;  %8238 = vmatprep.subr.mxu0 %v8542_v11 }
 0xa52   : > { %8287 = vmatprep.subr.mxu1 %v8542_v11  ;;  %8239 = vmatpush3.msra.mxu0 %v9923_v52 }
 0xa53   : > { %8240 = vmatprep.mubr.msk.f32.mxu0 %vm8546_vm3, %v8542_v11  ;;  %8288 = vmatpush3.msra.mxu1 %v9867_v8 }
 0xa54   : > { %8241 = vmatmul.mubr.f32.vlgmr.msra.gmra.mxu0 %v6573_v48  ;;  %8262 = vmatprep.subr.mxu0 %v8542_v11 }
 0xa55   : > { %8289 = vmatprep.subr.mxu1 %v8542_v11  ;;  %8263 = vmatpush3.msra.mxu0 %v9856_v9 }
 0xa56   : > { %8290 = vmatpush3.msra.mxu1 %v9882_v23  ;;  %8264 = vmatprep.subr.mxu0 %v8542_v11 }
 0xa57   : > { %8291 = vmatprep.subr.mxu1 %v8542_v11  ;;  %8265 = vmatpush3.msra.mxu0 %v9865_v3 }
 0xa58   : > { %8292 = vmatpush3.msra.mxu1 %v9894_v43  ;;  %8266 = vmatprep.subr.mxu0 %v8542_v11 }
 0xa59   : > { %8293 = vmatprep.subr.mxu1 %v8542_v11  ;;  %8267 = vmatpush3.msra.mxu0 %v9877_v21 }
 0xa5a   : > { %8294 = vmatpush3.msra.mxu1 %v9909_v51  ;;  %8268 = vmatprep.subr.mxu0 %v8542_v11 }
 0xa5b   : > { %8295 = vmatprep.subr.mxu1 %v8542_v11  ;;  %8269 = vmatpush3.msra.mxu0 %v9889_v31 }
 0xa5c   : > { %8296 = vmatpush3.msra.mxu1 %v9923_v52  ;;  %8297 = vmatprep.mubr.msk.f32.mxu1 %vm8546_vm3, %v8542_v11 }
 0xa5d   : > { %8270 = vmatprep.subr.mxu0 %v8542_v11  ;;  %8298 = vmatmul.mubr.f32.vlgmr.msra.gmra.mxu1 %v6571_v61 }
 0xa5e   : > { %8319 = vmatprep.subr.mxu1 %v8542_v11  ;;  %8271 = vmatpush3.msra.mxu0 %v9907_v0 }
 0xa5f   : > { %8320 = vmatpush3.msra.mxu1 %v9841_v60  ;;  %8272 = vmatprep.subr.mxu0 %v8542_v11 }
 0xa60   : > { %8321 = vmatprep.subr.mxu1 %v8542_v11  ;;  %8273 = vmatpush3.msra.mxu0 %v9921_v4 }
 0xa61   : > { %8322 = vmatpush3.msra.mxu1 %v9848_v2  ;;  %8274 = vmatprep.subr.mxu0 %v8542_v11 }
 0xa62   : > { %8323 = vmatprep.subr.mxu1 %v8542_v11  ;;  %8275 = vmatpush3.msra.mxu0 %v9936_v41 }
 0xa63   : > { %8324 = vmatpush3.msra.mxu1 %v9858_v15  ;;  %8276 = vmatprep.subr.mxu0 %v8542_v11 }
 0xa64   : > { %8325 = vmatprep.subr.mxu1 %v8542_v11  ;;  %8277 = vmatpush3.msra.mxu0 %v9948_v22 }
 0xa65   : > { %8278 = vmatprep.mubr.msk.f32.mxu0 %vm8546_vm3, %v8542_v11  ;;  %8326 = vmatpush3.msra.mxu1 %v9867_v8 }
 0xa66   : > { %8279 = vmatmul.mubr.f32.vlgmr.msra.gmra.mxu0 %v9991_v57  ;;  %8300 = vmatprep.subr.mxu0 %v8542_v11 }
 0xa67   : > { %8327 = vmatprep.subr.mxu1 %v8542_v11  ;;  %8301 = vmatpush3.msra.mxu0 %v6598_v14 }
 0xa68   : > { %8328 = vmatpush3.msra.mxu1 %v9882_v23  ;;  %8302 = vmatprep.subr.mxu0 %v8542_v11 }
 0xa69   : > { %8329 = vmatprep.subr.mxu1 %v8542_v11  ;;  %8303 = vmatpush3.msra.mxu0 %v6605_v28 }
 0xa6a   : > { %8330 = vmatpush3.msra.mxu1 %v9894_v43  ;;  %8304 = vmatprep.subr.mxu0 %v8542_v11 }
 0xa6b   : > { %8331 = vmatprep.subr.mxu1 %v8542_v11  ;;  %8305 = vmatpush3.msra.mxu0 %v6612_v33 }
 0xa6c   : > { %8332 = vmatpush3.msra.mxu1 %v9909_v51  ;;  %8306 = vmatprep.subr.mxu0 %v8542_v11 }
 0xa6d   : > { %8333 = vmatprep.subr.mxu1 %v8542_v11  ;;  %8307 = vmatpush3.msra.mxu0 %v6619_v19 }
 0xa6e   : > { %8334 = vmatpush3.msra.mxu1 %v9923_v52  ;;  %8335 = vmatprep.mubr.msk.f32.mxu1 %vm8546_vm3, %v8542_v11 }
 0xa6f   : > { %8308 = vmatprep.subr.mxu0 %v8542_v11  ;;  %8336 = vmatmul.mubr.f32.vlgmr.msra.gmra.mxu1 %v9981_v35 }
 0xa70   : > { %8309 = vmatpush3.msra.mxu0 %v6626_v12  ;;  %8316 = vmatprep.mubr.msk.f32.mxu0 %vm8546_vm3, %v8542_v11 }
 0xa71   : > { %8310 = vmatprep.subr.mxu0 %v8542_v11 }
 0xa72   : > { %8311 = vmatpush3.msra.mxu0 %v6633_v34 }
 0xa73   : > { %8312 = vmatprep.subr.mxu0 %v8542_v11 }
 0xa74   : > { %8313 = vmatpush3.msra.mxu0 %v6640_v40 }
 0xa75   : > { %8314 = vmatprep.subr.mxu0 %v8542_v11 }
 0xa76   : > { %8315 = vmatpush3.msra.mxu0 %v6647_v58 }
 0xa77   : > { %8317 = vmatmul.mubr.f32.vlgmr.msra.gmra.mxu0 %v9981_v35  ;;  %v7037_v35 = vrot.slane %v8432_v37, %v7036_v1 }
 0xaa1   : > { %v5595_v62 = vpop.f32.mrf.mxu1 }
 0xaa3   : > { %v8033_v5 = vpop.f32.mrf.mxu1 }
 0xaa9   : > { %v5484_v42 = vpop.f32.mrf.mxu0 }
 0xaaa   : > { %v5596_v39 = vadd.f32 %v5595_v62, %v5484_v42 }
 0xaab   : > { %v8014_v44 = vpop.f32.mrf.mxu0 }
 0xab1   : > { %v5764_v49 = vpop.f32.mrf.mxu1 }
 0xab3   : > { %v8071_v45 = vpop.f32.mrf.mxu1 }
 0xaba   : > { %v5683_v53 = vpop.f32.mrf.mxu0 }
 0xabb   : > { %v5684_v59 = vadd.f32 %v5683_v53, %v5596_v39 }
 0xabc   : > { %v8052_v60 = vpop.f32.mrf.mxu0 }
 0xabd   : > { %v5765_v63 = vadd.f32 %v5764_v49, %v5684_v59  ;;  %v7064_v59 = vsub.s32 5, %v8761_v18 }
 0xac3   : > { %v5938_v2 = vpop.f32.mrf.mxu1 }
 0xac5   : > { %v8109_v6 = vpop.f32.mrf.mxu1 }
 0xacc   : > { %v5859_v9 = vpop.f32.mrf.mxu0 }
 0xacd   : > { %v5860_v11 = vadd.f32 %v5859_v9, %v5765_v63  ;;  %v7065_v9 = vrot.slane %v8432_v37, %v7064_v59 }
 0xace   : > { %v8090_v15 = vpop.f32.mrf.mxu0 }
 0xacf   : > { %v5939_v3 = vadd.f32 %v5938_v2, %v5860_v11 }
 0xad5   : > { %v6135_v8 = vpop.f32.mrf.mxu1 }
 0xad7   : > { %v8147_v17 = vpop.f32.mrf.mxu1 }
 0xade   : > { %v6024_v14 = vpop.f32.mrf.mxu0 }
 0xadf   : > { %v6025_v21 = vadd.f32 %v6024_v14, %v5939_v3 }
 0xae0   : > { %v8128_v27 = vpop.f32.mrf.mxu0 }
 0xae1   : > { %v6136_v23 = vadd.f32 %v6135_v8, %v6025_v21 }
 0xae7   : > { %v6304_v28 = vpop.f32.mrf.mxu1 }
 0xae9   : > { %v8185_v31 = vpop.f32.mrf.mxu1 }
 0xaf0   : > { %v6223_v7 = vpop.f32.mrf.mxu0 }
 0xaf1   : > { %v6224_v43 = vadd.f32 %v6223_v7, %v6136_v23 }
 0xaf2   : > { %v8166_v10 = vpop.f32.mrf.mxu0 }
 0xaf3   : > { %v6305_v33 = vadd.f32 %v6304_v28, %v6224_v43 }
 0xaf9   : > { %v6478_v26 = vpop.f32.mrf.mxu1 }
 0xafb   : > { %v8223_v0 = vpop.f32.mrf.mxu1 }
 0xb02   : > { %v6399_v51 = vpop.f32.mrf.mxu0 }
 0xb03   : > { %v6400_v25 = vadd.f32 %v6399_v51, %v6305_v33 }
 0xb04   : > { %v8204_v19 = vpop.f32.mrf.mxu0 }
 0xb05   : > { %v6479_v4 = vadd.f32 %v6478_v26, %v6400_v25 }
 0xb0b   : > { %v6686_v52 = vpop.f32.mrf.mxu1 }
 0xb0d   : > { %v8261_v16 = vpop.f32.mrf.mxu1 }
 0xb14   : > { %v6575_v30 = vpop.f32.mrf.mxu0 }
 0xb15   : > { %v6687_v50 = vadd.f32 %v6686_v52, %v6575_v30 }
 0xb16   : > { %v8242_v12 = vpop.f32.mrf.mxu0 }
 0xb1d   : > { %v6855_v41 = vpop.f32.mrf.mxu1 }
 0xb1f   : > { %v8299_v56 = vpop.f32.mrf.mxu1 }
 0xb26   : > { %v6774_v36 = vpop.f32.mrf.mxu0 }
 0xb27   : > { %v6775_v40 = vadd.f32 %v6774_v36, %v6687_v50 }
 0xb28   : > { %v8280_v34 = vpop.f32.mrf.mxu0 }
 0xb29   : > { %v6856_v47 = vadd.f32 %v6855_v41, %v6775_v40 }
 0xb2f   : > { %v7029_v22 = vpop.f32.mrf.mxu1 }
 0xb31   : > { %v8337_v29 = vpop.f32.mrf.mxu1 }
 0xb37   : > { %v6950_v58 = vpop.f32.mrf.mxu0 }
 0xb38   : > { %v6951_v46 = vadd.f32 %v6950_v58, %v6856_v47 }
 0xb39   : > { %v8318_v24 = vpop.f32.mrf.mxu0 }
 0xb3a   : > { %v7030_v38 = vadd.f32 %v7029_v22, %v6951_v46 }
 0xb3c   : > { %v7033_v55 = vadd.f32 %v7030_v38, %v6479_v4 }
 0xb3e   : > { %v7038_v20 = vadd.f32 %v7037_v35, %v7033_v55 }
 0xb40   : > { %v7039_v57 = vmul.f32 %v8848_v54, %v7038_v20 }
 0xb42   : > { %v7040_v61 = vadd.f32 %v7039_v57, %v9205_v13  ;;  %v7059_v13 = vsub.s32 4, %v8761_v18 }
 0xb44   : > { %v7041_v32 = vsel %vm516_vm2, %v7040_v61, 0.0  ;;  %v7045_v48 = vmul.f32 %v7040_v61, %v7040_v61  ;;  %v7060_v63 = vrot.slane %v8432_v37, %v7059_v13 }
 0xb45   : > { %7042 = vadd.xlane.f32.xlu1 %v7041_v32 }
 0xb46   : > { %v7046_v62 = vsel %vm516_vm2, %v7045_v48, 0.0 }
 0xb49   : > { %7047 = vadd.xlane.f32.xlu1 %v7046_v62 }
 0xbce   : > { %v7043_v5 = vpop.xlane.xlu1 %7042 }
 0xbcf   : > { %v7044_v42 = vmul.f32 0.03125, %v7043_v5 }
 0xbd1   : > { %v7050_v44 = vmul.f32 %v7044_v42, %v7044_v42  ;;  %v7053_v60 = vsub.f32 %v7040_v61, %v7044_v42 }
 0xbd2   : > { %v7048_v39 = vpop.xlane.xlu1 %7047 }
 0xbd3   : > { %v7049_v49 = vmul.f32 0.03125, %v7048_v39 }
 0xbd5   : > { %v7051_v45 = vsub.f32 %v7049_v49, %v7050_v44 }
 0xbd7   : > { %v7052_v53 = vmax.f32 %v7051_v45, 0.0 }
 0xbd9   : > { %v7054_v54 = vadd.f32 0.0001, %v7052_v53 }
 0xbdb   : > { %8430 = vrsqrt.f32 %v7054_v54 }
 0xbe8   : > { %v8431_v2 = vpop.eup %8430 }
 0xbe9   : > { %v7056_v6 = vmul.f32 %v8431_v2, %v7053_v60 }
 0xbeb   : > { %v7061_v11 = vmul.f32 %v7060_v63, %v7056_v6 }
 0xbed   : > { %v7066_v15 = vadd.f32 %v7065_v9, %v7061_v11 }
 0xbef   : > { %7067 = vst.msk [vmem:[%s8733_s5] sm:$0xff] %vm516_vm2, %v7066_v15 }
 0xbf0   : > { %8458 = shalt.err (!%p8455_p13)
}
 0xbf1   : > { %s8459_s20 = scalar_lea.hbm %s7080_s0, 128  ;;  %s8463_s22 = scalar_lea.hbm %s10198_s14, 256 }
 0xbf2   : > { %p8460_p1 = scmp.ne.s32.totalorder %s7080_s0, %s8459_s20  ;;  %p8464_p4 = scmp.lt.s32.totalorder %s7080_s0, %s10198_s14 }
 0xbf3   : > { %p8465_p5 = scmp.lt.s32.totalorder %s8463_s22, %s8459_s20 }
 0xbf4   : > { %p8461_p2 = pnand %p8460_p1, %p8658_p8 }
 0xbf5   : > { %p8466_p6 = por %p8465_p5, %p8464_p4 }
 0xbf6   : > { %p8462_p3 = pneg %p8461_p2 }
 0xbf8   : > { %p8467_p7 = pnand %p8466_p6, %p8462_p3 }
 0xbfa   : > { %8470 = shalt.err (!%p8467_p7)
}
 0xbfb   : > { %8340 = dma.vmem_to_hbm [thread:$0]  (%p8658_p8), %s7083_s25, 128, %s7080_s0, %s7069_s13  }
 0xbfc PF: > { %s10200_s26 = sld [smem:[#allocation12_spill]] }
 0xbfd   : > { %s10201_s12 = sld [smem:[#allocation8_spill]] }
 0xc02   : > { %p8346_p9 = scmp.ge.s32.totalorder %s10200_s26, 2 }
 0xc03   : > { %s7094_s16 = sand.u32 1, %s10201_s12  }
 0xc04   : > { %p8343_p10 = pnand %p8346_p9, %p8668_p0  ;;  %s7095_s4 = scalar_lea.sflag [#allocation5], %s7094_s16 }
 0xc06   : > { %p8344_p11 = pneg %p8343_p10 }
 0xc08   : > { %8506 = dma.done.wait (%p8344_p11), %s7095_s4, 128  }
 0xc09   : > { %8508 = vsyncadd (%p8344_p11), %s7095_s4, 4294967168  ;;  %s29_s24 = sadd.s32 1, %s10200_s26   ;;  %s10203_s17 = sld [smem:[#allocation9_spill]] }
 0xc0a   : > { %p26_p12 = scmp.ge.s32.totalorder %s29_s24, 6   ;;  %s10204_s0 = sld [smem:[#allocation17_spill]] }
 0xc0b   : > { %s10205_s20 = sld [smem:[#allocation10_spill]]  ;;  %s10209_s18 = smov %s8515_s19 }
 0xc0c   : > { %s10206_s21 = sld [smem:[#allocation11_spill]]  ;;  %28 = sbr.rel (!%p26_p12) target bundleno = 22 (0x16), region = 117 }
 0xc0d   : > { %s10207_s22 = sld [smem:[#allocation13_spill]] }
 0xc0e   : > { %s10208_s23 = sld [smem:[#allocation15_spill]] }
 0xc0f   : > { %s10210_s19 = smov %s10203_s17 }
 0xc11   :  { %7100 = vsyncpa [#allocation5], 1 }
 0xc12   :  { %7102 = vsyncpa [#allocation5 + $0x1], 1 }

</bundles_post_ra>
